<compile_context>
chip_gen: v7x
topology: tpu7x:2x2x1
jax: 0.10.0
libtpu: 0.0.40
codegen_flags: <defaults>
</compile_context>

<pallas_src>
import functools

import jax
import jax.numpy as jnp
from jax import lax
from jax.experimental import pallas as pl
from jax.experimental.pallas import tpu as pltpu


# ----------------------------- fused Block kernel -----------------------------
def _block_kernel(x_ref,
                  n1w_ref, n1b_ref,
                  wqkv_ref, bqkv_ref,
                  wproj_ref, bproj_ref, g1_ref,
                  n2w_ref, n2b_ref,
                  wfc1_ref, bfc1_ref, wfc2_ref, bfc2_ref, g2_ref,
                  o_ref, *, num_heads, eps):
    x = x_ref[0]                                        # (N, C) float32
    N, C = x.shape
    dh = C // num_heads
    scale = float(dh) ** -0.5

    def layernorm(t, w, b):
        mu = jnp.mean(t, axis=-1, keepdims=True)
        var = jnp.mean(jnp.square(t - mu), axis=-1, keepdims=True)
        return (t - mu) * lax.rsqrt(var + eps) * w + b  # (1,C) broadcasts

    # ---------------- norm1 + qkv projection ----------------
    h = layernorm(x, n1w_ref[...], n1b_ref[...])
    qkv = jnp.dot(h, wqkv_ref[...],
                  preferred_element_type=jnp.float32) + bqkv_ref[...]   # (N, 3C)
    q = qkv[:, 0:C]
    k = qkv[:, C:2 * C]
    v = qkv[:, 2 * C:3 * C]

    # ---------------- multi-head attention (static unroll over heads) --------
    # torch layout: qkv.reshape(B,N,3,nh,dh) -> head h of q is columns
    # [h*dh:(h+1)*dh] of the q block.  Per head: softmax(q k^T * scale) v.
    head_outs = []
    for hd in range(num_heads):
        sl = slice(hd * dh, (hd + 1) * dh)
        qh, kh, vh = q[:, sl], k[:, sl], v[:, sl]                       # (N, dh)
        s = lax.dot_general(qh, kh, (((1,), (1,)), ((), ())),
                            preferred_element_type=jnp.float32) * scale  # (N, N)
        p = jax.nn.softmax(s, axis=-1)                                   # attn_drop = id
        head_outs.append(jnp.dot(p, vh, preferred_element_type=jnp.float32))
    attn = jnp.concatenate(head_outs, axis=-1)                           # (N, C)

    attn = jnp.dot(attn, wproj_ref[...],
                   preferred_element_type=jnp.float32) + bproj_ref[...]  # proj_drop = id
    x = x + g1_ref[...] * attn                    # residual 1 (drop_path = identity)

    # ---------------- norm2 + MLP ----------------
    h2 = layernorm(x, n2w_ref[...], n2b_ref[...])
    m = jnp.dot(h2, wfc1_ref[...],
                preferred_element_type=jnp.float32) + bfc1_ref[...]      # (N, hidden)
    # TODO(synk): nn.GELU is exact (erf); tanh-approx GELU used for robust Mosaic lowering.
    m = jax.nn.gelu(m, approximate=True)
    m = jnp.dot(m, wfc2_ref[...],
                preferred_element_type=jnp.float32) + bfc2_ref[...]      # (N, C)
    o_ref[0] = x + g2_ref[...] * m               # residual 2 (drop_path = identity)


def block_forward(params, x, H, W, *, num_heads, eps=1e-5):
    """Fused forward of `Block` (windowed=False, use_residual=False)."""
    # TODO(synk): WindowedAttention and ResBottleneckBlock paths (windowed=True /
    # use_residual=True) are not implemented; defaults disable them.
    del H, W  # standard (global) Attention ignores H, W
    B, N, C = x.shape
    assert C % num_heads == 0, "dim must be divisible by num_heads"
    hidden = params["fc1_w"].shape[1]

    row = lambda a: a.reshape(1, -1)                     # biases/scales as (1, D)
    n1w, n1b = row(params["n1_w"]), row(params["n1_b"])
    n2w, n2b = row(params["n2_w"]), row(params["n2_b"])
    bqkv, bproj = row(params["qkv_b"]), row(params["proj_b"])
    bfc1, bfc2 = row(params["fc1_b"]), row(params["fc2_b"])
    g1, g2 = row(params["gamma1"]), row(params["gamma2"])

    def wspec(shape):                                    # replicated weight block
        return pl.BlockSpec(shape, lambda b: (0, 0))

    kern = functools.partial(_block_kernel, num_heads=num_heads, eps=eps)
    return pl.pallas_call(
        kern,
        out_shape=jax.ShapeDtypeStruct((B, N, C), jnp.float32),
        grid=(B,),
        in_specs=[
            pl.BlockSpec((1, N, C), lambda b: (b, 0, 0)),   # x
            wspec((1, C)), wspec((1, C)),                   # norm1 w, b
            wspec((C, 3 * C)), wspec((1, 3 * C)),           # qkv w, b
            wspec((C, C)), wspec((1, C)), wspec((1, C)),    # proj w, b, gamma1
            wspec((1, C)), wspec((1, C)),                   # norm2 w, b
            wspec((C, hidden)), wspec((1, hidden)),         # fc1 w, b
            wspec((hidden, C)), wspec((1, C)), wspec((1, C)),  # fc2 w, b, gamma2
        ],
        out_specs=pl.BlockSpec((1, N, C), lambda b: (b, 0, 0)),
        compiler_params=pltpu.CompilerParams(dimension_semantics=("parallel",)),
    )(x, n1w, n1b, params["qkv_w"], bqkv, params["proj_w"], bproj, g1,
      n2w, n2b, params["fc1_w"], bfc1, params["fc2_w"], bfc2, g2)


# ----------------------------- pure-JAX reference -----------------------------
def block_reference(params, x, *, num_heads, eps=1e-5):
    hp = lax.Precision.HIGHEST

    def ln(t, w, b):
        mu = jnp.mean(t, axis=-1, keepdims=True)
        var = jnp.mean(jnp.square(t - mu), axis=-1, keepdims=True)
        return (t - mu) * lax.rsqrt(var + eps) * w + b

    B, N, C = x.shape
    dh = C // num_heads
    h = ln(x, params["n1_w"], params["n1_b"])
    qkv = jnp.einsum("bnc,cd->bnd", h, params["qkv_w"], precision=hp) + params["qkv_b"]
    qkv = qkv.reshape(B, N, 3, num_heads, dh).transpose(2, 0, 3, 1, 4)
    q, k, v = qkv[0], qkv[1], qkv[2]
    s = jnp.einsum("bhqd,bhkd->bhqk", q, k, precision=hp) * (dh ** -0.5)
    p = jax.nn.softmax(s, axis=-1)
    o = jnp.einsum("bhqk,bhkd->bhqd", p, v, precision=hp)
    o = o.transpose(0, 2, 1, 3).reshape(B, N, C)
    o = jnp.einsum("bnc,cd->bnd", o, params["proj_w"], precision=hp) + params["proj_b"]
    x = x + params["gamma1"] * o
    h2 = ln(x, params["n2_w"], params["n2_b"])
    m = jnp.einsum("bnc,ch->bnh", h2, params["fc1_w"], precision=hp) + params["fc1_b"]
    m = jax.nn.gelu(m, approximate=True)
    m = jnp.einsum("bnh,hc->bnc", m, params["fc2_w"], precision=hp) + params["fc2_b"]
    return x + params["gamma2"] * m


# ------------------------------- parameter init -------------------------------
def init_params(key, dim, num_heads, mlp_ratio=4.0, qkv_bias=False,
                layer_scale=False):
    assert dim % num_heads == 0
    hidden = int(dim * mlp_ratio)
    ks = jax.random.split(key, 5)

    def rnd(k, shape, s=0.02):
        return s * jax.random.normal(k, shape, jnp.float32)

    ones = lambda n: jnp.ones((n,), jnp.float32)
    zeros = lambda n: jnp.zeros((n,), jnp.float32)
    return dict(
        n1_w=ones(dim), n1_b=zeros(dim),
        qkv_w=rnd(ks[0], (dim, 3 * dim)),
        qkv_b=(rnd(ks[1], (3 * dim,)) if qkv_bias else zeros(3 * dim)),
        proj_w=rnd(ks[2], (dim, dim)), proj_b=zeros(dim),
        n2_w=ones(dim), n2_b=zeros(dim),
        fc1_w=rnd(ks[3], (dim, hidden)), fc1_b=zeros(hidden),
        fc2_w=rnd(ks[4], (hidden, dim)), fc2_b=zeros(dim),
        # layer_scale=False => no gamma in the reference module; ones() is an
        # exact no-op multiplier, so both modes share one code path.
        gamma1=ones(dim), gamma2=ones(dim),
    )


if __name__ == "__main__":
    B, Hs, Ws = 2, 8, 8               # B=2 -> "parallel" grid axis for v7x's 2 TCs
    N = Hs * Ws                       # 64 tokens
    dim, num_heads, mlp_ratio = 128, 4, 4.0   # lane-dense C=128, hidden=512

    key = jax.random.PRNGKey(0)
    kx, kp = jax.random.split(key)
    x = jax.random.normal(kx, (B, N, dim), jnp.float32)
    params = init_params(kp, dim, num_heads, mlp_ratio, qkv_bias=False,
                         layer_scale=False)

    out = block_forward(params, x, Hs, Ws, num_heads=num_heads)
    out = jax.block_until_ready(out)
    assert out.shape == (B, N, dim)
    assert bool(jnp.isfinite(out).all())

    ref = block_reference(params, x, num_heads=num_heads)
    assert bool(jnp.allclose(out, ref, atol=1e-2, rtol=1e-2))
    print("KERNEL_OK")
</pallas_src>

<mosaic_0001>
module attributes {stable_mosaic.version = 11 : i64} {
  func.func @_block_kernel(%arg0: i32, %arg1: memref<1x64x128xf32, #tpu.memory_space<vmem>>, %arg2: memref<1x128xf32, #tpu.memory_space<vmem>>, %arg3: memref<1x128xf32, #tpu.memory_space<vmem>>, %arg4: memref<128x384xf32, #tpu.memory_space<vmem>>, %arg5: memref<1x384xf32, #tpu.memory_space<vmem>>, %arg6: memref<128x128xf32, #tpu.memory_space<vmem>>, %arg7: memref<1x128xf32, #tpu.memory_space<vmem>>, %arg8: memref<1x128xf32, #tpu.memory_space<vmem>>, %arg9: memref<1x128xf32, #tpu.memory_space<vmem>>, %arg10: memref<1x128xf32, #tpu.memory_space<vmem>>, %arg11: memref<128x512xf32, #tpu.memory_space<vmem>>, %arg12: memref<1x512xf32, #tpu.memory_space<vmem>>, %arg13: memref<512x128xf32, #tpu.memory_space<vmem>>, %arg14: memref<1x128xf32, #tpu.memory_space<vmem>>, %arg15: memref<1x128xf32, #tpu.memory_space<vmem>>, %arg16: memref<1x64x128xf32, #tpu.memory_space<vmem>>) attributes {dimension_semantics = [#tpu.dimension_semantics<parallel>], iteration_bounds = array<i64: 2>, scalar_prefetch = 0 : i64, scratch_operands = 0 : i64, tpu.core_type = #tpu.core_type<tc>, window_params = [{transform_indices = @transform_0, window_bounds = array<i64: 1, 64, 128>}, {pipeline_mode = #tpu.pipeline_mode<synchronous>, transform_indices = @transform_1, window_bounds = array<i64: 1, 128>}, {pipeline_mode = #tpu.pipeline_mode<synchronous>, transform_indices = @transform_2, window_bounds = array<i64: 1, 128>}, {pipeline_mode = #tpu.pipeline_mode<synchronous>, transform_indices = @transform_3, window_bounds = array<i64: 128, 384>}, {pipeline_mode = #tpu.pipeline_mode<synchronous>, transform_indices = @transform_4, window_bounds = array<i64: 1, 384>}, {pipeline_mode = #tpu.pipeline_mode<synchronous>, transform_indices = @transform_5, window_bounds = array<i64: 128, 128>}, {pipeline_mode = #tpu.pipeline_mode<synchronous>, transform_indices = @transform_6, window_bounds = array<i64: 1, 128>}, {pipeline_mode = #tpu.pipeline_mode<synchronous>, transform_indices = @transform_7, window_bounds = array<i64: 1, 128>}, {pipeline_mode = #tpu.pipeline_mode<synchronous>, transform_indices = @transform_8, window_bounds = array<i64: 1, 128>}, {pipeline_mode = #tpu.pipeline_mode<synchronous>, transform_indices = @transform_9, window_bounds = array<i64: 1, 128>}, {pipeline_mode = #tpu.pipeline_mode<synchronous>, transform_indices = @transform_10, window_bounds = array<i64: 128, 512>}, {pipeline_mode = #tpu.pipeline_mode<synchronous>, transform_indices = @transform_11, window_bounds = array<i64: 1, 512>}, {pipeline_mode = #tpu.pipeline_mode<synchronous>, transform_indices = @transform_12, window_bounds = array<i64: 512, 128>}, {pipeline_mode = #tpu.pipeline_mode<synchronous>, transform_indices = @transform_13, window_bounds = array<i64: 1, 128>}, {pipeline_mode = #tpu.pipeline_mode<synchronous>, transform_indices = @transform_14, window_bounds = array<i64: 1, 128>}, {transform_indices = @transform_15, window_bounds = array<i64: 1, 64, 128>}]} {
    %c0 = arith.constant 0 : index
    %c0_0 = arith.constant 0 : index
    %c0_1 = arith.constant 0 : index
    %0 = vector.load %arg1[%c0, %c0_0, %c0_1] : memref<1x64x128xf32, #tpu.memory_space<vmem>>, vector<1x64x128xf32>
    %1 = vector.shape_cast %0 : vector<1x64x128xf32> to vector<64x128xf32>
    %c0_2 = arith.constant 0 : index
    %c0_3 = arith.constant 0 : index
    %2 = vector.load %arg2[%c0_2, %c0_3] : memref<1x128xf32, #tpu.memory_space<vmem>>, vector<1x128xf32>
    %c0_4 = arith.constant 0 : index
    %c0_5 = arith.constant 0 : index
    %3 = vector.load %arg3[%c0_4, %c0_5] : memref<1x128xf32, #tpu.memory_space<vmem>>, vector<1x128xf32>
    %cst = arith.constant dense<0.000000e+00> : vector<64xf32>
    %4 = vector.multi_reduction <add>, %1, %cst [1] : vector<64x128xf32> to vector<64xf32>
    %5 = vector.shape_cast %4 : vector<64xf32> to vector<64x1xf32>
    %cst_6 = arith.constant 1.280000e+02 : f32
    %6 = vector.broadcast %cst_6 : f32 to vector<64x1xf32>
    %7 = arith.divf %5, %6 : vector<64x1xf32>
    %8 = vector.broadcast %7 : vector<64x1xf32> to vector<64x128xf32>
    %9 = arith.subf %1, %8 : vector<64x128xf32>
    %10 = arith.mulf %9, %9 : vector<64x128xf32>
    %cst_7 = arith.constant dense<0.000000e+00> : vector<64xf32>
    %11 = vector.multi_reduction <add>, %10, %cst_7 [1] : vector<64x128xf32> to vector<64xf32>
    %12 = vector.shape_cast %11 : vector<64xf32> to vector<64x1xf32>
    %cst_8 = arith.constant 1.280000e+02 : f32
    %13 = vector.broadcast %cst_8 : f32 to vector<64x1xf32>
    %14 = arith.divf %12, %13 : vector<64x1xf32>
    %15 = vector.broadcast %7 : vector<64x1xf32> to vector<64x128xf32>
    %16 = arith.subf %1, %15 : vector<64x128xf32>
    %cst_9 = arith.constant 9.99999974E-6 : f32
    %17 = vector.broadcast %cst_9 : f32 to vector<64x1xf32>
    %18 = arith.addf %14, %17 : vector<64x1xf32>
    %19 = math.rsqrt %18 : vector<64x1xf32>
    %20 = vector.broadcast %19 : vector<64x1xf32> to vector<64x128xf32>
    %21 = arith.mulf %16, %20 : vector<64x128xf32>
    %22 = vector.broadcast %2 : vector<1x128xf32> to vector<64x128xf32>
    %23 = arith.mulf %21, %22 : vector<64x128xf32>
    %24 = vector.broadcast %3 : vector<1x128xf32> to vector<64x128xf32>
    %25 = arith.addf %23, %24 : vector<64x128xf32>
    %c0_10 = arith.constant 0 : index
    %c0_11 = arith.constant 0 : index
    %26 = vector.load %arg4[%c0_10, %c0_11] : memref<128x384xf32, #tpu.memory_space<vmem>>, vector<128x384xf32>
    %cst_12 = arith.constant dense<0.000000e+00> : vector<64x384xf32>
    %27 = tpu.matmul %25, %26, %cst_12 {dimension_numbers = #tpu.dot_dimension_numbers<[1], [0], [0], [1], [0, 0, 1, 1], [], []>} : vector<64x128xf32>, vector<128x384xf32>, vector<64x384xf32> -> vector<64x384xf32>
    %c0_13 = arith.constant 0 : index
    %c0_14 = arith.constant 0 : index
    %28 = vector.load %arg5[%c0_13, %c0_14] : memref<1x384xf32, #tpu.memory_space<vmem>>, vector<1x384xf32>
    %29 = vector.broadcast %28 : vector<1x384xf32> to vector<64x384xf32>
    %30 = arith.addf %27, %29 : vector<64x384xf32>
    %31 = vector.extract_strided_slice %30 {offsets = [0, 0], sizes = [64, 128], strides = [1, 1]} : vector<64x384xf32> to vector<64x128xf32>
    %32 = vector.extract_strided_slice %30 {offsets = [0, 128], sizes = [64, 128], strides = [1, 1]} : vector<64x384xf32> to vector<64x128xf32>
    %33 = vector.extract_strided_slice %30 {offsets = [0, 256], sizes = [64, 128], strides = [1, 1]} : vector<64x384xf32> to vector<64x128xf32>
    %34 = vector.extract_strided_slice %31 {offsets = [0, 0], sizes = [64, 32], strides = [1, 1]} : vector<64x128xf32> to vector<64x32xf32>
    %35 = vector.extract_strided_slice %32 {offsets = [0, 0], sizes = [64, 32], strides = [1, 1]} : vector<64x128xf32> to vector<64x32xf32>
    %36 = vector.extract_strided_slice %33 {offsets = [0, 0], sizes = [64, 32], strides = [1, 1]} : vector<64x128xf32> to vector<64x32xf32>
    %cst_15 = arith.constant dense<0.000000e+00> : vector<64x64xf32>
    %37 = tpu.matmul %34, %35, %cst_15 {dimension_numbers = #tpu.dot_dimension_numbers<[1], [1], [0], [0], [0, 0, 1, 0], [], []>} : vector<64x32xf32>, vector<64x32xf32>, vector<64x64xf32> -> vector<64x64xf32>
    %cst_16 = arith.constant 0.176776692 : f32
    %38 = vector.broadcast %cst_16 : f32 to vector<64x64xf32>
    %39 = arith.mulf %37, %38 : vector<64x64xf32>
    %cst_17 = arith.constant dense<0xFF800000> : vector<64xf32>
    %40 = vector.multi_reduction <maximumf>, %39, %cst_17 [1] : vector<64x64xf32> to vector<64xf32>
    %cst_18 = arith.constant 0xFF800000 : f32
    %41 = vector.broadcast %cst_18 : f32 to vector<64xf32>
    %42 = arith.maximumf %41, %40 : vector<64xf32>
    %43 = vector.shape_cast %42 : vector<64xf32> to vector<64x1xf32>
    %44 = vector.broadcast %43 : vector<64x1xf32> to vector<64x64xf32>
    %45 = arith.subf %39, %44 : vector<64x64xf32>
    %46 = math.exp %45 : vector<64x64xf32>
    %cst_19 = arith.constant dense<0.000000e+00> : vector<64xf32>
    %47 = vector.multi_reduction <add>, %46, %cst_19 [1] : vector<64x64xf32> to vector<64xf32>
    %48 = vector.shape_cast %47 : vector<64xf32> to vector<64x1xf32>
    %49 = vector.broadcast %48 : vector<64x1xf32> to vector<64x64xf32>
    %50 = arith.divf %46, %49 : vector<64x64xf32>
    %cst_20 = arith.constant dense<0.000000e+00> : vector<64x32xf32>
    %51 = tpu.matmul %50, %36, %cst_20 {dimension_numbers = #tpu.dot_dimension_numbers<[1], [0], [0], [1], [0, 0, 1, 1], [], []>} : vector<64x64xf32>, vector<64x32xf32>, vector<64x32xf32> -> vector<64x32xf32>
    %52 = vector.extract_strided_slice %31 {offsets = [0, 32], sizes = [64, 32], strides = [1, 1]} : vector<64x128xf32> to vector<64x32xf32>
    %53 = vector.extract_strided_slice %32 {offsets = [0, 32], sizes = [64, 32], strides = [1, 1]} : vector<64x128xf32> to vector<64x32xf32>
    %54 = vector.extract_strided_slice %33 {offsets = [0, 32], sizes = [64, 32], strides = [1, 1]} : vector<64x128xf32> to vector<64x32xf32>
    %cst_21 = arith.constant dense<0.000000e+00> : vector<64x64xf32>
    %55 = tpu.matmul %52, %53, %cst_21 {dimension_numbers = #tpu.dot_dimension_numbers<[1], [1], [0], [0], [0, 0, 1, 0], [], []>} : vector<64x32xf32>, vector<64x32xf32>, vector<64x64xf32> -> vector<64x64xf32>
    %cst_22 = arith.constant 0.176776692 : f32
    %56 = vector.broadcast %cst_22 : f32 to vector<64x64xf32>
    %57 = arith.mulf %55, %56 : vector<64x64xf32>
    %cst_23 = arith.constant dense<0xFF800000> : vector<64xf32>
    %58 = vector.multi_reduction <maximumf>, %57, %cst_23 [1] : vector<64x64xf32> to vector<64xf32>
    %cst_24 = arith.constant 0xFF800000 : f32
    %59 = vector.broadcast %cst_24 : f32 to vector<64xf32>
    %60 = arith.maximumf %59, %58 : vector<64xf32>
    %61 = vector.shape_cast %60 : vector<64xf32> to vector<64x1xf32>
    %62 = vector.broadcast %61 : vector<64x1xf32> to vector<64x64xf32>
    %63 = arith.subf %57, %62 : vector<64x64xf32>
    %64 = math.exp %63 : vector<64x64xf32>
    %cst_25 = arith.constant dense<0.000000e+00> : vector<64xf32>
    %65 = vector.multi_reduction <add>, %64, %cst_25 [1] : vector<64x64xf32> to vector<64xf32>
    %66 = vector.shape_cast %65 : vector<64xf32> to vector<64x1xf32>
    %67 = vector.broadcast %66 : vector<64x1xf32> to vector<64x64xf32>
    %68 = arith.divf %64, %67 : vector<64x64xf32>
    %cst_26 = arith.constant dense<0.000000e+00> : vector<64x32xf32>
    %69 = tpu.matmul %68, %54, %cst_26 {dimension_numbers = #tpu.dot_dimension_numbers<[1], [0], [0], [1], [0, 0, 1, 1], [], []>} : vector<64x64xf32>, vector<64x32xf32>, vector<64x32xf32> -> vector<64x32xf32>
    %70 = vector.extract_strided_slice %31 {offsets = [0, 64], sizes = [64, 32], strides = [1, 1]} : vector<64x128xf32> to vector<64x32xf32>
    %71 = vector.extract_strided_slice %32 {offsets = [0, 64], sizes = [64, 32], strides = [1, 1]} : vector<64x128xf32> to vector<64x32xf32>
    %72 = vector.extract_strided_slice %33 {offsets = [0, 64], sizes = [64, 32], strides = [1, 1]} : vector<64x128xf32> to vector<64x32xf32>
    %cst_27 = arith.constant dense<0.000000e+00> : vector<64x64xf32>
    %73 = tpu.matmul %70, %71, %cst_27 {dimension_numbers = #tpu.dot_dimension_numbers<[1], [1], [0], [0], [0, 0, 1, 0], [], []>} : vector<64x32xf32>, vector<64x32xf32>, vector<64x64xf32> -> vector<64x64xf32>
    %cst_28 = arith.constant 0.176776692 : f32
    %74 = vector.broadcast %cst_28 : f32 to vector<64x64xf32>
    %75 = arith.mulf %73, %74 : vector<64x64xf32>
    %cst_29 = arith.constant dense<0xFF800000> : vector<64xf32>
    %76 = vector.multi_reduction <maximumf>, %75, %cst_29 [1] : vector<64x64xf32> to vector<64xf32>
    %cst_30 = arith.constant 0xFF800000 : f32
    %77 = vector.broadcast %cst_30 : f32 to vector<64xf32>
    %78 = arith.maximumf %77, %76 : vector<64xf32>
    %79 = vector.shape_cast %78 : vector<64xf32> to vector<64x1xf32>
    %80 = vector.broadcast %79 : vector<64x1xf32> to vector<64x64xf32>
    %81 = arith.subf %75, %80 : vector<64x64xf32>
    %82 = math.exp %81 : vector<64x64xf32>
    %cst_31 = arith.constant dense<0.000000e+00> : vector<64xf32>
    %83 = vector.multi_reduction <add>, %82, %cst_31 [1] : vector<64x64xf32> to vector<64xf32>
    %84 = vector.shape_cast %83 : vector<64xf32> to vector<64x1xf32>
    %85 = vector.broadcast %84 : vector<64x1xf32> to vector<64x64xf32>
    %86 = arith.divf %82, %85 : vector<64x64xf32>
    %cst_32 = arith.constant dense<0.000000e+00> : vector<64x32xf32>
    %87 = tpu.matmul %86, %72, %cst_32 {dimension_numbers = #tpu.dot_dimension_numbers<[1], [0], [0], [1], [0, 0, 1, 1], [], []>} : vector<64x64xf32>, vector<64x32xf32>, vector<64x32xf32> -> vector<64x32xf32>
    %88 = vector.extract_strided_slice %31 {offsets = [0, 96], sizes = [64, 32], strides = [1, 1]} : vector<64x128xf32> to vector<64x32xf32>
    %89 = vector.extract_strided_slice %32 {offsets = [0, 96], sizes = [64, 32], strides = [1, 1]} : vector<64x128xf32> to vector<64x32xf32>
    %90 = vector.extract_strided_slice %33 {offsets = [0, 96], sizes = [64, 32], strides = [1, 1]} : vector<64x128xf32> to vector<64x32xf32>
    %cst_33 = arith.constant dense<0.000000e+00> : vector<64x64xf32>
    %91 = tpu.matmul %88, %89, %cst_33 {dimension_numbers = #tpu.dot_dimension_numbers<[1], [1], [0], [0], [0, 0, 1, 0], [], []>} : vector<64x32xf32>, vector<64x32xf32>, vector<64x64xf32> -> vector<64x64xf32>
    %cst_34 = arith.constant 0.176776692 : f32
    %92 = vector.broadcast %cst_34 : f32 to vector<64x64xf32>
    %93 = arith.mulf %91, %92 : vector<64x64xf32>
    %cst_35 = arith.constant dense<0xFF800000> : vector<64xf32>
    %94 = vector.multi_reduction <maximumf>, %93, %cst_35 [1] : vector<64x64xf32> to vector<64xf32>
    %cst_36 = arith.constant 0xFF800000 : f32
    %95 = vector.broadcast %cst_36 : f32 to vector<64xf32>
    %96 = arith.maximumf %95, %94 : vector<64xf32>
    %97 = vector.shape_cast %96 : vector<64xf32> to vector<64x1xf32>
    %98 = vector.broadcast %97 : vector<64x1xf32> to vector<64x64xf32>
    %99 = arith.subf %93, %98 : vector<64x64xf32>
    %100 = math.exp %99 : vector<64x64xf32>
    %cst_37 = arith.constant dense<0.000000e+00> : vector<64xf32>
    %101 = vector.multi_reduction <add>, %100, %cst_37 [1] : vector<64x64xf32> to vector<64xf32>
    %102 = vector.shape_cast %101 : vector<64xf32> to vector<64x1xf32>
    %103 = vector.broadcast %102 : vector<64x1xf32> to vector<64x64xf32>
    %104 = arith.divf %100, %103 : vector<64x64xf32>
    %cst_38 = arith.constant dense<0.000000e+00> : vector<64x32xf32>
    %105 = tpu.matmul %104, %90, %cst_38 {dimension_numbers = #tpu.dot_dimension_numbers<[1], [0], [0], [1], [0, 0, 1, 1], [], []>} : vector<64x64xf32>, vector<64x32xf32>, vector<64x32xf32> -> vector<64x32xf32>
    %106 = tpu.concatenate %51, %69, %87, %105 in 1 : vector<64x32xf32>, vector<64x32xf32>, vector<64x32xf32>, vector<64x32xf32> -> vector<64x128xf32>
    %c0_39 = arith.constant 0 : index
    %c0_40 = arith.constant 0 : index
    %107 = vector.load %arg6[%c0_39, %c0_40] : memref<128x128xf32, #tpu.memory_space<vmem>>, vector<128x128xf32>
    %cst_41 = arith.constant dense<0.000000e+00> : vector<64x128xf32>
    %108 = tpu.matmul %106, %107, %cst_41 {dimension_numbers = #tpu.dot_dimension_numbers<[1], [0], [0], [1], [0, 0, 1, 1], [], []>} : vector<64x128xf32>, vector<128x128xf32>, vector<64x128xf32> -> vector<64x128xf32>
    %c0_42 = arith.constant 0 : index
    %c0_43 = arith.constant 0 : index
    %109 = vector.load %arg7[%c0_42, %c0_43] : memref<1x128xf32, #tpu.memory_space<vmem>>, vector<1x128xf32>
    %110 = vector.broadcast %109 : vector<1x128xf32> to vector<64x128xf32>
    %111 = arith.addf %108, %110 : vector<64x128xf32>
    %c0_44 = arith.constant 0 : index
    %c0_45 = arith.constant 0 : index
    %112 = vector.load %arg8[%c0_44, %c0_45] : memref<1x128xf32, #tpu.memory_space<vmem>>, vector<1x128xf32>
    %113 = vector.broadcast %112 : vector<1x128xf32> to vector<64x128xf32>
    %114 = arith.mulf %113, %111 : vector<64x128xf32>
    %115 = arith.addf %1, %114 : vector<64x128xf32>
    %c0_46 = arith.constant 0 : index
    %c0_47 = arith.constant 0 : index
    %116 = vector.load %arg9[%c0_46, %c0_47] : memref<1x128xf32, #tpu.memory_space<vmem>>, vector<1x128xf32>
    %c0_48 = arith.constant 0 : index
    %c0_49 = arith.constant 0 : index
    %117 = vector.load %arg10[%c0_48, %c0_49] : memref<1x128xf32, #tpu.memory_space<vmem>>, vector<1x128xf32>
    %cst_50 = arith.constant dense<0.000000e+00> : vector<64xf32>
    %118 = vector.multi_reduction <add>, %115, %cst_50 [1] : vector<64x128xf32> to vector<64xf32>
    %119 = vector.shape_cast %118 : vector<64xf32> to vector<64x1xf32>
    %cst_51 = arith.constant 1.280000e+02 : f32
    %120 = vector.broadcast %cst_51 : f32 to vector<64x1xf32>
    %121 = arith.divf %119, %120 : vector<64x1xf32>
    %122 = vector.broadcast %121 : vector<64x1xf32> to vector<64x128xf32>
    %123 = arith.subf %115, %122 : vector<64x128xf32>
    %124 = arith.mulf %123, %123 : vector<64x128xf32>
    %cst_52 = arith.constant dense<0.000000e+00> : vector<64xf32>
    %125 = vector.multi_reduction <add>, %124, %cst_52 [1] : vector<64x128xf32> to vector<64xf32>
    %126 = vector.shape_cast %125 : vector<64xf32> to vector<64x1xf32>
    %cst_53 = arith.constant 1.280000e+02 : f32
    %127 = vector.broadcast %cst_53 : f32 to vector<64x1xf32>
    %128 = arith.divf %126, %127 : vector<64x1xf32>
    %129 = vector.broadcast %121 : vector<64x1xf32> to vector<64x128xf32>
    %130 = arith.subf %115, %129 : vector<64x128xf32>
    %cst_54 = arith.constant 9.99999974E-6 : f32
    %131 = vector.broadcast %cst_54 : f32 to vector<64x1xf32>
    %132 = arith.addf %128, %131 : vector<64x1xf32>
    %133 = math.rsqrt %132 : vector<64x1xf32>
    %134 = vector.broadcast %133 : vector<64x1xf32> to vector<64x128xf32>
    %135 = arith.mulf %130, %134 : vector<64x128xf32>
    %136 = vector.broadcast %116 : vector<1x128xf32> to vector<64x128xf32>
    %137 = arith.mulf %135, %136 : vector<64x128xf32>
    %138 = vector.broadcast %117 : vector<1x128xf32> to vector<64x128xf32>
    %139 = arith.addf %137, %138 : vector<64x128xf32>
    %c0_55 = arith.constant 0 : index
    %c0_56 = arith.constant 0 : index
    %140 = vector.load %arg11[%c0_55, %c0_56] : memref<128x512xf32, #tpu.memory_space<vmem>>, vector<128x512xf32>
    %cst_57 = arith.constant dense<0.000000e+00> : vector<64x512xf32>
    %141 = tpu.matmul %139, %140, %cst_57 {dimension_numbers = #tpu.dot_dimension_numbers<[1], [0], [0], [1], [0, 0, 1, 1], [], []>} : vector<64x128xf32>, vector<128x512xf32>, vector<64x512xf32> -> vector<64x512xf32>
    %c0_58 = arith.constant 0 : index
    %c0_59 = arith.constant 0 : index
    %142 = vector.load %arg12[%c0_58, %c0_59] : memref<1x512xf32, #tpu.memory_space<vmem>>, vector<1x512xf32>
    %143 = vector.broadcast %142 : vector<1x512xf32> to vector<64x512xf32>
    %144 = arith.addf %141, %143 : vector<64x512xf32>
    %145 = arith.mulf %144, %144 : vector<64x512xf32>
    %146 = arith.mulf %144, %145 : vector<64x512xf32>
    %cst_60 = arith.constant 4.471500e-02 : f32
    %147 = vector.broadcast %cst_60 : f32 to vector<64x512xf32>
    %148 = arith.mulf %147, %146 : vector<64x512xf32>
    %149 = arith.addf %144, %148 : vector<64x512xf32>
    %cst_61 = arith.constant 0.797884583 : f32
    %150 = vector.broadcast %cst_61 : f32 to vector<64x512xf32>
    %151 = arith.mulf %150, %149 : vector<64x512xf32>
    %152 = math.tanh %151 : vector<64x512xf32>
    %cst_62 = arith.constant 1.000000e+00 : f32
    %153 = vector.broadcast %cst_62 : f32 to vector<64x512xf32>
    %154 = arith.addf %153, %152 : vector<64x512xf32>
    %cst_63 = arith.constant 5.000000e-01 : f32
    %155 = vector.broadcast %cst_63 : f32 to vector<64x512xf32>
    %156 = arith.mulf %155, %154 : vector<64x512xf32>
    %157 = arith.mulf %144, %156 : vector<64x512xf32>
    %c0_64 = arith.constant 0 : index
    %c0_65 = arith.constant 0 : index
    %158 = vector.load %arg13[%c0_64, %c0_65] : memref<512x128xf32, #tpu.memory_space<vmem>>, vector<512x128xf32>
    %cst_66 = arith.constant dense<0.000000e+00> : vector<64x128xf32>
    %159 = tpu.matmul %157, %158, %cst_66 {dimension_numbers = #tpu.dot_dimension_numbers<[1], [0], [0], [1], [0, 0, 1, 1], [], []>} : vector<64x512xf32>, vector<512x128xf32>, vector<64x128xf32> -> vector<64x128xf32>
    %c0_67 = arith.constant 0 : index
    %c0_68 = arith.constant 0 : index
    %160 = vector.load %arg14[%c0_67, %c0_68] : memref<1x128xf32, #tpu.memory_space<vmem>>, vector<1x128xf32>
    %161 = vector.broadcast %160 : vector<1x128xf32> to vector<64x128xf32>
    %162 = arith.addf %159, %161 : vector<64x128xf32>
    %c0_69 = arith.constant 0 : index
    %c0_70 = arith.constant 0 : index
    %163 = vector.load %arg15[%c0_69, %c0_70] : memref<1x128xf32, #tpu.memory_space<vmem>>, vector<1x128xf32>
    %164 = vector.broadcast %163 : vector<1x128xf32> to vector<64x128xf32>
    %165 = arith.mulf %164, %162 : vector<64x128xf32>
    %166 = arith.addf %115, %165 : vector<64x128xf32>
    %c0_71 = arith.constant 0 : index
    %c0_72 = arith.constant 0 : index
    %c0_73 = arith.constant 0 : index
    %167 = vector.load %arg16[%c0_71, %c0_72, %c0_73] : memref<1x64x128xf32, #tpu.memory_space<vmem>>, vector<1x64x128xf32>
    %168 = vector.shape_cast %167 : vector<1x64x128xf32> to vector<64x128xf32>
    %169 = vector.shape_cast %166 : vector<64x128xf32> to vector<1x64x128xf32>
    tpu.vector_store %arg16[%c0_71, %c0_72, %c0_73], %169 {strides = array<i32>} : memref<1x64x128xf32, #tpu.memory_space<vmem>>, vector<1x64x128xf32>,
    return
  }
  func.func @transform_0(%arg0: i32) -> (i32, i32, i32) {
    %c0_i32 = arith.constant 0 : i32
    %c0_i32_0 = arith.constant 0 : i32
    %c0_i32_1 = arith.constant 0 : i32
    return %arg0, %c0_i32, %c0_i32_0 : i32, i32, i32
  }
  func.func @transform_1(%arg0: i32) -> (i32, i32) {
    %c0_i32 = arith.constant 0 : i32
    %c0_i32_0 = arith.constant 0 : i32
    %c0_i32_1 = arith.constant 0 : i32
    return %c0_i32, %c0_i32_0 : i32, i32
  }
  func.func @transform_2(%arg0: i32) -> (i32, i32) {
    %c0_i32 = arith.constant 0 : i32
    %c0_i32_0 = arith.constant 0 : i32
    %c0_i32_1 = arith.constant 0 : i32
    return %c0_i32, %c0_i32_0 : i32, i32
  }
  func.func @transform_3(%arg0: i32) -> (i32, i32) {
    %c0_i32 = arith.constant 0 : i32
    %c0_i32_0 = arith.constant 0 : i32
    %c0_i32_1 = arith.constant 0 : i32
    return %c0_i32, %c0_i32_0 : i32, i32
  }
  func.func @transform_4(%arg0: i32) -> (i32, i32) {
    %c0_i32 = arith.constant 0 : i32
    %c0_i32_0 = arith.constant 0 : i32
    %c0_i32_1 = arith.constant 0 : i32
    return %c0_i32, %c0_i32_0 : i32, i32
  }
  func.func @transform_5(%arg0: i32) -> (i32, i32) {
    %c0_i32 = arith.constant 0 : i32
    %c0_i32_0 = arith.constant 0 : i32
    %c0_i32_1 = arith.constant 0 : i32
    return %c0_i32, %c0_i32_0 : i32, i32
  }
  func.func @transform_6(%arg0: i32) -> (i32, i32) {
    %c0_i32 = arith.constant 0 : i32
    %c0_i32_0 = arith.constant 0 : i32
    %c0_i32_1 = arith.constant 0 : i32
    return %c0_i32, %c0_i32_0 : i32, i32
  }
  func.func @transform_7(%arg0: i32) -> (i32, i32) {
    %c0_i32 = arith.constant 0 : i32
    %c0_i32_0 = arith.constant 0 : i32
    %c0_i32_1 = arith.constant 0 : i32
    return %c0_i32, %c0_i32_0 : i32, i32
  }
  func.func @transform_8(%arg0: i32) -> (i32, i32) {
    %c0_i32 = arith.constant 0 : i32
    %c0_i32_0 = arith.constant 0 : i32
    %c0_i32_1 = arith.constant 0 : i32
    return %c0_i32, %c0_i32_0 : i32, i32
  }
  func.func @transform_9(%arg0: i32) -> (i32, i32) {
    %c0_i32 = arith.constant 0 : i32
    %c0_i32_0 = arith.constant 0 : i32
    %c0_i32_1 = arith.constant 0 : i32
    return %c0_i32, %c0_i32_0 : i32, i32
  }
  func.func @transform_10(%arg0: i32) -> (i32, i32) {
    %c0_i32 = arith.constant 0 : i32
    %c0_i32_0 = arith.constant 0 : i32
    %c0_i32_1 = arith.constant 0 : i32
    return %c0_i32, %c0_i32_0 : i32, i32
  }
  func.func @transform_11(%arg0: i32) -> (i32, i32) {
    %c0_i32 = arith.constant 0 : i32
    %c0_i32_0 = arith.constant 0 : i32
    %c0_i32_1 = arith.constant 0 : i32
    return %c0_i32, %c0_i32_0 : i32, i32
  }
  func.func @transform_12(%arg0: i32) -> (i32, i32) {
    %c0_i32 = arith.constant 0 : i32
    %c0_i32_0 = arith.constant 0 : i32
    %c0_i32_1 = arith.constant 0 : i32
    return %c0_i32, %c0_i32_0 : i32, i32
  }
  func.func @transform_13(%arg0: i32) -> (i32, i32) {
    %c0_i32 = arith.constant 0 : i32
    %c0_i32_0 = arith.constant 0 : i32
    %c0_i32_1 = arith.constant 0 : i32
    return %c0_i32, %c0_i32_0 : i32, i32
  }
  func.func @transform_14(%arg0: i32) -> (i32, i32) {
    %c0_i32 = arith.constant 0 : i32
    %c0_i32_0 = arith.constant 0 : i32
    %c0_i32_1 = arith.constant 0 : i32
    return %c0_i32, %c0_i32_0 : i32, i32
  }
  func.func @transform_15(%arg0: i32) -> (i32, i32, i32) {
    %c0_i32 = arith.constant 0 : i32
    %c0_i32_0 = arith.constant 0 : i32
    %c0_i32_1 = arith.constant 0 : i32
    return %arg0, %c0_i32, %c0_i32_0 : i32, i32, i32
  }
}

</mosaic_0001>

<bundles_post_ra>
// kernel: tpu_custom_call.1
= control target key start
LH: loop header
LB: loop body
LE: loop exit
PB: predicated region body
PF: predicated region fallthrough
CT: control target
= control target key end

     0   :  { %s7735_s0 = inlined_call_operand.hbm [shape: f32[2,64,128], index: 0, kind: input, shape index: {}]   ;;  %s7736_s1 = inlined_call_operand.hbm [shape: f32[1,128], index: 1, kind: input, shape index: {}]   ;;  %s7737_s2 = inlined_call_operand.hbm [shape: f32[1,128], index: 2, kind: input, shape index: {}]   ;;  %s7738_s3 = inlined_call_operand.hbm [shape: f32[128,384], index: 3, kind: input, shape index: {}]   ;;  %s7739_s4 = inlined_call_operand.vmem [shape: f32[1,384], index: 4, kind: input, shape index: {}]   ;;  %s7740_s5 = inlined_call_operand.hbm [shape: f32[128,128], index: 5, kind: input, shape index: {}]   ;;  %s7741_s6 = inlined_call_operand.vmem [shape: f32[1,128], index: 6, kind: input, shape index: {}]   ;;  %s7742_s7 = inlined_call_operand.vmem [shape: f32[1,128], index: 7, kind: input, shape index: {}]   ;;  %s7743_s8 = inlined_call_operand.vmem [shape: f32[1,128], index: 8, kind: input, shape index: {}]   ;;  %s7744_s9 = inlined_call_operand.vmem [shape: f32[1,128], index: 9, kind: input, shape index: {}]   ;;  %s7745_s10 = inlined_call_operand.hbm [shape: f32[128,512], index: 10, kind: input, shape index: {}]   ;;  %s7746_s11 = inlined_call_operand.vmem [shape: f32[1,512], index: 11, kind: input, shape index: {}]   ;;  %s7747_s12 = inlined_call_operand.hbm [shape: f32[512,128], index: 12, kind: input, shape index: {}]   ;;  %s7748_s13 = inlined_call_operand.vmem [shape: f32[1,128], index: 13, kind: input, shape index: {}]   ;;  %s7749_s14 = inlined_call_operand.vmem [shape: f32[1,128], index: 14, kind: input, shape index: {}]   ;;  %s7750_s15 = inlined_call_operand.hbm [shape: f32[2,64,128], index: 15, kind: output, shape index: {}]  }
   0x1   :  { %7763 = sst [smem:[#allocation28_spill]] %s7736_s1 }
   0x2   :  { %7764 = sst [smem:[#allocation29_spill]] %s7738_s3 }
   0x3   :  { %7765 = sst [smem:[#allocation30_spill]] %s7742_s7 }
   0x4   :  { %7766 = sst [smem:[#allocation31_spill]] %s7743_s8 }
   0x5   :  { %7767 = sst [smem:[#allocation32_spill]] %s7744_s9 }
   0x6   :  { %7768 = sst [smem:[#allocation33_spill]] %s7746_s11 }
   0x7   :  { %7769 = sst [smem:[#allocation34_spill]] %s7748_s13 }
   0x8   :  { %7770 = sst [smem:[#allocation35_spill]] %s7749_s14 }
   0x9   :  { %7771 = sst [smem:[#allocation36_spill]] %s7750_s15 }
   0xa   :  { %20 = vsyncpa [#allocation3], 0 }
   0xb   :  { %22 = vsyncpa [#allocation3 + $0x1], 0 }
   0xc   :  { %23 = vsyncpa [#allocation6], 0 }
   0xd   :  { %24 = vsyncpa [#allocation9], 0 }
   0xe   :  { %25 = vsyncpa [#allocation12], 0 }
   0xf   :  { %26 = vsyncpa [#allocation4], 0 }
  0x10   :  { %28 = vsyncpa [#allocation4 + $0x1], 0  ;;  %s6119_s18 = smov 0   ;;  %s6121_s19 = smov 0  }
  0x11   :  { %s6123_s20 = smov 0   ;;  %s6125_s21 = smov 0  }
  0x12 LB: > { %s6019_s22 = smov [#allocation5]   ;;  %s6140_s24 = sadd.s32 4294967295, %s6017_s21   ;;  %s6017_s21 = sphi %s6125_s21, %s7821_s21   ;;  %s6013_s20 = sphi %s6123_s20, %s7820_s20   ;;  %s6009_s19 = sphi %s6121_s19, %s7819_s19   ;;  %s6005_s18 = sphi %s6119_s18, %s7818_s18  }
  0x13   : > { %s398_s23 = sshll.u32 %s6019_s22, 4  ;;  %p4095_p0 = scmp.ge.s32.totalorder %s6017_s21, 1  ;;  %s6145_s23 = int_to_ptr.vmem [resolvable:$true] %s398_s23 }
  0x14   : > { %p7752_p1 = scmp.eq.s32.totalorder %s6140_s24, 0  ;;  %p385_p2 = scmp.lt.s32.totalorder %s6017_s21, 3 }
  0x15   : > { %s6020_s26 = smov [#allocation8]   ;;  %s6021_s29 = smov [#allocation11]  }
  0x16   : > { %p6147_p3 = pnand %p4095_p0, %p385_p2  ;;  %s419_s27 = sshll.u32 %s6020_s26, 4  ;;  %s6154_s27 = int_to_ptr.vmem [resolvable:$true] %s419_s27 }
  0x17   : > { %s460_s30 = sshll.u32 %s6021_s29, 4  ;;  %s7774_s1 = sld [smem:[#allocation28_spill]]  ;;  %s6162_s30 = int_to_ptr.vmem [resolvable:$true] %s460_s30 }
  0x18   : > { %s7772_s25 = scalar_select %p6147_p3, 1, 0 }
  0x19   : > { %p5238_p5 = pneg %p6147_p3 }
  0x1b   : > { %p6158_p6 = pnand %p5238_p5, %p7752_p1 }
  0x1d   : > { %s5741_s22 = scalar_lea.hbm %s7774_s1, 16  ;;  %p6172_p8 = pneg %p6158_p6 }
  0x1e   : > { %p5742_p7 = scmp.ne.s32.totalorder %s7774_s1, %s5741_s22  ;;  %p5748_p11 = scmp.lt.u32.totalorder %s5741_s22, %s7774_s1 }
  0x20   : > { %p5744_p9 = pnand %p6172_p8, %p5742_p7 }
  0x22   : > { %p5745_p10 = pneg %p5744_p9 }
  0x24   : > { %p5750_p12 = pnand %p5748_p11, %p5745_p10 }
  0x26   : > { %5753 = shalt.err (!%p5750_p12)
}
  0x27   : > { %s5754_s14 = scalar_lea.vmem %s6145_s23, 16  ;;  %s5761_s15 = scalar_lea.vmem %s6145_s23, 32 }
  0x28   : > { %p5755_p13 = scmp.ne.s32.totalorder %s6145_s23, %s5754_s14  ;;  %p5762_p5 = scmp.lt.s32.totalorder %s6145_s23, %s6145_s23 }
  0x29   : > { %p5763_p7 = scmp.lt.s32.totalorder %s5761_s15, %s5754_s14 }
  0x2a   : > { %p5757_p0 = pnand %p5755_p13, %p6172_p8 }
  0x2b   : > { %p5764_p9 = por %p5763_p7, %p5762_p5 }
  0x2c   : > { %p5758_p2 = pneg %p5757_p0 }
  0x2e   : > { %p5765_p4 = pnand %p5764_p9, %p5758_p2 }
  0x30   : > { %5768 = shalt.err (!%p5765_p4)
}
  0x31   : > { %5241 = dma.hbm_to_vmem [thread:$0]  (!%p6158_p6), %s7774_s1, 16, %s6145_s23, [#allocation6]  }
  0x32   : > { %s7776_s3 = sld [smem:[#allocation29_spill]] }
  0x38   : > { %s5769_s29 = scalar_lea.hbm %s7776_s3, 6144 }
  0x39   : > { %p5770_p10 = scmp.ne.s32.totalorder %s7776_s3, %s5769_s29  ;;  %p5776_p4 = scmp.lt.u32.totalorder %s5769_s29, %s7776_s3 }
  0x3b   : > { %p5772_p11 = pnand %p5770_p10, %p6172_p8 }
  0x3d   : > { %p5773_p12 = pneg %p5772_p11 }
  0x3f   : > { %p5778_p13 = pnand %p5776_p4, %p5773_p12 }
  0x41   : > { %5781 = shalt.err (!%p5778_p13)
}
  0x42   : > { %s5782_s23 = scalar_lea.vmem %s6154_s27, 6144  ;;  %p5790_p7 = scmp.lt.s32.totalorder %s6154_s27, %s6154_s27 }
  0x43   : > { %p5783_p0 = scmp.ne.s32.totalorder %s6154_s27, %s5782_s23  ;;  %p5791_p9 = scmp.lt.s32.totalorder %s5782_s23, %s5782_s23 }
  0x45   : > { %p5785_p2 = pnand %p5783_p0, %p6172_p8  ;;  %p5792_p10 = por %p5791_p9, %p5790_p7 }
  0x47   : > { %p5786_p5 = pneg %p5785_p2 }
  0x49   : > { %p5793_p11 = pnand %p5792_p10, %p5786_p5 }
  0x4b   : > { %5796 = shalt.err (!%p5793_p11)
}
  0x4c   : > { %s6022_s9 = smov 384   ;;  %s6023_s11 = smov 24  }
  0x4d   : > { %5247 = dma.hbm_to_vmem [thread:$0]  (!%p6158_p6), %s7776_s3, 6144, %s6154_s27, [#allocation9], %s6022_s9, %s6022_s9, %s6023_s11  }
  0x4e   : > { %s5797_s29 = scalar_lea.hbm %s7745_s10, 8192 }
  0x4f   : > { %p5798_p12 = scmp.ne.s32.totalorder %s7745_s10, %s5797_s29  ;;  %p5804_p0 = scmp.lt.u32.totalorder %s5797_s29, %s7745_s10 }
  0x51   : > { %p5800_p4 = pnand %p5798_p12, %p6172_p8 }
  0x53   : > { %p5801_p13 = pneg %p5800_p4 }
  0x55   : > { %p5806_p2 = pnand %p5804_p0, %p5801_p13 }
  0x57   : > { %5809 = shalt.err (!%p5806_p2)
}
  0x58   : > { %s5810_s27 = scalar_lea.vmem %s6162_s30, 8192  ;;  %p5818_p10 = scmp.lt.s32.totalorder %s6162_s30, %s6162_s30 }
  0x59   : > { %p5811_p5 = scmp.ne.s32.totalorder %s6162_s30, %s5810_s27  ;;  %p5819_p11 = scmp.lt.s32.totalorder %s5810_s27, %s5810_s27 }
  0x5b   : > { %p5813_p7 = pnand %p5811_p5, %p6172_p8  ;;  %p5820_p12 = por %p5819_p11, %p5818_p10 }
  0x5d   : > { %p5814_p9 = pneg %p5813_p7 }
  0x5f   : > { %p5821_p4 = pnand %p5820_p12, %p5814_p9 }
  0x61   : > { %5824 = shalt.err (!%p5821_p4)
}
  0x62   : > { %s6024_s9 = smov 512   ;;  %s6025_s1 = smov 32  }
  0x63   : > { %5253 = dma.hbm_to_vmem [thread:$0]  (!%p6158_p6), %s7745_s10, 8192, %s6162_s30, [#allocation12], %s6024_s9, %s6024_s9, %s6025_s1  }
  0x64   : > { %s6026_s16 = smov [#allocation7]   ;;  %s6027_s22 = smov [#allocation10]  }
  0x65   : > { %s409_s17 = sshll.u32 %s6026_s16, 4  ;;  %s435_s29 = sshll.u32 %s6027_s22, 4  ;;  %s410_s17 = int_to_ptr.vmem [resolvable:$true] %s409_s17  ;;  %s436_s29 = int_to_ptr.vmem [resolvable:$true] %s435_s29 }
  0x66   : > { %s5825_s23 = scalar_lea.hbm %s7737_s2, 16 }
  0x67   : > { %p5826_p13 = scmp.ne.s32.totalorder %s7737_s2, %s5825_s23  ;;  %p5832_p5 = scmp.lt.u32.totalorder %s5825_s23, %s7737_s2 }
  0x69   : > { %p5828_p0 = pnand %p5826_p13, %p6172_p8 }
  0x6b   : > { %p5829_p2 = pneg %p5828_p0 }
  0x6d   : > { %p5834_p7 = pnand %p5832_p5, %p5829_p2 }
  0x6f   : > { %5837 = shalt.err (!%p5834_p7)
}
  0x70   : > { %s5838_s30 = scalar_lea.vmem %s410_s17, 16  ;;  %s5845_s9 = scalar_lea.vmem %s410_s17, 32 }
  0x71   : > { %p5839_p9 = scmp.ne.s32.totalorder %s410_s17, %s5838_s30  ;;  %p5846_p12 = scmp.lt.s32.totalorder %s410_s17, %s410_s17 }
  0x72   : > { %p5847_p4 = scmp.lt.s32.totalorder %s5845_s9, %s5838_s30 }
  0x73   : > { %p5841_p10 = pnand %p5839_p9, %p6172_p8 }
  0x74   : > { %p5848_p1 = por %p5847_p4, %p5846_p12 }
  0x75   : > { %p5842_p11 = pneg %p5841_p10 }
  0x77   : > { %p5849_p3 = pnand %p5848_p1, %p5842_p11 }
  0x79   : > { %5852 = shalt.err (!%p5849_p3)
}
  0x7a   : > { %5244 = dma.hbm_to_vmem [thread:$0]  (!%p6158_p6), %s7737_s2, 16, %s410_s17, [#allocation6]  }
  0x7b   : > { %s5853_s11 = scalar_lea.hbm %s7740_s5, 2048 }
  0x7c   : > { %p5854_p13 = scmp.ne.s32.totalorder %s7740_s5, %s5853_s11  ;;  %p5860_p3 = scmp.lt.u32.totalorder %s5853_s11, %s7740_s5 }
  0x7e   : > { %p5856_p0 = pnand %p5854_p13, %p6172_p8 }
  0x80   : > { %p5857_p1 = pneg %p5856_p0 }
  0x82   : > { %p5862_p2 = pnand %p5860_p3, %p5857_p1 }
  0x84   : > { %5865 = shalt.err (!%p5862_p2)
}
  0x85   : > { %s5866_s15 = scalar_lea.vmem %s436_s29, 2048  ;;  %p5874_p10 = scmp.lt.s32.totalorder %s436_s29, %s436_s29 }
  0x86   : > { %p5867_p5 = scmp.ne.s32.totalorder %s436_s29, %s5866_s15  ;;  %p5875_p11 = scmp.lt.s32.totalorder %s5866_s15, %s5866_s15 }
  0x88   : > { %p5869_p7 = pnand %p5867_p5, %p6172_p8  ;;  %p5876_p12 = por %p5875_p11, %p5874_p10 }
  0x8a   : > { %p5870_p9 = pneg %p5869_p7 }
  0x8c   : > { %p5877_p4 = pnand %p5876_p12, %p5870_p9 }
  0x8e   : > { %5880 = shalt.err (!%p5877_p4)
}
  0x8f   : > { %s6028_s17 = smov 128   ;;  %s6029_s23 = smov 8  }
  0x90   : > { %5250 = dma.hbm_to_vmem [thread:$0]  (!%p6158_p6), %s7740_s5, 2048, %s436_s29, [#allocation9], %s6028_s17, %s6028_s17, %s6029_s23  }
  0x91   : > { %s6030_s9 = smov [#allocation13]   ;;  %s5881_s8 = scalar_lea.hbm %s7747_s12, 8192 }
  0x92   : > { %s476_s3 = sshll.u32 %s6030_s9, 4  ;;  %p5882_p13 = scmp.ne.s32.totalorder %s7747_s12, %s5881_s8  ;;  %s477_s3 = int_to_ptr.vmem [resolvable:$true] %s476_s3 }
  0x93   : > { %p5888_p3 = scmp.lt.u32.totalorder %s5881_s8, %s7747_s12 }
  0x94   : > { %p5884_p0 = pnand %p5882_p13, %p6172_p8 }
  0x96   : > { %p5885_p1 = pneg %p5884_p0 }
  0x98   : > { %p5890_p2 = pnand %p5888_p3, %p5885_p1 }
  0x9a   : > { %5893 = shalt.err (!%p5890_p2)
}
  0x9b   : > { %s5894_s29 = scalar_lea.vmem %s477_s3, 8192  ;;  %p5902_p10 = scmp.lt.s32.totalorder %s477_s3, %s477_s3 }
  0x9c   : > { %p5895_p5 = scmp.ne.s32.totalorder %s477_s3, %s5894_s29  ;;  %p5903_p11 = scmp.lt.s32.totalorder %s5894_s29, %s5894_s29 }
  0x9e   : > { %p5897_p7 = pnand %p5895_p5, %p6172_p8  ;;  %p5904_p12 = por %p5903_p11, %p5902_p10 }
  0xa0   : > { %p5898_p9 = pneg %p5897_p7 }
  0xa2   : > { %p5905_p4 = pnand %p5904_p12, %p5898_p9 }
  0xa4   : > { %5908 = shalt.err (!%p5905_p4)
}
  0xa5   : > { %5256 = dma.hbm_to_vmem [thread:$0]  (!%p6158_p6), %s7747_s12, 8192, %s477_s3, [#allocation12], %s6028_s17, %s6028_s17, %s6029_s23  }
  0xa6   : > { %s4094_s28 = sadd.s32 4294967294, %s6017_s21   ;;  %s6302_s26 = sadd.s32 1, %s6017_s21  }
  0xa7   : > { %s38_s27 = ssub.s32 %s6017_s21, %s6302_s26  ;;  %s41_s30 = sadd.s32 1, %s6013_s20 }
  0xa8   : > { %p39_p8 = scmp.eq.s32.totalorder %s38_s27, 0  ;;  %p48_p13 = scmp.ne.s32.totalorder %s6013_s20, %s6009_s19 }
  0xa9   : > { %p49_p0 = scmp.eq.s32.totalorder %s6017_s21, 0  ;;  %p54_p1 = scmp.ne.s32.totalorder %s6009_s19, %s6005_s18 }
  0xaa   : > { %s6313_s9 = scalar_select %p39_p8, %s6013_s20, %s41_s30  }
  0xab   : > { %p6315_p3 = por %p49_p0, %p48_p13  ;;  %p7778_p2 = scmp.eq.s32.totalorder %s6140_s24, 0 }
  0xac   : > { %p372_p5 = scmp.eq.s32.totalorder %s6140_s24, 1  ;;  %p378_p7 = scmp.eq.s32.totalorder %s4094_s28, 1 }
  0xad   : > { %p6321_p6 = por %p7778_p2, %p54_p1  ;;  %p5271_p9 = scmp.lt.s32.totalorder %s6017_s21, 2 }
  0xae   : > { %s496_s7 = sand.u32 1, %s6013_s20   ;;  %p6328_p10 = por %p372_p5, %p48_p13 }
  0xaf   : > { %p6332_p11 = por %p378_p7, %p54_p1  ;;  %s4103_s13 = sshll.u32 %s496_s7, 6 }
  0xb0   : > { %s7780_s8 = scalar_select %p6328_p10, 1, 0 }
  0xb1   : > { %s7781_s11 = scalar_select %p6332_p11, 1, 0 }
  0xb2   : > { %s4224_s16 = sshll.u32 %s6017_s21, 10  ;;  %s500_s15 = scalar_lea.vmem [#allocation2], %s4103_s13 }
  0xb3   : > { %s6340_s14 = scalar_lea.hbm %s7735_s0, %s4224_s16  ;;  %s507_s28 = sshll.u32 %s500_s15, 4  ;;  %s6342_s28 = int_to_ptr.vmem [resolvable:$true] %s507_s28 }
  0xb4   : > { %p6346_p12 = pnand %p5271_p9, %p6315_p3  ;;  %s6350_s30 = scalar_lea.sflag [#allocation3], %s496_s7 }
  0xb5   : > { %s5909_s22 = scalar_lea.hbm %s6340_s14, 1024  ;;  %s5914_s1 = scalar_lea.hbm %s7735_s0, 2048 }
  0xb6   : > { %p5910_p4 = scmp.ne.s32.totalorder %s6340_s14, %s5909_s22  ;;  %p5911_p8 = pneg %p6346_p12 }
  0xb7   : > { %p5915_p1 = scmp.lt.u32.totalorder %s6340_s14, %s7735_s0  ;;  %p5916_p3 = scmp.lt.u32.totalorder %s5914_s1, %s5909_s22 }
  0xb8   : > { %p5912_p13 = pnand %p5911_p8, %p5910_p4  ;;  %p5918_p5 = scmp.lt.u32.totalorder %s5909_s22, %s6340_s14 }
  0xb9   : > { %p5917_p2 = por %p5916_p3, %p5915_p1 }
  0xba   : > { %p5913_p0 = pneg %p5912_p13 }
  0xbb   : > { %p5919_p7 = por %p5918_p5, %p5917_p2 }
  0xbd   : > { %p5920_p9 = pnand %p5919_p7, %p5913_p0 }
  0xbf   : > { %5923 = shalt.err (!%p5920_p9)
}
  0xc0   : > { %s5924_s7 = scalar_lea.vmem %s6342_s28, 1024  ;;  %s6031_s13 = smov [#allocation2]  }
  0xc1   : > { %p5925_p4 = scmp.ne.s32.totalorder %s6342_s28, %s5924_s7  ;;  %s5929_s16 = sshll.u32 %s6031_s13, 4  ;;  %s5930_s16 = int_to_ptr.vmem [resolvable:$false] %s5929_s16 }
  0xc2   : > { %s5931_s29 = scalar_lea.vmem %s5930_s16, 2048  ;;  %p5932_p10 = scmp.lt.s32.totalorder %s6342_s28, %s5930_s16 }
  0xc3   : > { %p5927_p13 = pnand %p5925_p4, %p5911_p8  ;;  %p5933_p1 = scmp.lt.s32.totalorder %s5931_s29, %s5924_s7 }
  0xc5   : > { %p5928_p11 = pneg %p5927_p13  ;;  %p5934_p3 = por %p5933_p1, %p5932_p10 }
  0xc7   : > { %p5935_p2 = pnand %p5934_p3, %p5928_p11 }
  0xc9   : > { %5938 = shalt.err (!%p5935_p2)
}
  0xca   : > { %5260 = dma.hbm_to_vmem [thread:$0]  (!%p6346_p12), %s6340_s14, 1024, %s6342_s28, %s6350_s30, %s6028_s17, %s6028_s17, %s6029_s23  }
  0xcb   : > { %p7783_p8 = scmp.ne.s32.totalorder %s7772_s25, 0 }
  0xcd   : > { %519 = sbr.rel (%p7783_p8) target bundleno = 4088 (0xff8), region = 80 }
  0xd4   : > { %s6384_s22 = sand.u32 1, %s6009_s19  }
  0xd5   : > { %s4107_s1 = sshll.u32 %s6384_s22, 6  ;;  %s522_s15 = scalar_lea.sflag [#allocation3], %s6384_s22 }
  0xd6   : > { %s6390_s27 = scalar_lea.vmem [#allocation2], %s4107_s1 }
  0xd7   : > { %5984 = dma.done.wait (%p6321_p6), %s522_s15, 1024  }
  0xd8   : > { %5986 = vsyncadd (%p6321_p6), %s522_s15, 4294966272  ;;  %p7784_p10 = scmp.eq.s32.totalorder %s6140_s24, 0 }
  0xda   : > { %5988 = dma.done.wait (%p7784_p10), [#allocation6], 32   ;;  %p7785_p11 = pmov %p7784_p10 }
  0xdb   : > { %p7786_p12 = pmov %p7784_p10 }
  0xdc   : > { %5990 = vsyncadd (%p7785_p11), [#allocation6], 4294967264 }
  0xdd   : > { %5992 = dma.done.wait (%p7786_p12), [#allocation9], 8192   ;;  %p7787_p0 = pmov %p7784_p10 }
  0xdf   : > { %5994 = vsyncadd (%p7787_p0), [#allocation9], 4294959104  ;;  %p7788_p5 = pmov %p7787_p0 }
  0xe0   : > { %p7789_p7 = pmov %p7787_p0 }
  0xe1   : > { %5996 = dma.done.wait (%p7788_p5), [#allocation12], 16384  }
  0xe2   : > { %5998 = vsyncadd (%p7789_p7), [#allocation12], 4294950912  ;;  %v596_v0 = vld [vmem:[%s6390_s27] sm:$0xff]  ;;  %v598_v1 = vld [vmem:[%s6390_s27 + $0x10] sm:$0xff]  ;;  %vm1006_vm0 = vcmask 261120   ;;  %vm1168_vm2 = vcmask 523264  }
  0xe3   : > { %606 = vadd.xlane.f32.xlu0 %v596_v0  ;;  %610 = vadd.xlane.f32.xlu1 %v598_v1  ;;  %v597_v2 = vld [vmem:[%s6390_s27 + $0x8] sm:$0xff]  ;;  %v599_v3 = vld [vmem:[%s6390_s27 + $0x18] sm:$0xff]  ;;  %v6413_v4 = vld [vmem:[%s6390_s27 + $0x20] sm:$0xff]  ;;  %s6033_s23 = smov 96   ;;  %s6034_s3 = smov 64   ;;  %vm2760_vm3 = vcmask 785408  }
  0xe4   : > { %v6416_v5 = vld [vmem:[%s6390_s27 + $0x28] sm:$0xff]  ;;  %v6421_v6 = vld [vmem:[%s6390_s27 + $0x30] sm:$0xff]  ;;  %v6424_v7 = vld [vmem:[%s6390_s27 + $0x38] sm:$0xff]  ;;  %s6035_s14 = smov 32   ;;  %s7792_s16 = sld [smem:[#allocation30_spill]] }
  0xe5   : > { %v724_v8 = vld [vmem:[#allocation8 + $0x8] sm:$0xff]  ;;  %v727_v9 = vld [vmem:[#allocation8 + $0x20] sm:$0xff]  ;;  %v726_v12 = vld [vmem:[#allocation8 + $0x18] sm:$0xff]  ;;  %s7803_s28 = sld [smem:[#allocation33_spill]]  ;;  %s7804_s13 = sld [smem:[#allocation34_spill]] }
  0xe6   : > { %v723_v10 = vld [vmem:[#allocation8] sm:$0xff]  ;;  %v4826_v11 = vpack.c.bf16 %v727_v9, %v724_v8  ;;  %v730_v13 = vld [vmem:[#allocation8 + $0x38] sm:$0xff]  ;;  %v733_v14 = vld [vmem:[#allocation8 + $0x50] sm:$0xff]  ;;  %s7805_s15 = sld [smem:[#allocation35_spill]]  ;;  %p7815_p9 = scmp.ne.s32.totalorder %s7780_s8, 0 }
  0xe7   : > { %608 = vadd.xlane.f32.xlu0 %v597_v2  ;;  %612 = vadd.xlane.f32.xlu1 %v599_v3  ;;  %v4828_v15 = vpack.c.bf16 %v726_v12, %v723_v10  ;;  %v4830_v16 = vpack.c.bf16 %v733_v14, %v730_v13  ;;  %v725_v17 = vld [vmem:[#allocation8 + $0x10] sm:$0xff]  ;;  %v728_v18 = vld [vmem:[#allocation8 + $0x28] sm:$0xff]  ;;  %v739_v23 = vld [vmem:[#allocation8 + $0x80] sm:$0xff] }
  0xe8   : > { %v729_v19 = vld [vmem:[#allocation8 + $0x30] sm:$0xff]  ;;  %4827 = vmatprep.subr.bf16.mxu0 %v4826_v11  ;;  %v4858_v20 = vpack.c.bf16 %v728_v18, %v725_v17  ;;  %v732_v21 = vld [vmem:[#allocation8 + $0x48] sm:$0xff]  ;;  %v731_v25 = vld [vmem:[#allocation8 + $0x40] sm:$0xff] }
  0xe9   : > { %v736_v22 = vld [vmem:[#allocation8 + $0x68] sm:$0xff]  ;;  %4829 = vmatpush1.bf16.msra.mxu0 %v4828_v15  ;;  %v4832_v24 = vpack.c.bf16 %v732_v21, %v729_v19  ;;  %v734_v26 = vld [vmem:[#allocation8 + $0x58] sm:$0xff]  ;;  %v735_v29 = vld [vmem:[#allocation8 + $0x60] sm:$0xff] }
  0xea   : > { %4831 = vmatprep.subr.bf16.mxu0 %v4830_v16  ;;  %4859 = vmatprep.subr.bf16.mxu1 %v4858_v20  ;;  %v4834_v27 = vpack.c.bf16 %v739_v23, %v736_v22  ;;  %v4862_v28 = vpack.c.bf16 %v734_v26, %v731_v25  ;;  %v738_v30 = vld [vmem:[#allocation8 + $0x78] sm:$0xff]  ;;  %v744_v8 = vld [vmem:[#allocation8 + $0xa8] sm:$0xff]  ;;  %v751_v10 = vld [vmem:[#allocation8 + $0xe0] sm:$0xff] }
  0xeb   : > { %614 = vadd.xlane.f32.xlu0 %v6413_v4  ;;  %616 = vadd.xlane.f32.xlu1 %v6416_v5  ;;  %v4836_v31 = vpack.c.bf16 %v738_v30, %v735_v29  ;;  %v743_v11 = vld [vmem:[#allocation8 + $0xa0] sm:$0xff]  ;;  %v746_v13 = vld [vmem:[#allocation8 + $0xb8] sm:$0xff]  ;;  %v757_v19 = vld [vmem:[#allocation8 + $0x110] sm:$0xff] }
  0xec   : > { %4861 = vmatpush3.bf16.msra.mxu1 %v4858_v20  ;;  %v747_v14 = vld [vmem:[#allocation8 + $0xc0] sm:$0xff]  ;;  %v750_v15 = vld [vmem:[#allocation8 + $0xd8] sm:$0xff]  ;;  %v4870_v16 = vpack.c.bf16 %v746_v13, %v743_v11  ;;  %v749_v20 = vld [vmem:[#allocation8 + $0xd0] sm:$0xff] }
  0xed   : > { %4863 = vmatprep.subr.bf16.mxu1 %v4862_v28  ;;  %4833 = vmatpush1.bf16.msra.mxu0 %v4832_v24  ;;  %v4844_v17 = vpack.c.bf16 %v750_v15, %v747_v14  ;;  %v754_v18 = vld [vmem:[#allocation8 + $0xf8] sm:$0xff]  ;;  %v752_v22 = vld [vmem:[#allocation8 + $0xe8] sm:$0xff]  ;;  %v753_v23 = vld [vmem:[#allocation8 + $0xf0] sm:$0xff] }
  0xee   : > { %4835 = vmatprep.subr.bf16.mxu0 %v4834_v27  ;;  %v4846_v21 = vpack.c.bf16 %v757_v19, %v754_v18  ;;  %v756_v24 = vld [vmem:[#allocation8 + $0x108] sm:$0xff]  ;;  %v4874_v25 = vpack.c.bf16 %v752_v22, %v749_v20  ;;  %v755_v29 = vld [vmem:[#allocation8 + $0x100] sm:$0xff]  ;;  %v4115_v15 = vld [vmem:[#allocation5] ss:$0 sm:$0xff] }
  0xef   : > { %618 = vadd.xlane.f32.xlu0 %v6421_v6  ;;  %620 = vadd.xlane.f32.xlu1 %v6424_v7  ;;  %v4848_v26 = vpack.c.bf16 %v756_v24, %v753_v23  ;;  %v760_v27 = vld [vmem:[#allocation8 + $0x128] sm:$0xff]  ;;  %v4116_v19 = vld [vmem:[#allocation7] ss:$0 sm:$0xff]  ;;  %vm6509_vm1 = vmpackc.low %vm1006_vm0, %vm1006_vm0 }
  0xf0   : > { %4865 = vmatpush3.bf16.msra.mxu1 %v4862_v28  ;;  %v763_v28 = vld [vmem:[#allocation8 + $0x140] sm:$0xff] }
  0xf1   : > { %4837 = vmatpush1.bf16.msra.mxu0 %v4836_v31  ;;  %v4850_v30 = vpack.c.bf16 %v763_v28, %v760_v27  ;;  %v758_v31 = vld [vmem:[#allocation8 + $0x118] sm:$0xff] }
 0x170   : > { %v607_v32 = vpop.xlane.xlu0 %606  ;;  %v611_v33 = vpop.xlane.xlu1 %610 }
 0x171   : > { %v623_v34 = vmul.f32 0.0078125, %v607_v32  ;;  %v625_v35 = vmul.f32 0.0078125, %v611_v33  ;;  %v759_v32 = vld [vmem:[#allocation8 + $0x120] sm:$0xff]  ;;  %v762_v33 = vld [vmem:[#allocation8 + $0x138] sm:$0xff] }
 0x173   : > { %v6428_v36 = vsub.f32 %v596_v0, %v623_v34  ;;  %v6430_v37 = vsub.f32 %v598_v1, %v625_v35  ;;  %v742_v0 = vld [vmem:[#allocation8 + $0x98] sm:$0xff]  ;;  %v745_v1 = vld [vmem:[#allocation8 + $0xb0] sm:$0xff]  ;;  %v4878_v34 = vpack.c.bf16 %v758_v31, %v755_v29  ;;  %v4852_v35 = vpack.c.bf16 %v762_v33, %v759_v32 }
 0x174   : > { %v609_v38 = vpop.xlane.xlu0 %608  ;;  %v613_v39 = vpop.xlane.xlu1 %612 }
 0x175   : > { %v624_v40 = vmul.f32 0.0078125, %v609_v38  ;;  %v639_v41 = vmul.f32 %v6428_v36, %v6428_v36  ;;  %v626_v42 = vmul.f32 0.0078125, %v613_v39  ;;  %v641_v43 = vmul.f32 %v6430_v37, %v6430_v37  ;;  %v766_v38 = vld [vmem:[#allocation8 + $0x158] sm:$0xff]  ;;  %v769_v39 = vld [vmem:[#allocation8 + $0x170] sm:$0xff] }
 0x177   : > { %647 = vadd.xlane.f32.xlu0 %v639_v41  ;;  %v6436_v44 = vsub.f32 %v597_v2, %v624_v40  ;;  %v6438_v45 = vsub.f32 %v599_v3, %v626_v42  ;;  %v737_v2 = vld [vmem:[#allocation8 + $0x70] sm:$0xff]  ;;  %v4838_v3 = vpack.c.bf16 %v745_v1, %v742_v0  ;;  %v4854_v41 = vpack.c.bf16 %v769_v39, %v766_v38  ;;  %v764_v42 = vld [vmem:[#allocation8 + $0x148] sm:$0xff] }
 0x178   : > { %v615_v46 = vpop.xlane.xlu0 %614  ;;  %v617_v47 = vpop.xlane.xlu1 %616  ;;  %v761_v40 = vld [vmem:[#allocation8 + $0x130] sm:$0xff] }
 0x179   : > { %v627_v48 = vmul.f32 0.0078125, %v615_v46  ;;  %v640_v49 = vmul.f32 %v6436_v44, %v6436_v44  ;;  %v628_v50 = vmul.f32 0.0078125, %v617_v47  ;;  %v642_v51 = vmul.f32 %v6438_v45, %v6438_v45  ;;  %4839 = vmatprep.subr.bf16.mxu0 %v4838_v3  ;;  %v768_v46 = vld [vmem:[#allocation8 + $0x168] sm:$0xff] }
 0x17a   : > { %v4882_v47 = vpack.c.bf16 %v764_v42, %v761_v40 }
 0x17b   : > { %651 = vadd.xlane.f32.xlu0 %v641_v43  ;;  %649 = vadd.xlane.f32.xlu1 %v640_v49  ;;  %v6445_v52 = vsub.f32 %v6413_v4, %v627_v48  ;;  %v6448_v53 = vsub.f32 %v6416_v5, %v628_v50  ;;  %v740_v4 = vld [vmem:[#allocation8 + $0x88] sm:$0xff]  ;;  %v741_v5 = vld [vmem:[#allocation8 + $0x90] sm:$0xff]  ;;  %v767_v49 = vld [vmem:[#allocation8 + $0x160] sm:$0xff] }
 0x17c   : > { %v619_v54 = vpop.xlane.xlu0 %618  ;;  %v621_v55 = vpop.xlane.xlu1 %620  ;;  %v4840_v9 = vpack.c.bf16 %v744_v8, %v741_v5  ;;  %v765_v43 = vld [vmem:[#allocation8 + $0x150] sm:$0xff]  ;;  %v770_v50 = vld [vmem:[#allocation8 + $0x178] sm:$0xff] }
 0x17d   : > { %v629_v56 = vmul.f32 0.0078125, %v619_v54  ;;  %v643_v57 = vmul.f32 %v6445_v52, %v6445_v52  ;;  %v630_v58 = vmul.f32 0.0078125, %v621_v55  ;;  %v644_v59 = vmul.f32 %v6448_v53, %v6448_v53 }
 0x17e   : > { %4841 = vmatpush1.bf16.msra.mxu0 %v4840_v9  ;;  %v4856_v48 = vpack.c.bf16 %v768_v46, %v765_v43  ;;  %v6032_v54 = vmov 0.0  }
 0x17f   : > { %653 = vadd.xlane.f32.xlu1 %v642_v51  ;;  %655 = vadd.xlane.f32.xlu0 %v643_v57  ;;  %v6455_v60 = vsub.f32 %v6421_v6, %v629_v56  ;;  %v6458_v61 = vsub.f32 %v6424_v7, %v630_v58  ;;  %v4866_v6 = vpack.c.bf16 %v740_v4, %v737_v2  ;;  %v748_v7 = vld [vmem:[#allocation8 + $0xc8] sm:$0xff] }
 0x180   : > { %v4842_v12 = vpack.c.bf16 %v751_v10, %v748_v7  ;;  %v4886_v51 = vpack.c.bf16 %v770_v50, %v767_v49  ;;  %852 = vmatprep.mubr.f32.mxu0 %v6032_v54  ;;  %v771_v50 = vld [vmem:[%s7739_s4] sm:$0x7] }
 0x181   : > { %v645_v62 = vmul.f32 %v6455_v60, %v6455_v60  ;;  %v646_v63 = vmul.f32 %v6458_v61, %v6458_v61  ;;  %4867 = vmatprep.subr.bf16.mxu1 %v4866_v6 }
 0x182   : > { %4869 = vmatpush3.bf16.msra.mxu1 %v4866_v6  ;;  %4843 = vmatprep.subr.bf16.mxu0 %v4842_v12 }
 0x183   : > { %657 = vadd.xlane.f32.xlu1 %v644_v59  ;;  %659 = vadd.xlane.f32.xlu0 %v645_v62 }
 0x184   : > { %4871 = vmatprep.subr.bf16.mxu1 %v4870_v16  ;;  %4845 = vmatpush1.bf16.msra.mxu0 %v4844_v17 }
 0x185   : > { %4847 = vmatprep.subr.bf16.mxu0 %v4846_v21 }
 0x186   : > { %4873 = vmatpush3.bf16.msra.mxu1 %v4870_v16 }
 0x187   : > { %661 = vadd.xlane.f32.xlu1 %v646_v63  ;;  %4875 = vmatprep.subr.bf16.mxu1 %v4874_v25 }
 0x188   : > { %4849 = vmatpush1.bf16.msra.mxu0 %v4848_v26 }
 0x189   : > { %4851 = vmatprep.subr.bf16.mxu0 %v4850_v30 }
 0x18a   : > { %4877 = vmatpush3.bf16.msra.mxu1 %v4874_v25 }
 0x18b   : > { %4879 = vmatprep.subr.bf16.mxu1 %v4878_v34 }
 0x18c   : > { %4853 = vmatpush1.bf16.msra.mxu0 %v4852_v35 }
 0x18d   : > { %4855 = vmatprep.subr.bf16.mxu0 %v4854_v41 }
 0x18e   : > { %4881 = vmatpush3.bf16.msra.mxu1 %v4878_v34 }
 0x18f   : > { %4883 = vmatprep.subr.bf16.mxu1 %v4882_v47 }
 0x190   : > { %4857 = vmatpush1.bf16.msra.mxu0 %v4856_v48 }
 0x192   : > { %4885 = vmatpush3.bf16.msra.mxu1 %v4882_v47 }
 0x193   : > { %4887 = vmatprep.subr.bf16.mxu1 %v4886_v51 }
 0x196   : > { %4889 = vmatpush3.bf16.msra.mxu1 %v4886_v51 }
 0x204   : > { %v648_v55 = vpop.xlane.xlu0 %647 }
 0x205   : > { %v663_v56 = vmul.f32 0.0078125, %v648_v55 }
 0x207   : > { %v671_v57 = vadd.f32 1e-05, %v663_v56 }
 0x208   : > { %v650_v58 = vpop.xlane.xlu1 %649  ;;  %v652_v59 = vpop.xlane.xlu0 %651 }
 0x209   : > { %5509 = vrsqrt.f32 %v671_v57  ;;  %v664_v62 = vmul.f32 0.0078125, %v650_v58  ;;  %v665_v63 = vmul.f32 0.0078125, %v652_v59 }
 0x20b   : > { %v672_v0 = vadd.f32 1e-05, %v664_v62  ;;  %v673_v1 = vadd.f32 1e-05, %v665_v63 }
 0x20c   : > { %v654_v2 = vpop.xlane.xlu1 %653  ;;  %v656_v3 = vpop.xlane.xlu0 %655 }
 0x20d   : > { %5511 = vrsqrt.f32 %v672_v0  ;;  %v666_v4 = vmul.f32 0.0078125, %v654_v2  ;;  %v667_v5 = vmul.f32 0.0078125, %v656_v3 }
 0x20e   : > { %5513 = vrsqrt.f32 %v673_v1 }
 0x20f   : > { %v674_v8 = vadd.f32 1e-05, %v666_v4  ;;  %v675_v6 = vadd.f32 1e-05, %v667_v5 }
 0x210   : > { %v658_v9 = vpop.xlane.xlu1 %657  ;;  %v660_v7 = vpop.xlane.xlu0 %659 }
 0x211   : > { %5515 = vrsqrt.f32 %v674_v8  ;;  %v668_v10 = vmul.f32 0.0078125, %v658_v9  ;;  %v669_v11 = vmul.f32 0.0078125, %v660_v7 }
 0x212   : > { %5517 = vrsqrt.f32 %v675_v6 }
 0x213   : > { %v5510_v12 = vpop.eup %5509  ;;  %v676_v13 = vadd.f32 1e-05, %v668_v10  ;;  %v677_v14 = vadd.f32 1e-05, %v669_v11 }
 0x214   : > { %v662_v16 = vpop.xlane.xlu1 %661  ;;  %v687_v17 = vmul.f32 %v5510_v12, %v6428_v36 }
 0x215   : > { %5519 = vrsqrt.f32 %v676_v13  ;;  %v670_v18 = vmul.f32 0.0078125, %v662_v16 }
 0x216   : > { %5521 = vrsqrt.f32 %v677_v14  ;;  %v701_v20 = vmul.f32 %v4115_v15, %v687_v17 }
 0x217   : > { %v5512_v21 = vpop.eup %5511  ;;  %v678_v22 = vadd.f32 1e-05, %v670_v18 }
 0x218   : > { %v5514_v23 = vpop.eup %5513  ;;  %v715_v24 = vadd.f32 %v4116_v19, %v701_v20  ;;  %v688_v25 = vmul.f32 %v5512_v21, %v6436_v44 }
 0x219   : > { %5523 = vrsqrt.f32 %v678_v22  ;;  %v689_v26 = vmul.f32 %v5514_v23, %v6430_v37 }
 0x21a   : > { %853 = vmatmul.mubr.f32.vlgmr.msra.gmra.mrb[0].mxu0 %v715_v24  ;;  %4546 = vmatprep.mubr.f32.mxu1 %v715_v24  ;;  %v702_v27 = vmul.f32 %v4115_v15, %v688_v25 }
 0x21b   : > { %v5516_v28 = vpop.eup %5515  ;;  %858 = vmatprep.mubr.f32.mxu0 %v6032_v54  ;;  %v703_v36 = vmul.f32 %v4115_v15, %v689_v26 }
 0x21c   : > { %v5518_v29 = vpop.eup %5517  ;;  %v716_v30 = vadd.f32 %v4116_v19, %v702_v27  ;;  %v690_v31 = vmul.f32 %v5516_v28, %v6438_v45 }
 0x21d   : > { %v717_v32 = vadd.f32 %v4116_v19, %v703_v36  ;;  %v691_v33 = vmul.f32 %v5518_v29, %v6445_v52 }
 0x21e   : > { %859 = vmatmul.mubr.f32.gmra.mrb[2].mxu0 %v716_v30  ;;  %4547 = vmatmul.mubr.f32.vlgmr.msra.gmra.mrb[0].mxu1 %v716_v30  ;;  %v704_v44 = vmul.f32 %v4115_v15, %v690_v31 }
 0x21f   : > { %v5520_v34 = vpop.eup %5519  ;;  %4549 = vmatprep.mubr.f32.mxu1 %v717_v32  ;;  %864 = vmatprep.mubr.f32.mxu0 %v6032_v54  ;;  %v705_v37 = vmul.f32 %v4115_v15, %v691_v33 }
 0x220   : > { %v5522_v35 = vpop.eup %5521  ;;  %v718_v38 = vadd.f32 %v4116_v19, %v704_v44  ;;  %v692_v39 = vmul.f32 %v5520_v34, %v6448_v53 }
 0x221   : > { %v719_v40 = vadd.f32 %v4116_v19, %v705_v37  ;;  %v693_v41 = vmul.f32 %v5522_v35, %v6455_v60  ;;  %v773_v60 = vlaneseq }
 0x222   : > { %865 = vmatmul.mubr.f32.gmra.mrb[4].mxu0 %v717_v32  ;;  %4550 = vmatmul.mubr.f32.gmra.mrb[2].mxu1 %v718_v38  ;;  %v706_v45 = vmul.f32 %v4115_v15, %v692_v39 }
 0x223   : > { %v5524_v42 = vpop.eup %5523  ;;  %4552 = vmatprep.mubr.f32.mxu1 %v719_v40  ;;  %870 = vmatprep.mubr.f32.mxu0 %v6032_v54  ;;  %v707_v52 = vmul.f32 %v4115_v15, %v693_v41 }
 0x224   : > { %v720_v43 = vadd.f32 %v4116_v19, %v706_v45  ;;  %v694_v46 = vmul.f32 %v5524_v42, %v6458_v61  ;;  %v6480_v61 = vshrl.u32 %v773_v60, 7 }
 0x225   : > { %v721_v47 = vadd.f32 %v4116_v19, %v707_v52 }
 0x226   : > { %871 = vmatmul.mubr.f32.gmra.mrb[6].mxu0 %v718_v38  ;;  %4553 = vmatmul.mubr.f32.gmra.mrb[4].mxu1 %v720_v43  ;;  %v708_v48 = vmul.f32 %v4115_v15, %v694_v46  ;;  %v775_v49 = vsub.s32 0, %v6480_v61  ;;  %v783_v55 = vsub.s32 2, %v6480_v61  ;;  %v779_v56 = vsub.s32 1, %v6480_v61 }
 0x227   : > { %4555 = vmatprep.mubr.f32.mxu1 %v721_v47  ;;  %876 = vmatprep.mubr.f32.mxu0 %v6032_v54 }
 0x228   : > { %v722_v53 = vadd.f32 %v4116_v19, %v708_v48  ;;  %v6488_v51 = vrot.slane %v771_v50, %v775_v49  ;;  %v784_v62 = vrot.slane %v771_v50, %v783_v55  ;;  %v6499_v63 = vrot.slane %v771_v50, %v779_v56 }
 0x22a   : > { %877 = vmatmul.mubr.f32.gmra.mrb[8].mxu0 %v719_v40  ;;  %4556 = vmatmul.mubr.f32.gmra.mrb[6].mxu1 %v722_v53 }
 0x22b   : > { %882 = vmatprep.mubr.f32.mxu0 %v6032_v54 }
 0x22e   : > { %883 = vmatmul.mubr.f32.gmra.mrb[10].mxu0 %v720_v43 }
 0x22f   : > { %888 = vmatprep.mubr.f32.mxu0 %v6032_v54 }
 0x232   : > { %889 = vmatmul.mubr.f32.gmra.mrb[12].mxu0 %v721_v47 }
 0x233   : > { %894 = vmatprep.mubr.f32.mxu0 %v6032_v54 }
 0x236   : > { %895 = vmatmul.mubr.f32.gmra.mrb[14].mxu0 %v722_v53 }
 0x2ed   : > { %v854_v57 = vpop.f32.mrb[0].mxu0 }
 0x2ee   : > { %v6493_v58 = vadd.f32 %v854_v57, %v6488_v51  ;;  %v856_v59 = vpop.f32.mrb[1].mxu0 }
 0x2ef   : > { %v857_v5 = vadd.f32 %v856_v59, %v6499_v63 }
 0x2f0   : > { %4574 = vmatprep.mubr.msk.f32.mxu0 %vm1006_vm0, %v6493_v58 }
 0x2f1   : > { %v6503_v0 = vpop.f32.mrb[2].mxu0  ;;  %v4548_v1 = vpop.f32.mrb[0].mxu1 }
 0x2f2   : > { %v973_v2 = vadd.f32 %v4548_v1, %v784_v62  ;;  %v862_v3 = vpop.f32.mrb[3].mxu0  ;;  %v967_v4 = vpop.f32.mrb[1].mxu1 }
 0x2f3   : > { %v863_v8 = vadd.f32 %v862_v3, %v6499_v63  ;;  %v968_v6 = vadd.f32 %v967_v4, %v784_v62 }
 0x2f5   : > { %v6513_v7 = vpop.f32.mrb[4].mxu0  ;;  %v4551_v10 = vpop.f32.mrb[2].mxu1  ;;  %v4890_v11 = vpack.c.bf16 %v863_v8, %v857_v5  ;;  %v4914_v12 = vpack.c.bf16 %v973_v2, %v968_v6  ;;  %v6515_v13 = vpack.i.bf16 %v863_v8, %v857_v5  ;;  %v6517_v17 = vpack.i.bf16 %v973_v2, %v968_v6 }
 0x2f6   : > { %v983_v14 = vadd.f32 %v4551_v10, %v784_v62  ;;  %v868_v15 = vpop.f32.mrb[5].mxu0  ;;  %v977_v16 = vpop.f32.mrb[3].mxu1  ;;  %v6559_v1 = vadd.f32 %v6513_v7, %v6488_v51 }
 0x2f7   : > { %v978_v18 = vadd.f32 %v977_v16, %v784_v62  ;;  %4892 = vmatprep.subr.msk.bf16.mxu0 %vm6509_vm1, %v4890_v11  ;;  %4915 = vmatprep.subr.bf16.mxu1 %v4914_v12  ;;  %v869_v26 = vadd.f32 %v868_v15, %v6499_v63 }
 0x2f8   : > { %4895 = vmatpush3.bf16.xpose.msk.msra.mxu0 %vm6509_vm1, %v4890_v11  ;;  %4917 = vmatpush3.bf16.msra.mxu1 %v4914_v12 }
 0x2f9   : > { %v872_v19 = vpop.f32.mrb[6].mxu0  ;;  %v4554_v20 = vpop.f32.mrb[4].mxu1  ;;  %v4918_v21 = vpack.c.bf16 %v983_v14, %v978_v18  ;;  %v6523_v22 = vpack.i.bf16 %v983_v14, %v978_v18 }
 0x2fa   : > { %v993_v23 = vadd.f32 %v4554_v20, %v784_v62  ;;  %v874_v24 = vpop.f32.mrb[7].mxu0  ;;  %v987_v25 = vpop.f32.mrb[5].mxu1 }
 0x2fb   : > { %v875_v27 = vadd.f32 %v874_v24, %v6499_v63  ;;  %v988_v28 = vadd.f32 %v987_v25, %v784_v62  ;;  %4919 = vmatprep.subr.bf16.mxu1 %v4918_v21 }
 0x2fc   : > { %4921 = vmatpush3.bf16.msra.mxu1 %v4918_v21 }
 0x2fd   : > { %v878_v36 = vpop.f32.mrb[8].mxu0  ;;  %v4557_v29 = vpop.f32.mrb[6].mxu1  ;;  %v4896_v30 = vpack.c.bf16 %v875_v27, %v869_v26  ;;  %v4922_v31 = vpack.c.bf16 %v993_v23, %v988_v28  ;;  %v6527_v32 = vpack.i.bf16 %v875_v27, %v869_v26  ;;  %v6529_v37 = vpack.i.bf16 %v993_v23, %v988_v28 }
 0x2fe   : > { %v1003_v33 = vadd.f32 %v4557_v29, %v784_v62  ;;  %v880_v44 = vpop.f32.mrb[9].mxu0  ;;  %v997_v34 = vpop.f32.mrb[7].mxu1  ;;  %v6569_v2 = vadd.f32 %v878_v36, %v6488_v51 }
 0x2ff   : > { %v998_v35 = vadd.f32 %v997_v34, %v784_v62  ;;  %4898 = vmatprep.subr.msk.bf16.mxu0 %vm6509_vm1, %v4896_v30  ;;  %4923 = vmatprep.subr.bf16.mxu1 %v4922_v31  ;;  %v881_v45 = vadd.f32 %v880_v44, %v6499_v63  ;;  %v6555_v62 = vadd.f32 %v6503_v0, %v6488_v51 }
 0x300   : > { %4901 = vmatpush3.bf16.xpose.msk.msra.mxu0 %vm6509_vm1, %v4896_v30  ;;  %4925 = vmatpush3.bf16.msra.mxu1 %v4922_v31 }
 0x301   : > { %v884_v38 = vpop.f32.mrb[10].mxu0  ;;  %v4926_v39 = vpack.c.bf16 %v1003_v33, %v998_v35  ;;  %v6535_v40 = vpack.i.bf16 %v1003_v33, %v998_v35 }
 0x302   : > { %v886_v41 = vpop.f32.mrb[11].mxu0  ;;  %v6576_v0 = vadd.f32 %v884_v38, %v6488_v51 }
 0x303   : > { %v887_v42 = vadd.f32 %v886_v41, %v6499_v63  ;;  %4927 = vmatprep.subr.bf16.mxu1 %v4926_v39 }
 0x304   : > { %4929 = vmatpush3.bf16.msra.mxu1 %v4926_v39 }
 0x305   : > { %v890_v52 = vpop.f32.mrb[12].mxu0  ;;  %v4902_v43 = vpack.c.bf16 %v887_v42, %v881_v45  ;;  %v6539_v46 = vpack.i.bf16 %v887_v42, %v881_v45 }
 0x306   : > { %v892_v47 = vpop.f32.mrb[13].mxu0  ;;  %v6579_v3 = vadd.f32 %v890_v52, %v6488_v51 }
 0x307   : > { %4904 = vmatprep.subr.msk.bf16.mxu0 %vm6509_vm1, %v4902_v43  ;;  %v893_v60 = vadd.f32 %v892_v47, %v6499_v63 }
 0x308   : > { %4907 = vmatpush3.bf16.xpose.msk.msra.mxu0 %vm6509_vm1, %v4902_v43 }
 0x309   : > { %v896_v48 = vpop.f32.mrb[14].mxu0 }
 0x30a   : > { %v898_v53 = vpop.f32.mrb[15].mxu0  ;;  %v6586_v4 = vadd.f32 %v896_v48, %v6488_v51 }
 0x30b   : > { %v899_v50 = vadd.f32 %v898_v53, %v6499_v63  ;;  %v6566_v63 = vadd.f32 %v872_v19, %v6488_v51 }
 0x30d   : > { %v4908_v57 = vpack.c.bf16 %v899_v50, %v893_v60  ;;  %v6547_v59 = vpack.i.bf16 %v899_v50, %v893_v60 }
 0x30f   : > { %4910 = vmatprep.subr.msk.bf16.mxu0 %vm6509_vm1, %v4908_v57 }
 0x310   : > { %4913 = vmatpush3.bf16.xpose.msk.msra.mxu0 %vm6509_vm1, %v4908_v57 }
 0x317   : > { %4575 = vmatmul.mubr.msk.f32.vlgmr.msra.gmra.mrb[16].mxu0 %vm1006_vm0, %v6555_v62 }
 0x318   : > { %4577 = vmatprep.mubr.msk.f32.mxu0 %vm1006_vm0, %v6559_v1 }
 0x31b   : > { %4578 = vmatmul.mubr.msk.f32.gmra.mrb[18].mxu0 %vm1006_vm0, %v6566_v63 }
 0x31c   : > { %4580 = vmatprep.mubr.msk.f32.mxu0 %vm1006_vm0, %v6569_v2 }
 0x31f   : > { %4581 = vmatmul.mubr.msk.f32.gmra.mrb[20].mxu0 %vm1006_vm0, %v6576_v0 }
 0x320   : > { %4583 = vmatprep.mubr.msk.f32.mxu0 %vm1006_vm0, %v6579_v3 }
 0x323   : > { %4584 = vmatmul.mubr.msk.f32.gmra.mrb[22].mxu0 %vm1006_vm0, %v6586_v4 }
 0x3ea   : > { %v4576_v5 = vpop.f32.mrb[16].mxu0 }
 0x3eb   : > { %v1161_v8 = vmul.f32 0.17677669, %v4576_v5  ;;  %v1121_v6 = vpop.f32.mrb[17].mxu0 }
 0x3ec   : > { %v1160_v7 = vmul.f32 0.17677669, %v1121_v6 }
 0x3ed   : > { %v1172_v10 = vsel %vm1168_vm2, %v1161_v8, -inf }
 0x3ee   : > { %1173 = vmax.xlane.f32.xlu1 %v1172_v10  ;;  %v4579_v11 = vpop.f32.mrb[18].mxu0  ;;  %v1169_v12 = vsel %vm1168_vm2, %v1160_v7, -inf }
 0x3ef   : > { %v1163_v14 = vmul.f32 0.17677669, %v4579_v11  ;;  %1170 = vmax.xlane.f32.xlu0 %v1169_v12  ;;  %v1131_v15 = vpop.f32.mrb[19].mxu0 }
 0x3f0   : > { %v1162_v16 = vmul.f32 0.17677669, %v1131_v15 }
 0x3f1   : > { %v1178_v51 = vsel %vm1168_vm2, %v1163_v14, -inf }
 0x3f2   : > { %1179 = vmax.xlane.f32.xlu1 %v1178_v51  ;;  %v4582_v18 = vpop.f32.mrb[20].mxu0  ;;  %v1175_v19 = vsel %vm1168_vm2, %v1162_v16, -inf }
 0x3f3   : > { %v1165_v20 = vmul.f32 0.17677669, %v4582_v18  ;;  %1176 = vmax.xlane.f32.xlu0 %v1175_v19  ;;  %v1141_v21 = vpop.f32.mrb[21].mxu0 }
 0x3f4   : > { %v1164_v23 = vmul.f32 0.17677669, %v1141_v21 }
 0x3f5   : > { %v1184_v24 = vsel %vm1168_vm2, %v1165_v20, -inf }
 0x3f6   : > { %1185 = vmax.xlane.f32.xlu1 %v1184_v24  ;;  %v4585_v25 = vpop.f32.mrb[22].mxu0  ;;  %v1181_v26 = vsel %vm1168_vm2, %v1164_v23, -inf }
 0x3f7   : > { %v6596_v27 = vmul.f32 0.17677669, %v4585_v25  ;;  %1182 = vmax.xlane.f32.xlu0 %v1181_v26  ;;  %v1151_v28 = vpop.f32.mrb[23].mxu0 }
 0x3f8   : > { %v6598_v36 = vmul.f32 0.17677669, %v1151_v28 }
 0x3f9   : > { %v1190_v29 = vsel %vm1168_vm2, %v6596_v27, -inf }
 0x3fa   : > { %1191 = vmax.xlane.f32.xlu1 %v1190_v29  ;;  %v1187_v30 = vsel %vm1168_vm2, %v6598_v36, -inf }
 0x3fb   : > { %1188 = vmax.xlane.f32.xlu0 %v1187_v30 }
 0x40b   : > { %5335 = vrot.lane.b32.xlu1 %v6527_v32, %s6033_s23 }
 0x411   : > { %5330 = vrot.lane.b32.xlu0 %v6515_v13, %s6033_s23 }
 0x47b   : > { %v1174_v31 = vpop.xlane.xlu1 %1173 }
 0x47c   : > { %v1194_v33 = vsub.f32 %v1161_v8, %v1174_v31  ;;  %v1171_v44 = vpop.xlane.xlu0 %1170 }
 0x47d   : > { %v1193_v34 = vsub.f32 %v1160_v7, %v1171_v44 }
 0x47e   : > { %v1203_v35 = vmul.f32 1.442695, %v1194_v33 }
 0x47f   : > { %v1201_v38 = vmul.f32 1.442695, %v1193_v34  ;;  %v1180_v57 = vpop.xlane.xlu1 %1179 }
 0x480   : > { %5525 = vpow2.f32 %v1203_v35  ;;  %v1177_v39 = vpop.xlane.xlu0 %1176  ;;  %v1196_v5 = vsub.f32 %v1163_v14, %v1180_v57 }
 0x481   : > { %5527 = vpow2.f32 %v1201_v38  ;;  %v1195_v8 = vsub.f32 %v1162_v16, %v1177_v39 }
 0x482   : > { %v1207_v7 = vmul.f32 1.442695, %v1196_v5 }
 0x483   : > { %v1186_v6 = vpop.xlane.xlu1 %1185  ;;  %v1205_v11 = vmul.f32 1.442695, %v1195_v8 }
 0x484   : > { %v1183_v41 = vpop.xlane.xlu0 %1182  ;;  %v1198_v10 = vsub.f32 %v1165_v20, %v1186_v6  ;;  %5529 = vpow2.f32 %v1207_v7 }
 0x485   : > { %v1197_v12 = vsub.f32 %v1164_v23, %v1183_v41  ;;  %5531 = vpow2.f32 %v1205_v11 }
 0x486   : > { %v1211_v15 = vmul.f32 1.442695, %v1198_v10 }
 0x487   : > { %v1209_v51 = vmul.f32 1.442695, %v1197_v12  ;;  %v1192_v25 = vpop.xlane.xlu1 %1191 }
 0x488   : > { %v1189_v45 = vpop.xlane.xlu0 %1188  ;;  %5533 = vpow2.f32 %v1211_v15  ;;  %v1200_v26 = vsub.f32 %v6596_v27, %v1192_v25 }
 0x489   : > { %5535 = vpow2.f32 %v1209_v51  ;;  %v1199_v29 = vsub.f32 %v6598_v36, %v1189_v45 }
 0x48a   : > { %v6608_v42 = vpop.eup %5525  ;;  %v1215_v28 = vmul.f32 1.442695, %v1200_v26 }
 0x48b   : > { %v6610_v52 = vpop.eup %5527  ;;  %v1220_v43 = vsel %vm1168_vm2, %v6608_v42, 0.0  ;;  %v1213_v30 = vmul.f32 1.442695, %v1199_v29  ;;  %v5336_v44 = vpop.permute.xlu1 %5335 }
 0x48c   : > { %1221 = vadd.xlane.f32.xlu1 %v1220_v43  ;;  %v5331_v47 = vpop.permute.xlu0 %5330  ;;  %v1217_v48 = vsel %vm1168_vm2, %v6610_v52, 0.0  ;;  %5537 = vpow2.f32 %v1215_v28 }
 0x48d   : > { %v5333_v53 = vunpack.i.h.bf16 %v5331_v47  ;;  %v5332_v60 = vunpack.i.l.bf16 %v5331_v47  ;;  %1218 = vadd.xlane.f32.xlu0 %v1217_v48  ;;  %5539 = vpow2.f32 %v1213_v30  ;;  %v5338_v48 = vunpack.i.h.bf16 %v5336_v44 }
 0x48e   : > { %v6625_v18 = vpop.eup %5529 }
 0x48f   : > { %v6616_v50 = vpack.c.bf16 %v5333_v53, %v5332_v60  ;;  %v6627_v19 = vpop.eup %5531  ;;  %v1226_v21 = vsel %vm1168_vm2, %v6625_v18, 0.0  ;;  %v5337_v53 = vunpack.i.l.bf16 %v5336_v44 }
 0x490   : > { %v1223_v16 = vsel %vm1168_vm2, %v6627_v19, 0.0 }
 0x491   : > { %4932 = vmatprep.subr.msk.bf16.mxu1 %vm6509_vm1, %v6616_v50  ;;  %v4936_v5 = vpack.c.bf16 %v5338_v48, %v5337_v53 }
 0x492   : > { %v6631_v14 = vpop.eup %5533 }
 0x493   : > { %v6635_v20 = vpop.eup %5535  ;;  %v1232_v23 = vsel %vm1168_vm2, %v6631_v14, 0.0 }
 0x494   : > { %v1229_v24 = vsel %vm1168_vm2, %v6635_v20, 0.0 }
 0x496   : > { %v6659_v27 = vpop.eup %5537 }
 0x497   : > { %v1238_v36 = vsel %vm1168_vm2, %v6659_v27, 0.0  ;;  %v6665_v31 = vpop.eup %5539 }
 0x498   : > { %v1235_v33 = vsel %vm1168_vm2, %v6665_v31, 0.0 }
 0x49d   : > { %5345 = vrot.lane.b32.xlu1 %v6515_v13, %s6034_s3 }
 0x4a3   : > { %5340 = vrot.lane.b32.xlu0 %v6539_v46, %s6033_s23 }
 0x4c1   : > { %1227 = vadd.xlane.f32.xlu1 %v1226_v21 }
 0x4c2   : > { %1224 = vadd.xlane.f32.xlu0 %v1223_v16 }
 0x4c5   : > { %1233 = vadd.xlane.f32.xlu1 %v1232_v23 }
 0x4c6   : > { %1230 = vadd.xlane.f32.xlu0 %v1229_v24 }
 0x4d6   : > { %5355 = vrot.lane.b32.xlu1 %v6527_v32, %s6034_s3 }
 0x4dc   : > { %5350 = vrot.lane.b32.xlu0 %v6547_v59, %s6033_s23 }
 0x4e0   : > { %1386 = vrot.lane.b32.xlu0 %v6493_v58, %s6033_s23 }
 0x4e4   : > { %5360 = vrot.lane.b32.xlu0 %v6539_v46, %s6034_s3 }
 0x4e8   : > { %1392 = vrot.lane.b32.xlu0 %v6566_v63, %s6033_s23 }
 0x4ec   : > { %1394 = vrot.lane.b32.xlu0 %v6569_v2, %s6033_s23 }
 0x4f0   : > { %1398 = vrot.lane.b32.xlu0 %v6579_v3, %s6033_s23 }
 0x4f4   : > { %1812 = vrot.lane.b32.xlu0 %v6493_v58, %s6034_s3 }
 0x4f8   : > { %1816 = vrot.lane.b32.xlu0 %v6559_v1, %s6034_s3 }
 0x4fa   : > { %1239 = vadd.xlane.f32.xlu1 %v1238_v36 }
 0x4fc   : > { %1820 = vrot.lane.b32.xlu0 %v6569_v2, %s6034_s3 }
 0x4fe   : > { %1236 = vadd.xlane.f32.xlu1 %v1235_v33 }
 0x500   : > { %1824 = vrot.lane.b32.xlu0 %v6579_v3, %s6034_s3 }
 0x50f   : > { %1388 = vrot.lane.b32.xlu1 %v6555_v62, %s6033_s23 }
 0x513   : > { %1390 = vrot.lane.b32.xlu1 %v6559_v1, %s6033_s23 }
 0x517   : > { %5365 = vrot.lane.b32.xlu1 %v6547_v59, %s6034_s3 }
 0x519   : > { %v1222_v34 = vpop.xlane.xlu1 %1221 }
 0x51a   : > { %5541 = vrcp.f32 %v1222_v34  ;;  %v1219_v35 = vpop.xlane.xlu0 %1218 }
 0x51b   : > { %5543 = vrcp.f32 %v1219_v35  ;;  %1396 = vrot.lane.b32.xlu1 %v6576_v0, %s6033_s23 }
 0x51d   : > { %v5346_v38 = vpop.permute.xlu1 %5345 }
 0x51e   : > { %v5348_v39 = vunpack.i.h.bf16 %v5346_v38  ;;  %v5347_v41 = vunpack.i.l.bf16 %v5346_v38  ;;  %v5341_v8 = vpop.permute.xlu0 %5340 }
 0x51f   : > { %1400 = vrot.lane.b32.xlu1 %v6586_v4, %s6033_s23 }
 0x520   : > { %v4970_v45 = vpack.c.bf16 %v5348_v39, %v5347_v41 }
 0x522   : > { %4972 = vmatprep.subr.msk.bf16.mxu0 %vm6509_vm1, %v4970_v45 }
 0x523   : > { %4975 = vmatpush3.bf16.xpose.msk.msra.mxu0 %vm6509_vm1, %v4970_v45  ;;  %1814 = vrot.lane.b32.xlu1 %v6555_v62, %s6034_s3 }
 0x524   : > { %v5542_v43 = vpop.eup %5541 }
 0x525   : > { %v5544_v47 = vpop.eup %5543  ;;  %v1244_v57 = vmul.f32 %v5542_v43, %v6608_v42  ;;  %v5343_v42 = vunpack.i.h.bf16 %v5341_v8 }
 0x526   : > { %v1242_v60 = vmul.f32 %v5544_v47, %v6610_v52  ;;  %v5342_v52 = vunpack.i.l.bf16 %v5341_v8 }
 0x527   : > { %1818 = vrot.lane.b32.xlu1 %v6566_v63, %s6034_s3 }
 0x528   : > { %4602 = vmatprep.mubr.msk.f32.mxu1 %vm1168_vm2, %v1242_v60  ;;  %v4942_v6 = vpack.c.bf16 %v5343_v42, %v5342_v52 }
 0x529   : > { %4603 = vmatmul.mubr.msk.f32.vlgmr.msra.gmra.mrb[8].mxu1 %vm1168_vm2, %v1244_v57 }
 0x52a   : > { %4935 = vmatpush3.bf16.xpose.msk.msra.mxu1 %vm6509_vm1, %v6616_v50 }
 0x52b   : > { %4938 = vmatprep.subr.msk.bf16.mxu1 %vm6509_vm1, %v4936_v5  ;;  %1822 = vrot.lane.b32.xlu1 %v6576_v0, %s6034_s3 }
 0x52f   : > { %1826 = vrot.lane.b32.xlu1 %v6586_v4, %s6034_s3 }
 0x532   : > { %4941 = vmatpush3.bf16.xpose.msk.msra.mxu1 %vm6509_vm1, %v4936_v5 }
 0x533   : > { %4944 = vmatprep.subr.msk.bf16.mxu1 %vm6509_vm1, %v4942_v6 }
 0x53a   : > { %4947 = vmatpush3.bf16.xpose.msk.msra.mxu1 %vm6509_vm1, %v4942_v6 }
 0x54e   : > { %v1228_v50 = vpop.xlane.xlu1 %1227 }
 0x54f   : > { %5545 = vrcp.f32 %v1228_v50  ;;  %v1225_v7 = vpop.xlane.xlu0 %1224 }
 0x550   : > { %5547 = vrcp.f32 %v1225_v7 }
 0x552   : > { %v1234_v10 = vpop.xlane.xlu1 %1233 }
 0x553   : > { %5549 = vrcp.f32 %v1234_v10  ;;  %v1231_v11 = vpop.xlane.xlu0 %1230 }
 0x554   : > { %5551 = vrcp.f32 %v1231_v11 }
 0x556   : > { %v5356_v12 = vpop.permute.xlu1 %5355 }
 0x557   : > { %v5358_v15 = vunpack.i.h.bf16 %v5356_v12  ;;  %v5357_v51 = vunpack.i.l.bf16 %v5356_v12  ;;  %v5351_v21 = vpop.permute.xlu0 %5350 }
 0x558   : > { %v5353_v16 = vunpack.i.h.bf16 %v5351_v21  ;;  %v5352_v23 = vunpack.i.l.bf16 %v5351_v21 }
 0x559   : > { %v5546_v24 = vpop.eup %5545  ;;  %v4976_v25 = vpack.c.bf16 %v5358_v15, %v5357_v51 }
 0x55a   : > { %v5548_v26 = vpop.eup %5547  ;;  %v4948_v28 = vpack.c.bf16 %v5353_v16, %v5352_v23  ;;  %v1248_v36 = vmul.f32 %v5546_v24, %v6625_v18 }
 0x55b   : > { %4978 = vmatprep.subr.msk.bf16.mxu0 %vm6509_vm1, %v4976_v25  ;;  %v1387_v29 = vpop.permute.xlu0 %1386  ;;  %v1246_v30 = vmul.f32 %v5548_v26, %v6627_v19 }
 0x55c   : > { %4950 = vmatprep.subr.msk.bf16.mxu1 %vm6509_vm1, %v4948_v28  ;;  %4981 = vmatpush3.bf16.xpose.msk.msra.mxu0 %vm6509_vm1, %v4976_v25 }
 0x55d   : > { %v5550_v33 = vpop.eup %5549  ;;  %4605 = vmatprep.mubr.msk.f32.mxu1 %vm1168_vm2, %v1246_v30  ;;  %4953 = vmatpush3.bf16.xpose.msk.msra.mxu1 %vm6509_vm1, %v4948_v28 }
 0x55e   : > { %v5552_v44 = vpop.eup %5551  ;;  %4606 = vmatmul.mubr.msk.f32.gmra.mrb[10].mxu1 %vm1168_vm2, %v1248_v36  ;;  %v1252_v39 = vmul.f32 %v5550_v33, %v6631_v14 }
 0x55f   : > { %v5361_v34 = vpop.permute.xlu0 %5360  ;;  %v1250_v19 = vmul.f32 %v5552_v44, %v6635_v20 }
 0x560   : > { %v5363_v35 = vunpack.i.h.bf16 %v5361_v34  ;;  %v5362_v38 = vunpack.i.l.bf16 %v5361_v34 }
 0x561   : > { %4608 = vmatprep.mubr.msk.f32.mxu1 %vm1168_vm2, %v1250_v19 }
 0x562   : > { %v4982_v41 = vpack.c.bf16 %v5363_v35, %v5362_v38  ;;  %4609 = vmatmul.mubr.msk.f32.gmra.mrb[12].mxu1 %vm1168_vm2, %v1252_v39 }
 0x563   : > { %v1393_v18 = vpop.permute.xlu0 %1392 }
 0x564   : > { %4984 = vmatprep.subr.msk.bf16.mxu0 %vm6509_vm1, %v4982_v41 }
 0x565   : > { %4987 = vmatpush3.bf16.xpose.msk.msra.mxu0 %vm6509_vm1, %v4982_v41 }
 0x567   : > { %v1395_v45 = vpop.permute.xlu0 %1394 }
 0x56b   : > { %v1399_v43 = vpop.permute.xlu0 %1398 }
 0x56f   : > { %v1813_v47 = vpop.permute.xlu0 %1812 }
 0x570   : > { %4686 = vmatprep.mubr.msk.f32.mxu0 %vm1006_vm0, %v1813_v47 }
 0x587   : > { %v1240_v20 = vpop.xlane.xlu1 %1239 }
 0x588   : > { %5553 = vrcp.f32 %v1240_v20 }
 0x58b   : > { %v1237_v14 = vpop.xlane.xlu1 %1236 }
 0x58c   : > { %5555 = vrcp.f32 %v1237_v14 }
 0x58f   : > { %v1389_v48 = vpop.permute.xlu1 %1388 }
 0x592   : > { %v5554_v60 = vpop.eup %5553 }
 0x593   : > { %v1391_v53 = vpop.permute.xlu1 %1390  ;;  %v1256_v6 = vmul.f32 %v5554_v60, %v6659_v27  ;;  %v1817_v27 = vpop.permute.xlu0 %1816 }
 0x596   : > { %v5556_v57 = vpop.eup %5555 }
 0x597   : > { %v5366_v5 = vpop.permute.xlu1 %5365  ;;  %v1254_v8 = vmul.f32 %v5556_v57, %v6665_v31  ;;  %v1821_v11 = vpop.permute.xlu0 %1820 }
 0x598   : > { %v5368_v42 = vunpack.i.h.bf16 %v5366_v5  ;;  %v5367_v52 = vunpack.i.l.bf16 %v5366_v5 }
 0x599   : > { %4611 = vmatprep.mubr.msk.f32.mxu1 %vm1168_vm2, %v1254_v8 }
 0x59a   : > { %v4988_v50 = vpack.c.bf16 %v5368_v42, %v5367_v52  ;;  %4612 = vmatmul.mubr.msk.f32.gmra.mrb[14].mxu1 %vm1168_vm2, %v1256_v6 }
 0x59b   : > { %v1397_v7 = vpop.permute.xlu1 %1396  ;;  %4630 = vmatprep.mubr.msk.f32.mxu1 %vm1006_vm0, %v1387_v29  ;;  %v1825_v51 = vpop.permute.xlu0 %1824 }
 0x59c   : > { %4990 = vmatprep.subr.msk.bf16.mxu0 %vm6509_vm1, %v4988_v50 }
 0x59d   : > { %4993 = vmatpush3.bf16.xpose.msk.msra.mxu0 %vm6509_vm1, %v4988_v50 }
 0x59e   : > { %4631 = vmatmul.mubr.msk.f32.vlgmr.msra.gmra.mrb[16].mxu1 %vm1006_vm0, %v1389_v48 }
 0x59f   : > { %v1401_v31 = vpop.permute.xlu1 %1400  ;;  %4633 = vmatprep.mubr.msk.f32.mxu1 %vm1006_vm0, %v1391_v53 }
 0x5a2   : > { %4634 = vmatmul.mubr.msk.f32.gmra.mrb[18].mxu1 %vm1006_vm0, %v1393_v18 }
 0x5a3   : > { %v1815_v10 = vpop.permute.xlu1 %1814  ;;  %4636 = vmatprep.mubr.msk.f32.mxu1 %vm1006_vm0, %v1395_v45 }
 0x5a4   : > { %4687 = vmatmul.mubr.msk.f32.vlgmr.msra.gmra.mrb[24].mxu0 %vm1006_vm0, %v1815_v10 }
 0x5a5   : > { %4689 = vmatprep.mubr.msk.f32.mxu0 %vm1006_vm0, %v1817_v27 }
 0x5a6   : > { %4637 = vmatmul.mubr.msk.f32.gmra.mrb[20].mxu1 %vm1006_vm0, %v1397_v7 }
 0x5a7   : > { %v1819_v12 = vpop.permute.xlu1 %1818  ;;  %4639 = vmatprep.mubr.msk.f32.mxu1 %vm1006_vm0, %v1399_v43 }
 0x5a8   : > { %4690 = vmatmul.mubr.msk.f32.gmra.mrb[26].mxu0 %vm1006_vm0, %v1819_v12 }
 0x5a9   : > { %4692 = vmatprep.mubr.msk.f32.mxu0 %vm1006_vm0, %v1821_v11 }
 0x5aa   : > { %4640 = vmatmul.mubr.msk.f32.gmra.mrb[22].mxu1 %vm1006_vm0, %v1401_v31 }
 0x5ab   : > { %v1823_v15 = vpop.permute.xlu1 %1822 }
 0x5ac   : > { %4693 = vmatmul.mubr.msk.f32.gmra.mrb[28].mxu0 %vm1006_vm0, %v1823_v15 }
 0x5ad   : > { %4695 = vmatprep.mubr.msk.f32.mxu0 %vm1006_vm0, %v1825_v51 }
 0x5af   : > { %v1827_v21 = vpop.permute.xlu1 %1826 }
 0x5b0   : > { %4696 = vmatmul.mubr.msk.f32.gmra.mrb[30].mxu0 %vm1006_vm0, %v1827_v21 }
 0x5fc   : > { %v6754_v16 = vpop.f32.mrb[8].mxu1 }
 0x5fd   : > { %v6756_v23 = vpop.f32.mrb[9].mxu1 }
 0x631   : > { %v6758_v24 = vpop.f32.mrb[10].mxu1 }
 0x632   : > { %v6760_v25 = vpop.f32.mrb[11].mxu1 }
 0x635   : > { %v6762_v26 = vpop.f32.mrb[12].mxu1 }
 0x636   : > { %v6764_v28 = vpop.f32.mrb[13].mxu1 }
 0x66d   : > { %v6766_v29 = vpop.f32.mrb[14].mxu1 }
 0x66e   : > { %v6768_v30 = vpop.f32.mrb[15].mxu1 }
 0x671   : > { %v4632_v36 = vpop.f32.mrb[16].mxu1 }
 0x672   : > { %v1516_v33 = vpop.f32.mrb[17].mxu1  ;;  %v6806_v51 = vmul.f32 0.17677669, %v4632_v36 }
 0x673   : > { %v6808_v21 = vmul.f32 0.17677669, %v1516_v33 }
 0x675   : > { %v4635_v44 = vpop.f32.mrb[18].mxu1 }
 0x676   : > { %v1526_v34 = vpop.f32.mrb[19].mxu1 }
 0x677   : > { %v4688_v19 = vpop.f32.mrb[24].mxu0 }
 0x678   : > { %v6770_v35 = vmul.f32 0.17677669, %v4688_v19  ;;  %v1942_v38 = vpop.f32.mrb[25].mxu0  ;;  %v1566_v19 = vsel %vm1168_vm2, %v6806_v51, -inf }
 0x679   : > { %v6772_v39 = vmul.f32 0.17677669, %v1942_v38  ;;  %v4638_v41 = vpop.f32.mrb[20].mxu1  ;;  %v6812_v38 = vmul.f32 0.17677669, %v4635_v44 }
 0x67a   : > { %v1536_v18 = vpop.f32.mrb[21].mxu1  ;;  %v1992_v45 = vsel %vm1168_vm2, %v6770_v35, -inf }
 0x67b   : > { %1993 = vmax.xlane.f32.xlu1 %v1992_v45  ;;  %v4691_v43 = vpop.f32.mrb[26].mxu0  ;;  %v1989_v47 = vsel %vm1168_vm2, %v6772_v39, -inf  ;;  %v1563_v45 = vsel %vm1168_vm2, %v6808_v21, -inf  ;;  %v6820_v36 = vmul.f32 0.17677669, %v1536_v18 }
 0x67c   : > { %v6778_v20 = vmul.f32 0.17677669, %v4691_v43  ;;  %1990 = vmax.xlane.f32.xlu0 %v1989_v47  ;;  %v1952_v14 = vpop.f32.mrb[27].mxu0  ;;  %v6816_v43 = vmul.f32 0.17677669, %v1526_v34  ;;  %v1572_v47 = vsel %vm1168_vm2, %v6812_v38, -inf }
 0x67d   : > { %v6780_v48 = vmul.f32 0.17677669, %v1952_v14  ;;  %v4641_v53 = vpop.f32.mrb[22].mxu1  ;;  %v1575_v44 = vsel %vm1168_vm2, %v6820_v36, -inf  ;;  %v6834_v18 = vmul.f32 0.17677669, %v4638_v41 }
 0x67e   : > { %v1546_v60 = vpop.f32.mrb[23].mxu1  ;;  %v1998_v57 = vsel %vm1168_vm2, %v6778_v20, -inf  ;;  %v1569_v33 = vsel %vm1168_vm2, %v6816_v43, -inf }
 0x67f   : > { %1999 = vmax.xlane.f32.xlu1 %v1998_v57  ;;  %v4694_v5 = vpop.f32.mrb[28].mxu0  ;;  %v1995_v8 = vsel %vm1168_vm2, %v6780_v48, -inf  ;;  %v6824_v14 = vmul.f32 0.17677669, %v1546_v60  ;;  %v6836_v57 = vmul.f32 0.17677669, %v4641_v53 }
 0x680   : > { %v6786_v42 = vmul.f32 0.17677669, %v4694_v5  ;;  %1996 = vmax.xlane.f32.xlu0 %v1995_v8  ;;  %v1962_v52 = vpop.f32.mrb[29].mxu0  ;;  %v1578_v60 = vsel %vm1168_vm2, %v6834_v18, -inf }
 0x681   : > { %v6788_v6 = vmul.f32 0.17677669, %v1962_v52  ;;  %v1581_v34 = vsel %vm1168_vm2, %v6824_v14, -inf  ;;  %v1584_v5 = vsel %vm1168_vm2, %v6836_v57, -inf }
 0x682   : > { %v2004_v50 = vsel %vm1168_vm2, %v6786_v42, -inf }
 0x683   : > { %2005 = vmax.xlane.f32.xlu1 %v2004_v50  ;;  %v4697_v7 = vpop.f32.mrb[30].mxu0  ;;  %v2001_v31 = vsel %vm1168_vm2, %v6788_v6, -inf }
 0x684   : > { %v6794_v27 = vmul.f32 0.17677669, %v4697_v7  ;;  %2002 = vmax.xlane.f32.xlu0 %v2001_v31  ;;  %v1972_v10 = vpop.f32.mrb[31].mxu0 }
 0x685   : > { %v6796_v11 = vmul.f32 0.17677669, %v1972_v10 }
 0x686   : > { %v2010_v12 = vsel %vm1168_vm2, %v6794_v27, -inf }
 0x687   : > { %2011 = vmax.xlane.f32.xlu1 %v2010_v12  ;;  %v2007_v15 = vsel %vm1168_vm2, %v6796_v11, -inf }
 0x688   : > { %2008 = vmax.xlane.f32.xlu0 %v2007_v15 }
 0x698   : > { %5370 = vrot.lane.b32.xlu1 %v6517_v17, %s6033_s23 }
 0x69e   : > { %5375 = vrot.lane.b32.xlu0 %v6523_v22, %s6033_s23 }
 0x6bc   : > { %1567 = vmax.xlane.f32.xlu1 %v1566_v19 }
 0x6bd   : > { %1564 = vmax.xlane.f32.xlu0 %v1563_v45 }
 0x6c1   : > { %1573 = vmax.xlane.f32.xlu0 %v1572_v47 }
 0x6c5   : > { %1570 = vmax.xlane.f32.xlu0 %v1569_v33 }
 0x6c9   : > { %1576 = vmax.xlane.f32.xlu0 %v1575_v44 }
 0x6cd   : > { %5380 = vrot.lane.b32.xlu1 %v6529_v37, %s6033_s23  ;;  %1582 = vmax.xlane.f32.xlu0 %v1581_v34 }
 0x6e3   : > { %5385 = vrot.lane.b32.xlu0 %v6535_v40, %s6033_s23 }
 0x6f1   : > { %1579 = vmax.xlane.f32.xlu1 %v1578_v60 }
 0x6f5   : > { %1585 = vmax.xlane.f32.xlu1 %v1584_v5 }
 0x708   : > { %v1994_v8 = vpop.xlane.xlu1 %1993 }
 0x709   : > { %v2014_v52 = vsub.f32 %v6770_v35, %v1994_v8  ;;  %v1991_v50 = vpop.xlane.xlu0 %1990 }
 0x70a   : > { %v2013_v7 = vsub.f32 %v6772_v39, %v1991_v50 }
 0x70b   : > { %v2023_v31 = vmul.f32 1.442695, %v2014_v52 }
 0x70c   : > { %v2021_v10 = vmul.f32 1.442695, %v2013_v7  ;;  %v2000_v41 = vpop.xlane.xlu1 %1999 }
 0x70d   : > { %5557 = vpow2.f32 %v2023_v31  ;;  %v1997_v53 = vpop.xlane.xlu0 %1996  ;;  %v2016_v31 = vsub.f32 %v6778_v20, %v2000_v41 }
 0x70e   : > { %5559 = vpow2.f32 %v2021_v10 }
 0x70f   : > { %v2027_v10 = vmul.f32 1.442695, %v2016_v31 }
 0x710   : > { %v2006_v12 = vpop.xlane.xlu1 %2005 }
 0x711   : > { %v2003_v15 = vpop.xlane.xlu0 %2002  ;;  %5561 = vpow2.f32 %v2027_v10 }
 0x714   : > { %v6844_v19 = vpop.xlane.xlu1 %2011 }
 0x715   : > { %v6846_v45 = vpop.xlane.xlu0 %2008 }
 0x717   : > { %v6848_v47 = vpop.eup %5557 }
 0x718   : > { %v6850_v33 = vpop.eup %5559  ;;  %v5371_v35 = vpop.permute.xlu1 %5370  ;;  %v2040_v39 = vsel %vm1168_vm2, %v6848_v47, 0.0 }
 0x719   : > { %v5373_v44 = vunpack.i.h.bf16 %v5371_v35  ;;  %v5372_v34 = vunpack.i.l.bf16 %v5371_v35  ;;  %v5376_v60 = vpop.permute.xlu0 %5375  ;;  %2041 = vadd.xlane.f32.xlu0 %v2040_v39  ;;  %v2037_v5 = vsel %vm1168_vm2, %v6850_v33, 0.0  ;;  %v2015_v35 = vsub.f32 %v6780_v48, %v1997_v53 }
 0x71a   : > { %v5378_v8 = vunpack.i.h.bf16 %v5376_v60  ;;  %v5377_v52 = vunpack.i.l.bf16 %v5376_v60  ;;  %2038 = vadd.xlane.f32.xlu1 %v2037_v5 }
 0x71b   : > { %v4954_v50 = vpack.c.bf16 %v5373_v44, %v5372_v34  ;;  %v2025_v39 = vmul.f32 1.442695, %v2015_v35  ;;  %v2017_v44 = vsub.f32 %v6788_v6, %v2003_v15  ;;  %v6867_v60 = vpop.eup %5561 }
 0x71c   : > { %v4958_v7 = vpack.c.bf16 %v5378_v8, %v5377_v52  ;;  %v2046_v48 = vsel %vm1168_vm2, %v6867_v60, 0.0 }
 0x71d   : > { %4955 = vmatprep.subr.bf16.mxu1 %v4954_v50  ;;  %5563 = vpow2.f32 %v2025_v39  ;;  %v2029_v20 = vmul.f32 1.442695, %v2017_v44 }
 0x71e   : > { %4957 = vmatpush3.bf16.msra.mxu1 %v4954_v50 }
 0x71f   : > { %4959 = vmatprep.subr.bf16.mxu1 %v4958_v7 }
 0x722   : > { %4961 = vmatpush3.bf16.msra.mxu1 %v4958_v7  ;;  %v2018_v7 = vsub.f32 %v6786_v42, %v2006_v12 }
 0x724   : > { %v2031_v35 = vmul.f32 1.442695, %v2018_v7 }
 0x727   : > { %v6875_v12 = vpop.eup %5563 }
 0x72b   : > { %5390 = vrot.lane.b32.xlu1 %v6517_v17, %s6034_s3 }
 0x72f   : > { %5400 = vrot.lane.b32.xlu1 %v6529_v37, %s6034_s3  ;;  %5395 = vrot.lane.b32.xlu0 %v6523_v22, %s6034_s3 }
 0x733   : > { %5405 = vrot.lane.b32.xlu1 %v6535_v40, %s6034_s3 }
 0x749   : > { %v1568_v34 = vpop.xlane.xlu1 %1567 }
 0x74a   : > { %v1588_v5 = vsub.f32 %v6806_v51, %v1568_v34  ;;  %v1565_v8 = vpop.xlane.xlu0 %1564 }
 0x74b   : > { %v1587_v52 = vsub.f32 %v6808_v21, %v1565_v8 }
 0x74c   : > { %v1597_v50 = vmul.f32 1.442695, %v1588_v5  ;;  %v2043_v5 = vsel %vm1168_vm2, %v6875_v12, 0.0 }
 0x74d   : > { %v1595_v41 = vmul.f32 1.442695, %v1587_v52  ;;  %v5381_v31 = vpop.permute.xlu1 %5380 }
 0x74e   : > { %5565 = vpow2.f32 %v1597_v50  ;;  %v5383_v53 = vunpack.i.h.bf16 %v5381_v31  ;;  %v5382_v6 = vunpack.i.l.bf16 %v5381_v31  ;;  %v1574_v15 = vpop.xlane.xlu0 %1573  ;;  %2047 = vadd.xlane.f32.xlu0 %v2046_v48 }
 0x74f   : > { %5567 = vpow2.f32 %v1595_v41  ;;  %v1590_v51 = vsub.f32 %v6812_v38, %v1574_v15 }
 0x750   : > { %v4962_v10 = vpack.c.bf16 %v5383_v53, %v5382_v6  ;;  %5569 = vpow2.f32 %v2029_v20 }
 0x751   : > { %v1601_v21 = vmul.f32 1.442695, %v1590_v51 }
 0x752   : > { %4963 = vmatprep.subr.bf16.mxu1 %v4962_v10  ;;  %v1571_v42 = vpop.xlane.xlu0 %1570 }
 0x753   : > { %5571 = vpow2.f32 %v1601_v21  ;;  %v1589_v39 = vsub.f32 %v6816_v43, %v1571_v42  ;;  %4965 = vmatpush3.bf16.msra.mxu1 %v4962_v10 }
 0x754   : > { %5573 = vpow2.f32 %v2031_v35 }
 0x755   : > { %v1599_v44 = vmul.f32 1.442695, %v1589_v39 }
 0x756   : > { %v1577_v34 = vpop.xlane.xlu0 %1576 }
 0x757   : > { %5575 = vpow2.f32 %v1599_v44  ;;  %v1591_v38 = vsub.f32 %v6820_v36, %v1577_v34  ;;  %2044 = vadd.xlane.f32.xlu1 %v2043_v5  ;;  %v2019_v34 = vsub.f32 %v6796_v11, %v6846_v45 }
 0x758   : > { %v6881_v8 = vpop.eup %5565 }
 0x759   : > { %v6883_v52 = vpop.eup %5567  ;;  %v1603_v50 = vmul.f32 1.442695, %v1591_v38  ;;  %v1614_v7 = vsel %vm1168_vm2, %v6881_v8, 0.0 }
 0x75a   : > { %v1583_v43 = vpop.xlane.xlu0 %1582  ;;  %v1611_v20 = vsel %vm1168_vm2, %v6883_v52, 0.0  ;;  %v6889_v41 = vpop.eup %5569 }
 0x75b   : > { %5577 = vpow2.f32 %v1603_v50  ;;  %1615 = vadd.xlane.f32.xlu1 %v1614_v7  ;;  %1612 = vadd.xlane.f32.xlu0 %v1611_v20  ;;  %v2049_v48 = vsel %vm1168_vm2, %v6889_v41, 0.0  ;;  %v2020_v50 = vsub.f32 %v6794_v27, %v6844_v19  ;;  %v2033_v7 = vmul.f32 1.442695, %v2019_v34 }
 0x75c   : > { %v1593_v20 = vsub.f32 %v6824_v14, %v1583_v43 }
 0x75d   : > { %v6891_v31 = vpop.eup %5571 }
 0x75e   : > { %v5386_v36 = vpop.permute.xlu0 %5385  ;;  %v1620_v53 = vsel %vm1168_vm2, %v6891_v31, 0.0  ;;  %v6897_v6 = vpop.eup %5573 }
 0x75f   : > { %v5388_v15 = vunpack.i.h.bf16 %v5386_v36  ;;  %v5387_v51 = vunpack.i.l.bf16 %v5386_v36  ;;  %2050 = vadd.xlane.f32.xlu1 %v2049_v48  ;;  %1621 = vadd.xlane.f32.xlu0 %v1620_v53  ;;  %v2052_v21 = vsel %vm1168_vm2, %v6897_v6, 0.0 }
 0x761   : > { %v6899_v10 = vpop.eup %5575  ;;  %v4966_v35 = vpack.c.bf16 %v5388_v15, %v5387_v51  ;;  %v2035_v15 = vmul.f32 1.442695, %v2020_v50  ;;  %v1607_v51 = vmul.f32 1.442695, %v1593_v20 }
 0x762   : > { %v1617_v42 = vsel %vm1168_vm2, %v6899_v10, 0.0 }
 0x763   : > { %2053 = vadd.xlane.f32.xlu1 %v2052_v21  ;;  %1618 = vadd.xlane.f32.xlu0 %v1617_v42 }
 0x764   : > { %4967 = vmatprep.subr.bf16.mxu1 %v4966_v35 }
 0x765   : > { %v6905_v39 = vpop.eup %5577  ;;  %4969 = vmatpush3.bf16.msra.mxu1 %v4966_v35 }
 0x766   : > { %v1623_v44 = vsel %vm1168_vm2, %v6905_v39, 0.0 }
 0x767   : > { %1624 = vadd.xlane.f32.xlu0 %v1623_v44 }
 0x77e   : > { %v1580_v5 = vpop.xlane.xlu1 %1579 }
 0x77f   : > { %v1592_v38 = vsub.f32 %v6834_v18, %v1580_v5 }
 0x781   : > { %v1605_v36 = vmul.f32 1.442695, %v1592_v38 }
 0x782   : > { %v1586_v48 = vpop.xlane.xlu1 %1585 }
 0x783   : > { %5579 = vpow2.f32 %v1605_v36  ;;  %v1594_v53 = vsub.f32 %v6836_v57, %v1586_v48 }
 0x784   : > { %5581 = vpow2.f32 %v2033_v7 }
 0x785   : > { %v1609_v35 = vmul.f32 1.442695, %v1594_v53 }
 0x787   : > { %5583 = vpow2.f32 %v1609_v35 }
 0x788   : > { %5585 = vpow2.f32 %v2035_v15 }
 0x789   : > { %5587 = vpow2.f32 %v1607_v51 }
 0x78d   : > { %v6916_v11 = vpop.eup %5579 }
 0x78e   : > { %v1626_v27 = vsel %vm1168_vm2, %v6916_v11, 0.0  ;;  %v6920_v18 = vpop.eup %5581 }
 0x78f   : > { %1627 = vadd.xlane.f32.xlu1 %v1626_v27  ;;  %v2055_v57 = vsel %vm1168_vm2, %v6920_v18, 0.0 }
 0x791   : > { %v6922_v14 = vpop.eup %5583 }
 0x792   : > { %v6924_v19 = vpop.eup %5585  ;;  %v1632_v45 = vsel %vm1168_vm2, %v6922_v14, 0.0 }
 0x793   : > { %v6930_v43 = vpop.eup %5587  ;;  %2056 = vadd.xlane.f32.xlu1 %v2055_v57  ;;  %1633 = vadd.xlane.f32.xlu0 %v1632_v45  ;;  %v2058_v21 = vsel %vm1168_vm2, %v6924_v19, 0.0 }
 0x794   : > { %v1629_v42 = vsel %vm1168_vm2, %v6930_v43, 0.0 }
 0x797   : > { %2059 = vadd.xlane.f32.xlu1 %v2058_v21  ;;  %1630 = vadd.xlane.f32.xlu0 %v1629_v42 }
 0x7a7   : > { %v6936_v44 = vpop.xlane.xlu1 %2038 }
 0x7a8   : > { %5415 = vrot.lane.b32.xlu1 %v6527_v32, %s6035_s14 }
 0x7ab   : > { %v5391_v34 = vpop.permute.xlu1 %5390 }
 0x7ac   : > { %v5393_v5 = vunpack.i.h.bf16 %v5391_v34  ;;  %v5392_v38 = vunpack.i.l.bf16 %v5391_v34  ;;  %5425 = vrot.lane.b32.xlu1 %v6547_v59, %s6035_s14 }
 0x7ad   : > { %5410 = vrot.lane.b32.xlu0 %v6515_v13, %s6035_s14  ;;  %v2042_v13 = vpop.xlane.xlu0 %2041 }
 0x7ae   : > { %v4994_v50 = vpack.c.bf16 %v5393_v5, %v5392_v38 }
 0x7af   : > { %v5401_v32 = vpop.permute.xlu1 %5400 }
 0x7b0   : > { %2232 = vrot.lane.b32.xlu1 %v6555_v62, %s6035_s14  ;;  %4995 = vmatprep.subr.bf16.mxu1 %v4994_v50  ;;  %v5403_v51 = vunpack.i.h.bf16 %v5401_v32  ;;  %v5402_v35 = vunpack.i.l.bf16 %v5401_v32 }
 0x7b1   : > { %5420 = vrot.lane.b32.xlu0 %v6539_v46, %s6035_s14  ;;  %v5396_v46 = vpop.permute.xlu0 %5395 }
 0x7b2   : > { %v5398_v20 = vunpack.i.h.bf16 %v5396_v46  ;;  %v5397_v36 = vunpack.i.l.bf16 %v5396_v46  ;;  %v5002_v45 = vpack.c.bf16 %v5403_v51, %v5402_v35 }
 0x7b3   : > { %v5406_v59 = vpop.permute.xlu1 %5405 }
 0x7b4   : > { %2236 = vrot.lane.b32.xlu1 %v6566_v63, %s6035_s14  ;;  %v4998_v15 = vpack.c.bf16 %v5398_v20, %v5397_v36  ;;  %v5408_v21 = vunpack.i.h.bf16 %v5406_v59  ;;  %v5407_v42 = vunpack.i.l.bf16 %v5406_v59 }
 0x7b5   : > { %2230 = vrot.lane.b32.xlu0 %v6493_v58, %s6035_s14 }
 0x7b6   : > { %v5006_v5 = vpack.c.bf16 %v5408_v21, %v5407_v42 }
 0x7b8   : > { %2240 = vrot.lane.b32.xlu1 %v6576_v0, %s6035_s14 }
 0x7b9   : > { %2234 = vrot.lane.b32.xlu0 %v6559_v1, %s6035_s14 }
 0x7bc   : > { %2244 = vrot.lane.b32.xlu1 %v6586_v4, %s6035_s14 }
 0x7bd   : > { %2238 = vrot.lane.b32.xlu0 %v6569_v2, %s6035_s14 }
 0x7c1   : > { %2242 = vrot.lane.b32.xlu0 %v6579_v3, %s6035_s14 }
 0x7db   : > { %v6962_v58 = vpop.xlane.xlu0 %2047 }
 0x7e4   : > { %v2045_v62 = vpop.xlane.xlu1 %2044 }
 0x7e8   : > { %v1616_v63 = vpop.xlane.xlu1 %1615  ;;  %v1613_v0 = vpop.xlane.xlu0 %1612 }
 0x7e9   : > { %5589 = vrcp.f32 %v1616_v63 }
 0x7ea   : > { %5591 = vrcp.f32 %v1613_v0 }
 0x7ec   : > { %v1622_v1 = vpop.xlane.xlu0 %1621 }
 0x7ed   : > { %5593 = vrcp.f32 %v1622_v1 }
 0x7f0   : > { %v1619_v7 = vpop.xlane.xlu0 %1618 }
 0x7f1   : > { %5595 = vrcp.f32 %v1619_v7 }
 0x7f3   : > { %v5590_v4 = vpop.eup %5589 }
 0x7f4   : > { %v5592_v2 = vpop.eup %5591  ;;  %v1638_v3 = vmul.f32 %v5590_v4, %v6881_v8  ;;  %v1625_v48 = vpop.xlane.xlu0 %1624 }
 0x7f5   : > { %5597 = vrcp.f32 %v1625_v48  ;;  %v1636_v53 = vmul.f32 %v5592_v2, %v6883_v52 }
 0x7f7   : > { %4658 = vmatprep.mubr.msk.f32.mxu1 %vm1168_vm2, %v1636_v53  ;;  %v5594_v27 = vpop.eup %5593 }
 0x7f8   : > { %4659 = vmatmul.mubr.msk.f32.vlgmr.msra.gmra.mrb[24].mxu1 %vm1168_vm2, %v1638_v3  ;;  %v1642_v52 = vmul.f32 %v5594_v27, %v6891_v31 }
 0x7f9   : > { %4997 = vmatpush3.bf16.msra.mxu1 %v4994_v50  ;;  %v2051_v50 = vpop.xlane.xlu1 %2050 }
 0x7fa   : > { %4999 = vmatprep.subr.bf16.mxu1 %v4998_v15 }
 0x7fb   : > { %v5596_v57 = vpop.eup %5595 }
 0x7fc   : > { %v1640_v8 = vmul.f32 %v5596_v57, %v6899_v10 }
 0x7fd   : > { %5001 = vmatpush3.bf16.msra.mxu1 %v4998_v15  ;;  %v2054_v32 = vpop.xlane.xlu1 %2053 }
 0x7fe   : > { %5003 = vmatprep.subr.bf16.mxu1 %v5002_v45  ;;  %4661 = vmatprep.mubr.msk.f32.mxu1 %vm1168_vm2, %v1640_v8 }
 0x7ff   : > { %v5598_v34 = vpop.eup %5597  ;;  %4662 = vmatmul.mubr.msk.f32.gmra.mrb[26].mxu1 %vm1168_vm2, %v1642_v52 }
 0x800   : > { %v1644_v38 = vmul.f32 %v5598_v34, %v6905_v39 }
 0x801   : > { %5005 = vmatpush3.bf16.msra.mxu1 %v5002_v45 }
 0x802   : > { %5007 = vmatprep.subr.bf16.mxu1 %v5006_v5  ;;  %4664 = vmatprep.mubr.msk.f32.mxu1 %vm1168_vm2, %v1644_v38 }
 0x805   : > { %5009 = vmatpush3.bf16.msra.mxu1 %v5006_v5 }
 0x81c   : > { %v1628_v46 = vpop.xlane.xlu1 %1627 }
 0x81d   : > { %5599 = vrcp.f32 %v1628_v46 }
 0x81e   : > { %5601 = vrcp.f32 %v6936_v44 }
 0x820   : > { %v1634_v10 = vpop.xlane.xlu0 %1633  ;;  %v2057_v59 = vpop.xlane.xlu1 %2056 }
 0x821   : > { %5603 = vrcp.f32 %v1634_v10 }
 0x824   : > { %v1631_v31 = vpop.xlane.xlu0 %1630  ;;  %v2060_v4 = vpop.xlane.xlu1 %2059 }
 0x825   : > { %5605 = vrcp.f32 %v1631_v31 }
 0x826   : > { %5607 = vrcp.f32 %v2042_v13 }
 0x827   : > { %v5600_v63 = vpop.eup %5599  ;;  %5609 = vrcp.f32 %v2045_v62 }
 0x828   : > { %v5411_v0 = vpop.permute.xlu0 %5410  ;;  %v1646_v39 = vmul.f32 %v5600_v63, %v6916_v11  ;;  %5611 = vrcp.f32 %v6962_v58  ;;  %v5602_v44 = vpop.eup %5601 }
 0x829   : > { %v5413_v1 = vunpack.i.h.bf16 %v5411_v0  ;;  %v5412_v7 = vunpack.i.l.bf16 %v5411_v0  ;;  %5613 = vrcp.f32 %v2051_v50  ;;  %v5416_v3 = vpop.permute.xlu1 %5415  ;;  %v2062_v48 = vmul.f32 %v5602_v44, %v6850_v33 }
 0x82a   : > { %4665 = vmatmul.mubr.msk.f32.gmra.mrb[28].mxu1 %vm1168_vm2, %v1646_v39  ;;  %5615 = vrcp.f32 %v2054_v32  ;;  %v5418_v53 = vunpack.i.h.bf16 %v5416_v3  ;;  %v5417_v15 = vunpack.i.l.bf16 %v5416_v3 }
 0x82b   : > { %v5010_v2 = vpack.c.bf16 %v5413_v1, %v5412_v7  ;;  %v5604_v20 = vpop.eup %5603  ;;  %5617 = vrcp.f32 %v2057_v59 }
 0x82c   : > { %v1650_v13 = vmul.f32 %v5604_v20, %v6922_v14  ;;  %5619 = vrcp.f32 %v2060_v4  ;;  %v5016_v14 = vpack.c.bf16 %v5418_v53, %v5417_v15  ;;  %v5421_v57 = vpop.permute.xlu0 %5420 }
 0x82d   : > { %5012 = vmatprep.subr.msk.bf16.mxu1 %vm6509_vm1, %v5010_v2  ;;  %v5422_v42 = vunpack.i.l.bf16 %v5421_v57  ;;  %v5426_v38 = vpop.permute.xlu1 %5425 }
 0x82e   : > { %v5427_v50 = vunpack.i.l.bf16 %v5426_v38 }
 0x82f   : > { %v5606_v36 = vpop.eup %5605 }
 0x830   : > { %v1648_v11 = vmul.f32 %v5606_v36, %v6930_v43  ;;  %v5608_v62 = vpop.eup %5607 }
 0x831   : > { %v5610_v58 = vpop.eup %5609  ;;  %v2064_v51 = vmul.f32 %v5608_v62, %v6848_v47  ;;  %v2233_v32 = vpop.permute.xlu1 %2232 }
 0x832   : > { %4667 = vmatprep.mubr.msk.f32.mxu1 %vm1168_vm2, %v1648_v11  ;;  %v5612_v35 = vpop.eup %5611  ;;  %v2066_v43 = vmul.f32 %v5610_v58, %v6875_v12  ;;  %v5423_v12 = vunpack.i.h.bf16 %v5421_v57 }
 0x833   : > { %4668 = vmatmul.mubr.msk.f32.gmra.mrb[30].mxu1 %vm1168_vm2, %v1650_v13  ;;  %v5614_v27 = vpop.eup %5613  ;;  %v2068_v33 = vmul.f32 %v5612_v35, %v6867_v60 }
 0x834   : > { %4714 = vmatprep.mubr.msk.f32.mxu1 %vm1168_vm2, %v2062_v48  ;;  %v5616_v45 = vpop.eup %5615  ;;  %v2070_v47 = vmul.f32 %v5614_v27, %v6889_v41  ;;  %v5022_v5 = vpack.c.bf16 %v5423_v12, %v5422_v42  ;;  %v5428_v41 = vunpack.i.h.bf16 %v5426_v38 }
 0x835   : > { %v5618_v21 = vpop.eup %5617  ;;  %v2072_v8 = vmul.f32 %v5616_v45, %v6897_v6  ;;  %v2231_v6 = vpop.permute.xlu0 %2230 }
 0x836   : > { %v5620_v52 = vpop.eup %5619  ;;  %v2074_v34 = vmul.f32 %v5618_v21, %v6920_v18  ;;  %v5028_v18 = vpack.c.bf16 %v5428_v41, %v5427_v50 }
 0x837   : > { %4715 = vmatmul.mubr.msk.f32.vlgmr.msra.gmra.mrb[32].mxu1 %vm1168_vm2, %v2064_v51  ;;  %v2076_v60 = vmul.f32 %v5620_v52, %v6924_v19  ;;  %v2237_v19 = vpop.permute.xlu1 %2236 }
 0x838   : > { %5015 = vmatpush3.bf16.xpose.msk.msra.mxu1 %vm6509_vm1, %v5010_v2  ;;  %4717 = vmatprep.mubr.msk.f32.mxu1 %vm1168_vm2, %v2066_v43 }
 0x839   : > { %5018 = vmatprep.subr.msk.bf16.mxu1 %vm6509_vm1, %v5016_v14  ;;  %v2235_v46 = vpop.permute.xlu0 %2234 }
 0x83b   : > { %4718 = vmatmul.mubr.msk.f32.gmra.mrb[34].mxu1 %vm1168_vm2, %v2068_v33  ;;  %v2241_v31 = vpop.permute.xlu1 %2240 }
 0x83c   : > { %4720 = vmatprep.mubr.msk.f32.mxu1 %vm1168_vm2, %v2070_v47 }
 0x83d   : > { %v2239_v10 = vpop.permute.xlu0 %2238 }
 0x83f   : > { %4721 = vmatmul.mubr.msk.f32.gmra.mrb[36].mxu1 %vm1168_vm2, %v2072_v8  ;;  %v2245_v63 = vpop.permute.xlu1 %2244 }
 0x840   : > { %5021 = vmatpush3.bf16.xpose.msk.msra.mxu1 %vm6509_vm1, %v5016_v14  ;;  %4723 = vmatprep.mubr.msk.f32.mxu1 %vm1168_vm2, %v2074_v34 }
 0x841   : > { %5024 = vmatprep.subr.msk.bf16.mxu1 %vm6509_vm1, %v5022_v5  ;;  %v2243_v59 = vpop.permute.xlu0 %2242 }
 0x843   : > { %4724 = vmatmul.mubr.msk.f32.gmra.mrb[38].mxu1 %vm1168_vm2, %v2076_v60 }
 0x844   : > { %4742 = vmatprep.mubr.msk.f32.mxu1 %vm1006_vm0, %v2231_v6 }
 0x848   : > { %5027 = vmatpush3.bf16.xpose.msk.msra.mxu1 %vm6509_vm1, %v5022_v5 }
 0x849   : > { %5030 = vmatprep.subr.msk.bf16.mxu1 %vm6509_vm1, %v5028_v18 }
 0x850   : > { %5033 = vmatpush3.bf16.xpose.msk.msra.mxu1 %vm6509_vm1, %v5028_v18 }
 0x857   : > { %4743 = vmatmul.mubr.msk.f32.vlgmr.msra.gmra.mrb[40].mxu1 %vm1006_vm0, %v2233_v32 }
 0x858   : > { %4745 = vmatprep.mubr.msk.f32.mxu1 %vm1006_vm0, %v2235_v46 }
 0x85b   : > { %4746 = vmatmul.mubr.msk.f32.gmra.mrb[42].mxu1 %vm1006_vm0, %v2237_v19 }
 0x85c   : > { %4748 = vmatprep.mubr.msk.f32.mxu1 %vm1006_vm0, %v2239_v10 }
 0x85f   : > { %4749 = vmatmul.mubr.msk.f32.gmra.mrb[44].mxu1 %vm1006_vm0, %v2241_v31 }
 0x860   : > { %4751 = vmatprep.mubr.msk.f32.mxu1 %vm1006_vm0, %v2243_v59 }
 0x863   : > { %4752 = vmatmul.mubr.msk.f32.gmra.mrb[46].mxu1 %vm1006_vm0, %v2245_v63 }
 0x864   : > { %3188 = vmatprep.mubr.f32.mxu1 %v6032_v54 }
 0x8cb   : > { %v7023_v9 = vpop.f32.mrb[24].mxu1 }
 0x8cc   : > { %v7025_v0 = vpop.f32.mrb[25].mxu1 }
 0x8cd   : > { %v5449_v39 = vpack.i.bf16 %v7023_v9, %v7025_v0 }
 0x8d2   : > { %v7029_v1 = vpop.f32.mrb[26].mxu1 }
 0x8d3   : > { %v7031_v7 = vpop.f32.mrb[27].mxu1 }
 0x8d4   : > { %v5464_v4 = vpack.i.bf16 %v7029_v1, %v7031_v7 }
 0x8fd   : > { %v7035_v2 = vpop.f32.mrb[28].mxu1 }
 0x8fe   : > { %v7037_v44 = vpop.f32.mrb[29].mxu1 }
 0x8ff   : > { %v5479_v20 = vpack.i.bf16 %v7035_v2, %v7037_v44 }
 0x906   : > { %v7041_v36 = vpop.f32.mrb[30].mxu1 }
 0x907   : > { %v7043_v3 = vpop.f32.mrb[31].mxu1 }
 0x908   : > { %v5494_v11 = vpack.i.bf16 %v7041_v36, %v7043_v3 }
 0x90a   : > { %v7047_v13 = vpop.f32.mrb[32].mxu1 }
 0x90b   : > { %v7049_v62 = vpop.f32.mrb[33].mxu1 }
 0x90c   : > { %v5454_v48 = vpack.i.bf16 %v7047_v13, %v7049_v62 }
 0x90e   : > { %v7053_v58 = vpop.f32.mrb[34].mxu1 }
 0x90f   : > { %v7055_v53 = vpop.f32.mrb[35].mxu1 }
 0x910   : > { %v5469_v15 = vpack.i.bf16 %v7053_v58, %v7055_v53 }
 0x912   : > { %v7059_v51 = vpop.f32.mrb[36].mxu1 }
 0x913   : > { %v7061_v35 = vpop.f32.mrb[37].mxu1 }
 0x914   : > { %v5484_v43 = vpack.i.bf16 %v7059_v51, %v7061_v35 }
 0x916   : > { %v7065_v27 = vpop.f32.mrb[38].mxu1 }
 0x917   : > { %v7067_v14 = vpop.f32.mrb[39].mxu1 }
 0x918   : > { %v5499_v57 = vpack.i.bf16 %v7065_v27, %v7067_v14 }
 0x92a   : > { %v4744_v33 = vpop.f32.mrb[40].mxu1 }
 0x92b   : > { %v2400_v45 = vmul.f32 0.17677669, %v4744_v33  ;;  %v2360_v47 = vpop.f32.mrb[41].mxu1 }
 0x92c   : > { %v2399_v21 = vmul.f32 0.17677669, %v2360_v47 }
 0x92d   : > { %v2410_v12 = vsel %vm1168_vm2, %v2400_v45, -inf }
 0x92e   : > { %2411 = vmax.xlane.f32.xlu1 %v2410_v12  ;;  %v4747_v42 = vpop.f32.mrb[42].mxu1  ;;  %v2407_v8 = vsel %vm1168_vm2, %v2399_v21, -inf }
 0x92f   : > { %v2402_v52 = vmul.f32 0.17677669, %v4747_v42  ;;  %2408 = vmax.xlane.f32.xlu0 %v2407_v8  ;;  %v2370_v34 = vpop.f32.mrb[43].mxu1 }
 0x930   : > { %v2401_v38 = vmul.f32 0.17677669, %v2370_v34 }
 0x931   : > { %v2416_v5 = vsel %vm1168_vm2, %v2402_v52, -inf }
 0x932   : > { %v4750_v60 = vpop.f32.mrb[44].mxu1  ;;  %v2413_v46 = vsel %vm1168_vm2, %v2401_v38, -inf }
 0x933   : > { %v2404_v41 = vmul.f32 0.17677669, %v4750_v60  ;;  %2417 = vmax.xlane.f32.xlu0 %v2416_v5  ;;  %v2380_v50 = vpop.f32.mrb[45].mxu1 }
 0x934   : > { %v2403_v18 = vmul.f32 0.17677669, %v2380_v50 }
 0x935   : > { %v2422_v6 = vsel %vm1168_vm2, %v2404_v41, -inf }
 0x936   : > { %2423 = vmax.xlane.f32.xlu1 %v2422_v6  ;;  %v4753_v32 = vpop.f32.mrb[46].mxu1  ;;  %v2419_v63 = vsel %vm1168_vm2, %v2403_v18, -inf }
 0x937   : > { %v7076_v19 = vmul.f32 0.17677669, %v4753_v32  ;;  %2414 = vmax.xlane.f32.xlu0 %v2413_v46  ;;  %v2390_v10 = vpop.f32.mrb[47].mxu1 }
 0x938   : > { %v7080_v59 = vmul.f32 0.17677669, %v2390_v10 }
 0x939   : > { %v2428_v31 = vsel %vm1168_vm2, %v7076_v19, -inf }
 0x93a   : > { %2429 = vmax.xlane.f32.xlu1 %v2428_v31  ;;  %v2425_v33 = vsel %vm1168_vm2, %v7080_v59, -inf }
 0x93b   : > { %2420 = vmax.xlane.f32.xlu0 %v2419_v63 }
 0x93f   : > { %2426 = vmax.xlane.f32.xlu0 %v2425_v33 }
 0x94b   : > { %5435 = vrot.lane.b32.xlu1 %v6523_v22, %s6035_s14 }
 0x955   : > { %5430 = vrot.lane.b32.xlu0 %v6517_v17, %s6035_s14 }
 0x9bb   : > { %v2412_v47 = vpop.xlane.xlu1 %2411 }
 0x9bc   : > { %v2432_v12 = vsub.f32 %v2400_v45, %v2412_v47  ;;  %v2409_v42 = vpop.xlane.xlu0 %2408 }
 0x9bd   : > { %v2431_v8 = vsub.f32 %v2399_v21, %v2409_v42 }
 0x9be   : > { %v2441_v34 = vmul.f32 1.442695, %v2432_v12 }
 0x9bf   : > { %v2439_v5 = vmul.f32 1.442695, %v2431_v8 }
 0x9c0   : > { %5621 = vpow2.f32 %v2441_v34  ;;  %v2418_v60 = vpop.xlane.xlu0 %2417 }
 0x9c1   : > { %5623 = vpow2.f32 %v2439_v5  ;;  %v2434_v50 = vsub.f32 %v2402_v52, %v2418_v60 }
 0x9c3   : > { %v2445_v6 = vmul.f32 1.442695, %v2434_v50  ;;  %v2424_v32 = vpop.xlane.xlu1 %2423 }
 0x9c4   : > { %v2436_v46 = vsub.f32 %v2404_v41, %v2424_v32  ;;  %v2415_v10 = vpop.xlane.xlu0 %2414 }
 0x9c5   : > { %5625 = vpow2.f32 %v2445_v6  ;;  %v2433_v31 = vsub.f32 %v2401_v38, %v2415_v10 }
 0x9c6   : > { %v2449_v22 = vmul.f32 1.442695, %v2436_v46 }
 0x9c7   : > { %v2443_v63 = vmul.f32 1.442695, %v2433_v31  ;;  %v2430_v33 = vpop.xlane.xlu1 %2429 }
 0x9c8   : > { %v2421_v17 = vpop.xlane.xlu0 %2420 }
 0x9c9   : > { %5627 = vpow2.f32 %v2443_v63  ;;  %v2435_v45 = vsub.f32 %v2403_v18, %v2421_v17 }
 0x9ca   : > { %v7089_v47 = vpop.eup %5621  ;;  %5629 = vpow2.f32 %v2449_v22 }
 0x9cb   : > { %v5624_v21 = vpop.eup %5623  ;;  %v2447_v12 = vmul.f32 1.442695, %v2435_v45  ;;  %v2458_v52 = vsel %vm1168_vm2, %v7089_v47, 0.0  ;;  %v5436_v38 = vpop.permute.xlu1 %5435 }
 0x9cc   : > { %2459 = vadd.xlane.f32.xlu1 %v2458_v52  ;;  %v2427_v42 = vpop.xlane.xlu0 %2426  ;;  %v2455_v41 = vsel %vm1168_vm2, %v5624_v21, 0.0  ;;  %v5438_v5 = vunpack.i.h.bf16 %v5436_v38  ;;  %v5437_v60 = vunpack.i.l.bf16 %v5436_v38 }
 0x9cd   : > { %5631 = vpow2.f32 %v2447_v12  ;;  %2456 = vadd.xlane.f32.xlu0 %v2455_v41  ;;  %v2438_v12 = vsub.f32 %v7076_v19, %v2430_v33  ;;  %v2437_v52 = vsub.f32 %v7080_v59, %v2427_v42 }
 0x9ce   : > { %v5038_v22 = vpack.c.bf16 %v5438_v5, %v5437_v60 }
 0x9cf   : > { %v7094_v8 = vpop.eup %5625  ;;  %v2453_v41 = vmul.f32 1.442695, %v2438_v12  ;;  %v2451_v38 = vmul.f32 1.442695, %v2437_v52 }
 0x9d0   : > { %v5431_v34 = vpop.permute.xlu0 %5430  ;;  %v2464_v18 = vsel %vm1168_vm2, %v7094_v8, 0.0 }
 0x9d1   : > { %v5433_v50 = vunpack.i.h.bf16 %v5431_v34  ;;  %v5432_v6 = vunpack.i.l.bf16 %v5431_v34  ;;  %2465 = vadd.xlane.f32.xlu1 %v2464_v18  ;;  %5633 = vpow2.f32 %v2453_v41 }
 0x9d2   : > { %5635 = vpow2.f32 %v2451_v38 }
 0x9d3   : > { %v7098_v32 = vpop.eup %5627  ;;  %v5034_v46 = vpack.c.bf16 %v5433_v50, %v5432_v6 }
 0x9d4   : > { %v2461_v10 = vsel %vm1168_vm2, %v7098_v32, 0.0  ;;  %v7102_v31 = vpop.eup %5629 }
 0x9d5   : > { %2462 = vadd.xlane.f32.xlu0 %v2461_v10  ;;  %5035 = vmatprep.subr.bf16.mxu0 %v5034_v46  ;;  %v2470_v45 = vsel %vm1168_vm2, %v7102_v31, 0.0 }
 0x9d6   : > { %5037 = vmatpush3.bf16.msra.mxu0 %v5034_v46 }
 0x9d7   : > { %v5632_v63 = vpop.eup %5631  ;;  %5039 = vmatprep.subr.bf16.mxu0 %v5038_v22 }
 0x9d8   : > { %v2467_v17 = vsel %vm1168_vm2, %v5632_v63, 0.0 }
 0x9d9   : > { %2468 = vadd.xlane.f32.xlu1 %v2467_v17  ;;  %2471 = vadd.xlane.f32.xlu0 %v2470_v45 }
 0x9da   : > { %5041 = vmatpush3.bf16.msra.mxu0 %v5038_v22 }
 0x9db   : > { %v5634_v34 = vpop.eup %5633 }
 0x9dc   : > { %v5636_v18 = vpop.eup %5635  ;;  %v2476_v5 = vsel %vm1168_vm2, %v5634_v34, 0.0 }
 0x9dd   : > { %v2473_v60 = vsel %vm1168_vm2, %v5636_v18, 0.0 }
 0x9ea   : > { %5445 = vrot.lane.b32.xlu1 %v6535_v40, %s6035_s14 }
 0x9ef   : > { %5440 = vrot.lane.b32.xlu0 %v6529_v37, %s6035_s14 }
 0xa0e   : > { %2477 = vadd.xlane.f32.xlu0 %v2476_v5  ;;  %2474 = vadd.xlane.f32.xlu1 %v2473_v60  ;;  %v2771_v5 = vld [vmem:[#allocation10 + $0x10] sm:$0xff] }
 0xa1f   : > { %5455 = vrot.lane.b32.xlu1 %v5454_v48, %s6034_s3 }
 0xa24   : > { %5450 = vrot.lane.b32.xlu0 %v5449_v39, %s6035_s14 }
 0xa28   : > { %5470 = vrot.lane.b32.xlu0 %v5469_v15, %s6034_s3 }
 0xa2c   : > { %5480 = vrot.lane.b32.xlu0 %v5479_v20, %s6035_s14 }
 0xa59   : > { %v2460_v40 = vpop.xlane.xlu1 %2459 }
 0xa5a   : > { %v2457_v37 = vpop.xlane.xlu0 %2456 }
 0xa5b   : > { %5637 = vrcp.f32 %v2457_v37  ;;  %v2772_v37 = vld [vmem:[#allocation10 + $0x18] sm:$0xff] }
 0xa5c   : > { %5639 = vrcp.f32 %v2460_v40  ;;  %v2773_v40 = vld [vmem:[#allocation10 + $0x20] sm:$0xff] }
 0xa5e   : > { %v2466_v13 = vpop.xlane.xlu1 %2465 }
 0xa62   : > { %v2463_v62 = vpop.xlane.xlu0 %2462 }
 0xa63   : > { %5641 = vrcp.f32 %v2463_v62 }
 0xa64   : > { %5643 = vrcp.f32 %v2466_v13  ;;  %v2774_v13 = vld [vmem:[#allocation10 + $0x28] sm:$0xff] }
 0xa65   : > { %v5638_v48 = vpop.eup %5637  ;;  %v5058_v62 = vpack.c.bf16 %v2774_v13, %v2773_v40 }
 0xa66   : > { %v2469_v19 = vpop.xlane.xlu1 %2468  ;;  %v2472_v59 = vpop.xlane.xlu0 %2471  ;;  %v2480_v9 = vmul.f32 %v5638_v48, %v5624_v21  ;;  %v2775_v48 = vld [vmem:[#allocation10 + $0x30] sm:$0xff] }
 0xa67   : > { %5645 = vrcp.f32 %v2469_v19  ;;  %v5640_v33 = vpop.eup %5639  ;;  %v2776_v19 = vld [vmem:[#allocation10 + $0x38] sm:$0xff] }
 0xa68   : > { %4770 = vmatprep.mubr.msk.f32.mxu0 %vm1168_vm2, %v2480_v9  ;;  %5647 = vrcp.f32 %v2472_v59  ;;  %v2482_v42 = vmul.f32 %v5640_v33, %v7089_v47  ;;  %v2778_v59 = vld [vmem:[#allocation10 + $0x48] sm:$0xff] }
 0xa6a   : > { %v5446_v0 = vpop.permute.xlu1 %5445  ;;  %v5441_v39 = vpop.permute.xlu0 %5440 }
 0xa6b   : > { %v5448_v58 = vunpack.i.h.bf16 %v5446_v0  ;;  %v5447_v53 = vunpack.i.l.bf16 %v5446_v0  ;;  %v5443_v15 = vunpack.i.h.bf16 %v5441_v39  ;;  %v5442_v2 = vunpack.i.l.bf16 %v5441_v39  ;;  %v2779_v0 = vld [vmem:[#allocation10 + $0x50] sm:$0xff]  ;;  %v2780_v39 = vld [vmem:[#allocation10 + $0x58] sm:$0xff] }
 0xa6d   : > { %v5042_v44 = vpack.c.bf16 %v5443_v15, %v5442_v2  ;;  %v5046_v20 = vpack.c.bf16 %v5448_v58, %v5447_v53  ;;  %v5642_v21 = vpop.eup %5641  ;;  %v5070_v58 = vpack.c.bf16 %v2780_v39, %v2779_v0  ;;  %v2781_v53 = vld [vmem:[#allocation10 + $0x60] sm:$0xff]  ;;  %v2782_v15 = vld [vmem:[#allocation10 + $0x68] sm:$0xff] }
 0xa6e   : > { %v5644_v50 = vpop.eup %5643  ;;  %v2484_v6 = vmul.f32 %v5642_v21, %v7098_v32  ;;  %v5074_v2 = vpack.c.bf16 %v2782_v15, %v2781_v53 }
 0xa6f   : > { %5043 = vmatprep.subr.bf16.mxu0 %v5042_v44  ;;  %v2486_v10 = vmul.f32 %v5644_v50, %v7094_v8  ;;  %v2769_v8 = vld [vmem:[#allocation10] sm:$0xff] }
 0xa70   : > { %5045 = vmatpush3.bf16.msra.mxu0 %v5042_v44  ;;  %v2783_v44 = vld [vmem:[#allocation10 + $0x70] sm:$0xff] }
 0xa71   : > { %5047 = vmatprep.subr.bf16.mxu0 %v5046_v20  ;;  %v5646_v46 = vpop.eup %5645 }
 0xa72   : > { %v5648_v22 = vpop.eup %5647  ;;  %v2488_v17 = vmul.f32 %v5646_v46, %v5632_v63  ;;  %v2770_v63 = vld [vmem:[#allocation10 + $0x8] sm:$0xff] }
 0xa73   : > { %v2490_v45 = vmul.f32 %v5648_v22, %v7102_v31  ;;  %v5050_v60 = vpack.c.bf16 %v2770_v63, %v2769_v8  ;;  %v5054_v31 = vpack.c.bf16 %v2772_v37, %v2771_v5 }
 0xa74   : > { %5049 = vmatpush3.bf16.msra.mxu0 %v5046_v20  ;;  %v2784_v20 = vld [vmem:[#allocation10 + $0x78] sm:$0xff] }
 0xa75   : > { %5051 = vmatprep.subr.bf16.mxu0 %v5050_v60  ;;  %v5078_v33 = vpack.c.bf16 %v2784_v20, %v2783_v44 }
 0xa77   : > { %4771 = vmatmul.mubr.msk.f32.vlgmr.msra.gmra.mrb[32].mxu0 %vm1168_vm2, %v2482_v42 }
 0xa78   : > { %4773 = vmatprep.mubr.msk.f32.mxu0 %vm1168_vm2, %v2484_v6  ;;  %5053 = vmatpush3.bf16.msra.mxu0 %v5050_v60 }
 0xa79   : > { %5055 = vmatprep.subr.bf16.mxu0 %v5054_v31 }
 0xa7b   : > { %4774 = vmatmul.mubr.msk.f32.gmra.mrb[34].mxu0 %vm1168_vm2, %v2486_v10 }
 0xa7c   : > { %4776 = vmatprep.mubr.msk.f32.mxu0 %vm1168_vm2, %v2488_v17  ;;  %5057 = vmatpush3.bf16.msra.mxu0 %v5054_v31 }
 0xa7d   : > { %5059 = vmatprep.subr.bf16.mxu0 %v5058_v62 }
 0xa7f   : > { %4777 = vmatmul.mubr.msk.f32.gmra.mrb[36].mxu0 %vm1168_vm2, %v2490_v45 }
 0xa80   : > { %5061 = vmatpush3.bf16.msra.mxu0 %v5058_v62 }
 0xa9b   : > { %v2475_v47 = vpop.xlane.xlu1 %2474  ;;  %v2478_v12 = vpop.xlane.xlu0 %2477 }
 0xa9c   : > { %5649 = vrcp.f32 %v2475_v47 }
 0xa9d   : > { %5651 = vrcp.f32 %v2478_v12 }
 0xa9f   : > { %v5451_v47 = vpop.permute.xlu0 %5450  ;;  %v5456_v12 = vpop.permute.xlu1 %5455 }
 0xaa0   : > { %v5452_v51 = vunpack.i.l.bf16 %v5451_v47  ;;  %v5458_v35 = vunpack.i.h.bf16 %v5456_v12 }
 0xaa2   : > { %v2744_v14 = vsel %vm1006_vm0, %v6756_v23, %v5452_v51  ;;  %v4214_v51 = vld [vmem:[%s7792_s16] ss:$0 sm:$0xff] }
 0xaa3   : > { %v5471_v36 = vpop.permute.xlu0 %5470 }
 0xaa4   : > { %v5473_v31 = vunpack.i.h.bf16 %v5471_v36  ;;  %v5472_v40 = vunpack.i.l.bf16 %v5471_v36  ;;  %v5733_v36 = vld [vmem:[%s6390_s27 + $0x8] sm:$0xff] }
 0xaa6   : > { %v5650_v32 = vpop.eup %5649 }
 0xaa7   : > { %v5652_v52 = vpop.eup %5651  ;;  %v2492_v41 = vmul.f32 %v5650_v32, %v5636_v18  ;;  %v2777_v18 = vld [vmem:[#allocation10 + $0x40] sm:$0xff]  ;;  %v5453_v32 = vunpack.i.h.bf16 %v5451_v47  ;;  %v5481_v60 = vpop.permute.xlu0 %5480 }
 0xaa8   : > { %v2494_v38 = vmul.f32 %v5652_v52, %v5634_v34  ;;  %v5062_v34 = vpack.c.bf16 %v2776_v19, %v2775_v48  ;;  %v5066_v9 = vpack.c.bf16 %v2778_v59, %v2777_v18  ;;  %v5483_v19 = vunpack.i.h.bf16 %v5481_v60 }
 0xaa9   : > { %4779 = vmatprep.mubr.msk.f32.mxu0 %vm1168_vm2, %v2492_v41  ;;  %v2745_v27 = vsel %vm1006_vm0, %v6754_v16, %v5453_v32 }
 0xaaa   : > { %4780 = vmatmul.mubr.msk.f32.gmra.mrb[38].mxu0 %vm1168_vm2, %v2494_v38  ;;  %5063 = vmatprep.subr.bf16.mxu0 %v5062_v34  ;;  %v2753_v41 = vsel %vm1168_vm2, %v2745_v27, %v5458_v35  ;;  %v2749_v44 = vsel %vm1006_vm0, %v6762_v26, %v5483_v19  ;;  %v5736_v19 = vld [vmem:[%s6390_s27 + $0x28] sm:$0xff] }
 0xaab   : > { %5065 = vmatpush3.bf16.msra.mxu0 %v5062_v34  ;;  %v5482_v34 = vunpack.i.l.bf16 %v5481_v60 }
 0xaac   : > { %5067 = vmatprep.subr.bf16.mxu0 %v5066_v9 }
 0xaaf   : > { %5069 = vmatpush3.bf16.msra.mxu0 %v5066_v9 }
 0xab0   : > { %5071 = vmatprep.subr.bf16.mxu0 %v5070_v58 }
 0xab3   : > { %5073 = vmatpush3.bf16.msra.mxu0 %v5070_v58 }
 0xab4   : > { %5075 = vmatprep.subr.bf16.mxu0 %v5074_v2 }
 0xab7   : > { %5077 = vmatpush3.bf16.msra.mxu0 %v5074_v2  ;;  %v2748_v2 = vsel %vm1006_vm0, %v6764_v28, %v5482_v34 }
 0xab8   : > { %5079 = vmatprep.subr.bf16.mxu0 %v5078_v33 }
 0xabb   : > { %5081 = vmatpush3.bf16.msra.mxu0 %v5078_v33 }
 0xb4a   : > { %v4772_v21 = vpop.f32.mrb[32].mxu0 }
 0xb4b   : > { %v2609_v42 = vpop.f32.mrb[33].mxu0 }
 0xb4c   : > { %v5459_v50 = vpack.i.bf16 %v4772_v21, %v2609_v42 }
 0xb4e   : > { %5460 = vrot.lane.b32.xlu1 %v5459_v50, %s6033_s23  ;;  %v4775_v6 = vpop.f32.mrb[34].mxu0 }
 0xb4f   : > { %v2619_v46 = vpop.f32.mrb[35].mxu0 }
 0xb50   : > { %v5474_v10 = vpack.i.bf16 %v4775_v6, %v2619_v46 }
 0xb52   : > { %5465 = vrot.lane.b32.xlu1 %v5464_v4, %s6035_s14  ;;  %v4778_v22 = vpop.f32.mrb[36].mxu0 }
 0xb53   : > { %v2629_v17 = vpop.f32.mrb[37].mxu0 }
 0xb54   : > { %v5489_v45 = vpack.i.bf16 %v4778_v22, %v2629_v17 }
 0xb56   : > { %5475 = vrot.lane.b32.xlu1 %v5474_v10, %s6033_s23  ;;  %5490 = vrot.lane.b32.xlu0 %v5489_v45, %s6033_s23 }
 0xb5a   : > { %5485 = vrot.lane.b32.xlu1 %v5484_v43, %s6034_s3  ;;  %5500 = vrot.lane.b32.xlu0 %v5499_v57, %s6034_s3  ;;  %v5457_v43 = vunpack.i.l.bf16 %v5456_v12  ;;  %s7813_s3 = sld [smem:[#allocation36_spill]] }
 0xb5c   : > { %v2752_v52 = vsel %vm1168_vm2, %v2744_v14, %v5457_v43 }
 0xb5e   : > { %5495 = vrot.lane.b32.xlu1 %v5494_v11, %s6035_s14 }
 0xb7d   : > { %v4781_v1 = vpop.f32.mrb[38].mxu0 }
 0xb7e   : > { %v2639_v7 = vpop.f32.mrb[39].mxu0 }
 0xb7f   : > { %v5504_v4 = vpack.i.bf16 %v4781_v1, %v2639_v7 }
 0xb81   : > { %5505 = vrot.lane.b32.xlu1 %v5504_v4, %s6033_s23  ;;  %s7802_s23 = sld [smem:[#allocation32_spill]] }
 0xbc0   : > { %v5461_v57 = vpop.permute.xlu1 %5460 }
 0xbc1   : > { %v5463_v3 = vunpack.i.h.bf16 %v5461_v57  ;;  %v5462_v11 = vunpack.i.l.bf16 %v5461_v57 }
 0xbc3   : > { %v2761_v38 = vsel %vm2760_vm3, %v2752_v52, %v5462_v11  ;;  %v2762_v8 = vsel %vm2760_vm3, %v2753_v41, %v5463_v3  ;;  %v5734_v11 = vld [vmem:[%s6390_s27] sm:$0xff] }
 0xbc4   : > { %v5466_v63 = vpop.permute.xlu1 %5465  ;;  %4814 = vmatprep.mubr.f32.mxu0 %v2761_v38 }
 0xbc5   : > { %v5468_v5 = vunpack.i.h.bf16 %v5466_v63  ;;  %v5467_v16 = vunpack.i.l.bf16 %v5466_v63  ;;  %4815 = vmatmul.mubr.f32.vlgmr.msra.gmra.mrb[40].mxu0 %v2762_v8 }
 0xbc7   : > { %v2746_v23 = vsel %vm1006_vm0, %v6760_v25, %v5467_v16  ;;  %v2747_v37 = vsel %vm1006_vm0, %v6758_v24, %v5468_v5 }
 0xbc8   : > { %v5476_v13 = vpop.permute.xlu1 %5475  ;;  %v2754_v18 = vsel %vm1168_vm2, %v2746_v23, %v5472_v40  ;;  %v2755_v59 = vsel %vm1168_vm2, %v2747_v37, %v5473_v31  ;;  %v5491_v9 = vpop.permute.xlu0 %5490  ;;  %v5735_v31 = vld [vmem:[%s6390_s27 + $0x10] sm:$0xff] }
 0xbc9   : > { %v5478_v62 = vunpack.i.h.bf16 %v5476_v13  ;;  %v5477_v48 = vunpack.i.l.bf16 %v5476_v13  ;;  %v5493_v53 = vunpack.i.h.bf16 %v5491_v9  ;;  %v5492_v15 = vunpack.i.l.bf16 %v5491_v9  ;;  %v5738_v9 = vld [vmem:[%s6390_s27 + $0x20] sm:$0xff] }
 0xbcb   : > { %v2763_v0 = vsel %vm2760_vm3, %v2754_v18, %v5477_v48  ;;  %v2764_v39 = vsel %vm2760_vm3, %v2755_v59, %v5478_v62  ;;  %v5737_v18 = vld [vmem:[%s6390_s27 + $0x18] sm:$0xff] }
 0xbcc   : > { %v5486_v25 = vpop.permute.xlu1 %5485  ;;  %4817 = vmatprep.mubr.f32.mxu0 %v2763_v0  ;;  %v5501_v10 = vpop.permute.xlu0 %5500 }
 0xbcd   : > { %v5488_v58 = vunpack.i.h.bf16 %v5486_v25  ;;  %v5487_v24 = vunpack.i.l.bf16 %v5486_v25  ;;  %4818 = vmatmul.mubr.f32.gmra.mrb[42].mxu0 %v2764_v39  ;;  %v5503_v22 = vunpack.i.h.bf16 %v5501_v10  ;;  %v5502_v17 = vunpack.i.l.bf16 %v5501_v10  ;;  %v3038_v10 = vld [vmem:[#allocation11] sm:$0xff] }
 0xbcf   : > { %v2756_v20 = vsel %vm1168_vm2, %v2748_v2, %v5487_v24  ;;  %v2757_v33 = vsel %vm1168_vm2, %v2749_v44, %v5488_v58  ;;  %v5739_v2 = vld [vmem:[%s6390_s27 + $0x38] sm:$0xff] }
 0xbd0   : > { %v2765_v21 = vsel %vm2760_vm3, %v2756_v20, %v5492_v15  ;;  %v2766_v42 = vsel %vm2760_vm3, %v2757_v33, %v5493_v53  ;;  %v5496_v50 = vpop.permute.xlu1 %5495  ;;  %v5740_v20 = vld [vmem:[%s6390_s27 + $0x30] sm:$0xff]  ;;  %s7801_s27 = sld [smem:[#allocation31_spill]] }
 0xbd1   : > { %4820 = vmatprep.mubr.f32.mxu0 %v2765_v21  ;;  %v5498_v6 = vunpack.i.h.bf16 %v5496_v50  ;;  %v5497_v46 = vunpack.i.l.bf16 %v5496_v50  ;;  %v3039_v21 = vld [vmem:[#allocation11 + $0x8] sm:$0xff]  ;;  %v3041_v50 = vld [vmem:[#allocation11 + $0x18] sm:$0xff] }
 0xbd2   : > { %4821 = vmatmul.mubr.f32.gmra.mrb[44].mxu0 %v2766_v42  ;;  %v3043_v42 = vld [vmem:[#allocation11 + $0x28] sm:$0xff] }
 0xbd3   : > { %v2750_v28 = vsel %vm1006_vm0, %v6768_v30, %v5497_v46  ;;  %v2751_v26 = vsel %vm1006_vm0, %v6766_v29, %v5498_v6  ;;  %v4213_v29 = vld [vmem:[%s7741_s6] ss:$0 sm:$0xff]  ;;  %v5082_v6 = vpack.c.bf16 %v3043_v42, %v3039_v21 }
 0xbd4   : > { %v2758_v4 = vsel %vm1168_vm2, %v2750_v28, %v5502_v17  ;;  %v2759_v47 = vsel %vm1168_vm2, %v2751_v26, %v5503_v22  ;;  %v3045_v46 = vld [vmem:[#allocation11 + $0x38] sm:$0xff]  ;;  %v3042_v28 = vld [vmem:[#allocation11 + $0x20] sm:$0xff]  ;;  %v3040_v17 = vld [vmem:[#allocation11 + $0x10] sm:$0xff] }
 0xbd5   : > { %v5114_v26 = vpack.c.bf16 %v3045_v46, %v3041_v50  ;;  %v5084_v22 = vpack.c.bf16 %v3042_v28, %v3038_v10  ;;  %5083 = vmatprep.subr.bf16.mxu1 %v5082_v6 }
 0xbd7   : > { %5115 = vmatprep.subr.bf16.mxu0 %v5114_v26  ;;  %5085 = vmatpush1.bf16.msra.mxu1 %v5084_v22  ;;  %v3063_v26 = vld [vmem:[#allocation11 + $0xc8] sm:$0xff] }
 0xbd8   : > { %v3067_v22 = vld [vmem:[#allocation11 + $0xe8] sm:$0xff] }
 0xbf3   : > { %v5506_v45 = vpop.permute.xlu1 %5505 }
 0xbf4   : > { %v5508_v1 = vunpack.i.h.bf16 %v5506_v45  ;;  %v5507_v7 = vunpack.i.l.bf16 %v5506_v45  ;;  %v3044_v45 = vld [vmem:[#allocation11 + $0x30] sm:$0xff] }
 0xbf6   : > { %v2767_v12 = vsel %vm2760_vm3, %v2758_v4, %v5507_v7  ;;  %v2768_v32 = vsel %vm2760_vm3, %v2759_v47, %v5508_v1  ;;  %v3047_v1 = vld [vmem:[#allocation11 + $0x48] sm:$0xff]  ;;  %v5116_v7 = vpack.c.bf16 %v3044_v45, %v3040_v17  ;;  %v3049_v47 = vld [vmem:[#allocation11 + $0x58] sm:$0xff] }
 0xbf7   : > { %4823 = vmatprep.mubr.f32.mxu0 %v2767_v12  ;;  %v3051_v4 = vld [vmem:[#allocation11 + $0x68] sm:$0xff]  ;;  %v3053_v12 = vld [vmem:[#allocation11 + $0x78] sm:$0xff] }
 0xbf8   : > { %4824 = vmatmul.mubr.f32.gmra.mrb[46].mxu0 %v2768_v32  ;;  %v5086_v32 = vpack.c.bf16 %v3051_v4, %v3047_v1  ;;  %v3065_v17 = vld [vmem:[#allocation11 + $0xd8] sm:$0xff] }
 0xbf9   : > { %3301 = vmatprep.mubr.f32.mxu0 %v6032_v54  ;;  %5117 = vmatpush1.bf16.msra.mxu0 %v5116_v7  ;;  %v5094_v7 = vpack.c.bf16 %v3067_v22, %v3063_v26  ;;  %v3069_v4 = vld [vmem:[#allocation11 + $0xf8] sm:$0xff] }
 0xbfa   : > { %5087 = vmatprep.subr.bf16.mxu1 %v5086_v32  ;;  %v5126_v32 = vpack.c.bf16 %v3069_v4, %v3065_v17  ;;  %v3088_v17 = vld [vmem:[#allocation11 + $0x190] sm:$0xff]  ;;  %v3099_v4 = vld [vmem:[#allocation11 + $0x1e8] sm:$0xff] }
 0xc98   : > { %v4816_v30 = vpop.f32.mrb[40].mxu0 }
 0xc99   : > { %v2864_v35 = vadd.f32 %v4816_v30, %v4213_v29  ;;  %v2858_v43 = vpop.f32.mrb[41].mxu0  ;;  %v3046_v30 = vld [vmem:[#allocation11 + $0x40] sm:$0xff] }
 0xc9a   : > { %v2859_v27 = vadd.f32 %v4213_v29, %v2858_v43 }
 0xc9b   : > { %v2905_v14 = vmul.f32 %v4214_v51, %v2864_v35  ;;  %v3048_v35 = vld [vmem:[#allocation11 + $0x50] sm:$0xff] }
 0xc9c   : > { %v2904_v57 = vmul.f32 %v4214_v51, %v2859_v27  ;;  %v3052_v27 = vld [vmem:[#allocation11 + $0x70] sm:$0xff] }
 0xc9d   : > { %v7203_v3 = vadd.f32 %v5733_v36, %v2905_v14  ;;  %v3055_v14 = vld [vmem:[#allocation11 + $0x88] sm:$0xff]  ;;  %v5120_v36 = vpack.c.bf16 %v3052_v27, %v3048_v35 }
 0xc9e   : > { %v7206_v52 = vadd.f32 %v5734_v11, %v2904_v57  ;;  %v3059_v57 = vld [vmem:[#allocation11 + $0xa8] sm:$0xff] }
 0xc9f   : > { %7793 = vst [vmem:[#allocation20_spill] sm:$0xff] %v7203_v3  ;;  %2924 = vadd.xlane.f32.xlu1 %v7203_v3  ;;  %v5090_v11 = vpack.c.bf16 %v3059_v57, %v3055_v14  ;;  %v3075_v27 = vld [vmem:[#allocation11 + $0x128] sm:$0xff]  ;;  %v3073_v14 = vld [vmem:[#allocation11 + $0x118] sm:$0xff] }
 0xca0   : > { %7794 = vst [vmem:[#allocation21_spill] sm:$0xff] %v7206_v52  ;;  %v4819_v41 = vpop.f32.mrb[42].mxu0  ;;  %2922 = vadd.xlane.f32.xlu0 %v7206_v52 }
 0xca1   : > { %v2868_v38 = vpop.f32.mrb[43].mxu0  ;;  %v2874_v8 = vadd.f32 %v4819_v41, %v4213_v29  ;;  %v3057_v41 = vld [vmem:[#allocation11 + $0x98] sm:$0xff] }
 0xca2   : > { %v2869_v63 = vadd.f32 %v4213_v29, %v2868_v38  ;;  %v3061_v38 = vld [vmem:[#allocation11 + $0xb8] sm:$0xff] }
 0xca3   : > { %v2907_v60 = vmul.f32 %v4214_v51, %v2874_v8  ;;  %v3054_v8 = vld [vmem:[#allocation11 + $0x80] sm:$0xff] }
 0xca4   : > { %v2906_v5 = vmul.f32 %v4214_v51, %v2869_v63  ;;  %v5122_v63 = vpack.c.bf16 %v3061_v38, %v3057_v41  ;;  %v3074_v41 = vld [vmem:[#allocation11 + $0x120] sm:$0xff] }
 0xca5   : > { %v4822_v16 = vpop.f32.mrb[44].mxu0  ;;  %v7218_v59 = vadd.f32 %v5737_v18, %v2907_v60  ;;  %v3060_v60 = vld [vmem:[#allocation11 + $0xb0] sm:$0xff] }
 0xca6   : > { %v2884_v23 = vadd.f32 %v4822_v16, %v4213_v29  ;;  %v2878_v37 = vpop.f32.mrb[45].mxu0  ;;  %v7211_v40 = vadd.f32 %v5735_v31, %v2906_v5  ;;  %v3058_v5 = vld [vmem:[#allocation11 + $0xa0] sm:$0xff]  ;;  %v3056_v16 = vld [vmem:[#allocation11 + $0x90] sm:$0xff] }
 0xca7   : > { %v2879_v13 = vadd.f32 %v4213_v29, %v2878_v37  ;;  %7797 = vst [vmem:[#allocation24_spill] sm:$0xff] %v7218_v59  ;;  %v5124_v37 = vpack.c.bf16 %v3060_v60, %v3056_v16  ;;  %v3079_v60 = vld [vmem:[#allocation11 + $0x148] sm:$0xff] }
 0xca8   : > { %7795 = vst [vmem:[#allocation22_spill] sm:$0xff] %v7211_v40  ;;  %v2909_v62 = vmul.f32 %v4214_v51, %v2884_v23  ;;  %2926 = vadd.xlane.f32.xlu0 %v7211_v40  ;;  %v5092_v23 = vpack.c.bf16 %v3058_v5, %v3054_v8  ;;  %v3076_v5 = vld [vmem:[#allocation11 + $0x130] sm:$0xff] }
 0xca9   : > { %v2908_v48 = vmul.f32 %v4214_v51, %v2879_v13 }
 0xcaa   : > { %v7215_v34 = vadd.f32 %v5736_v19, %v2909_v62 }
 0xcab   : > { %v7223_v0 = vadd.f32 %v5738_v9, %v2908_v48 }
 0xcac   : > { %7796 = vst [vmem:[#allocation23_spill] sm:$0xff] %v7215_v34  ;;  %2932 = vadd.xlane.f32.xlu1 %v7215_v34  ;;  %2928 = vadd.xlane.f32.xlu0 %v7218_v59 }
 0xcad   : > { %7798 = vst [vmem:[#allocation25_spill] sm:$0xff] %v7223_v0 }
 0xcb0   : > { %2930 = vadd.xlane.f32.xlu0 %v7223_v0 }
 0xccb   : > { %v4825_v39 = vpop.f32.mrb[46].mxu0 }
 0xccc   : > { %v2894_v25 = vadd.f32 %v4825_v39, %v4213_v29  ;;  %v2888_v58 = vpop.f32.mrb[47].mxu0 }
 0xccd   : > { %v2889_v24 = vadd.f32 %v4213_v29, %v2888_v58  ;;  %v5118_v29 = vpack.c.bf16 %v3053_v12, %v3049_v47  ;;  %v3062_v47 = vld [vmem:[#allocation11 + $0xc0] sm:$0xff] }
 0xcce   : > { %v2911_v53 = vmul.f32 %v4214_v51, %v2894_v25  ;;  %v3066_v12 = vld [vmem:[#allocation11 + $0xe0] sm:$0xff] }
 0xccf   : > { %v2910_v15 = vmul.f32 %v4214_v51, %v2889_v24  ;;  %v3050_v51 = vld [vmem:[#allocation11 + $0x60] sm:$0xff]  ;;  %5119 = vmatprep.subr.bf16.mxu0 %v5118_v29  ;;  %v5096_v29 = vpack.c.bf16 %v3066_v12, %v3062_v47  ;;  %v3097_v47 = vld [vmem:[#allocation11 + $0x1d8] sm:$0xff] }
 0xcd0   : > { %v7227_v44 = vadd.f32 %v5739_v2, %v2911_v53  ;;  %v5088_v43 = vpack.c.bf16 %v3050_v51, %v3046_v30  ;;  %5121 = vmatpush1.bf16.msra.mxu0 %v5120_v36  ;;  %v3064_v30 = vld [vmem:[#allocation11 + $0xd0] sm:$0xff]  ;;  %v3077_v36 = vld [vmem:[#allocation11 + $0x138] sm:$0xff] }
 0xcd1   : > { %v7230_v33 = vadd.f32 %v5740_v20, %v2910_v15  ;;  %5123 = vmatprep.subr.bf16.mxu0 %v5122_v63  ;;  %v3068_v51 = vld [vmem:[#allocation11 + $0xf0] sm:$0xff]  ;;  %v5130_v38 = vpack.c.bf16 %v3077_v36, %v3073_v14 }
 0xcd2   : > { %7799 = vst [vmem:[#allocation26_spill] sm:$0xff] %v7227_v44  ;;  %2936 = vadd.xlane.f32.xlu1 %v7227_v44  ;;  %5089 = vmatpush1.bf16.msra.mxu1 %v5088_v43  ;;  %v5128_v35 = vpack.c.bf16 %v3068_v51, %v3064_v30  ;;  %v3071_v43 = vld [vmem:[#allocation11 + $0x108] sm:$0xff]  ;;  %v3072_v63 = vld [vmem:[#allocation11 + $0x110] sm:$0xff]  ;;  %v3098_v30 = vld [vmem:[#allocation11 + $0x1e0] sm:$0xff] }
 0xcd3   : > { %7800 = vst [vmem:[#allocation27_spill] sm:$0xff] %v7230_v33  ;;  %2934 = vadd.xlane.f32.xlu0 %v7230_v33  ;;  %5091 = vmatprep.subr.bf16.mxu1 %v5090_v11  ;;  %v5098_v57 = vpack.c.bf16 %v3075_v27, %v3071_v43  ;;  %v3070_v11 = vld [vmem:[#allocation11 + $0x100] sm:$0xff]  ;;  %v5132_v16 = vpack.c.bf16 %v3076_v5, %v3072_v63  ;;  %v3096_v43 = vld [vmem:[#allocation11 + $0x1d0] sm:$0xff] }
 0xcd4   : > { %5125 = vmatpush1.bf16.msra.mxu0 %v5124_v37  ;;  %v5100_v8 = vpack.c.bf16 %v3074_v41, %v3070_v11  ;;  %v3081_v37 = vld [vmem:[#allocation11 + $0x158] sm:$0xff]  ;;  %v3100_v27 = vld [vmem:[#allocation11 + $0x1f0] sm:$0xff] }
 0xcd5   : > { %5127 = vmatprep.subr.bf16.mxu0 %v5126_v32  ;;  %v3101_v32 = vld [vmem:[#allocation11 + $0x1f8] sm:$0xff]  ;;  %v5144_v14 = vpack.c.bf16 %v3100_v27, %v3096_v43 }
 0xcd6   : > { %5093 = vmatpush1.bf16.msra.mxu1 %v5092_v23  ;;  %v3083_v23 = vld [vmem:[#allocation11 + $0x168] sm:$0xff]  ;;  %v5142_v51 = vpack.c.bf16 %v3101_v32, %v3097_v47 }
 0xcd7   : > { %5095 = vmatprep.subr.bf16.mxu1 %v5094_v7  ;;  %v3095_v7 = vld [vmem:[#allocation11 + $0x1c8] sm:$0xff] }
 0xcd8   : > { %5129 = vmatpush1.bf16.msra.mxu0 %v5128_v35  ;;  %v5110_v12 = vpack.c.bf16 %v3099_v4, %v3095_v7 }
 0xcd9   : > { %5131 = vmatprep.subr.bf16.mxu0 %v5130_v38 }
 0xcda   : > { %5097 = vmatpush1.bf16.msra.mxu1 %v5096_v29  ;;  %v3094_v29 = vld [vmem:[#allocation11 + $0x1c0] sm:$0xff] }
 0xcdb   : > { %5099 = vmatprep.subr.bf16.mxu1 %v5098_v57  ;;  %v5112_v35 = vpack.c.bf16 %v3098_v30, %v3094_v29 }
 0xcdc   : > { %5133 = vmatpush1.bf16.msra.mxu0 %v5132_v16 }
 0xcde   : > { %5101 = vmatpush1.bf16.msra.mxu1 %v5100_v8 }
 0xd2c   : > { %v2925_v31 = vpop.xlane.xlu1 %2924 }
 0xd2d   : > { %v2939_v13 = vmul.f32 0.0078125, %v2925_v31  ;;  %v2923_v62 = vpop.xlane.xlu0 %2922  ;;  %v5102_v31 = vpack.c.bf16 %v3083_v23, %v3079_v60 }
 0xd2e   : > { %v2938_v48 = vmul.f32 0.0078125, %v2923_v62  ;;  %v3078_v62 = vld [vmem:[#allocation11 + $0x140] sm:$0xff] }
 0xd2f   : > { %v7235_v19 = vsub.f32 %v7203_v3, %v2939_v13  ;;  %v3085_v13 = vld [vmem:[#allocation11 + $0x178] sm:$0xff]  ;;  %5103 = vmatprep.subr.bf16.mxu1 %v5102_v31 }
 0xd30   : > { %v7238_v18 = vsub.f32 %v7206_v52, %v2938_v48  ;;  %v3082_v48 = vld [vmem:[#allocation11 + $0x160] sm:$0xff] }
 0xd31   : > { %v2955_v9 = vmul.f32 %v7235_v19, %v7235_v19 }
 0xd32   : > { %v2954_v39 = vmul.f32 %v7238_v18, %v7238_v18 }
 0xd33   : > { %2964 = vadd.xlane.f32.xlu1 %v2955_v9  ;;  %v5134_v9 = vpack.c.bf16 %v3085_v13, %v3081_v37 }
 0xd34   : > { %2962 = vadd.xlane.f32.xlu0 %v2954_v39  ;;  %v5104_v39 = vpack.c.bf16 %v3082_v48, %v3078_v62 }
 0xd35   : > { %v2927_v25 = vpop.xlane.xlu0 %2926  ;;  %5135 = vmatprep.subr.bf16.mxu0 %v5134_v9 }
 0xd36   : > { %v2940_v58 = vmul.f32 0.0078125, %v2927_v25  ;;  %v3080_v25 = vld [vmem:[#allocation11 + $0x150] sm:$0xff]  ;;  %5105 = vmatpush1.bf16.msra.mxu1 %v5104_v39 }
 0xd38   : > { %v7245_v24 = vsub.f32 %v7211_v40, %v2940_v58  ;;  %v3084_v58 = vld [vmem:[#allocation11 + $0x170] sm:$0xff] }
 0xd39   : > { %v2933_v53 = vpop.xlane.xlu1 %2932  ;;  %v2929_v15 = vpop.xlane.xlu0 %2928 }
 0xd3a   : > { %v2943_v2 = vmul.f32 0.0078125, %v2933_v53  ;;  %v2941_v20 = vmul.f32 0.0078125, %v2929_v15  ;;  %v2956_v21 = vmul.f32 %v7245_v24, %v7245_v24  ;;  %v5136_v53 = vpack.c.bf16 %v3084_v58, %v3080_v25  ;;  %v3087_v15 = vld [vmem:[#allocation11 + $0x188] sm:$0xff] }
 0xd3c   : > { %v7250_v42 = vsub.f32 %v7218_v59, %v2941_v20  ;;  %2966 = vadd.xlane.f32.xlu0 %v2956_v21  ;;  %v7253_v6 = vsub.f32 %v7215_v34, %v2943_v2  ;;  %v3091_v2 = vld [vmem:[#allocation11 + $0x1a8] sm:$0xff]  ;;  %v3089_v20 = vld [vmem:[#allocation11 + $0x198] sm:$0xff]  ;;  %5137 = vmatpush1.bf16.msra.mxu0 %v5136_v53 }
 0xd3d   : > { %v2931_v50 = vpop.xlane.xlu0 %2930  ;;  %v5106_v21 = vpack.c.bf16 %v3091_v2, %v3087_v15  ;;  %v7277_v2 = vld [vmem:[%s7801_s27] ss:$0 sm:$0xff]  ;;  %s7654_s27 = scalar_lea.vmem [#allocation14], %s4107_s1  ;;  %s4225_s1 = sshll.u32 %s6140_s24, 10 }
 0xd3e   : > { %v2942_v46 = vmul.f32 0.0078125, %v2931_v50  ;;  %v2957_v10 = vmul.f32 %v7250_v42, %v7250_v42  ;;  %v2959_v45 = vmul.f32 %v7253_v6, %v7253_v6  ;;  %v3093_v50 = vld [vmem:[#allocation11 + $0x1b8] sm:$0xff]  ;;  %s3964_s25 = sshll.u32 %s7654_s27, 4  ;;  %s7687_s14 = scalar_lea.hbm %s7813_s3, %s4225_s1  ;;  %s7689_s25 = int_to_ptr.vmem [resolvable:$true] %s3964_s25 }
 0xd3f   : > { %v5138_v26 = vpack.c.bf16 %v3093_v50, %v3089_v20  ;;  %5107 = vmatprep.subr.bf16.mxu1 %v5106_v21  ;;  %s5939_s30 = scalar_lea.vmem %s7689_s25, 1024  ;;  %s6036_s24 = smov [#allocation14]  }
 0xd40   : > { %v7258_v28 = vsub.f32 %v7223_v0, %v2942_v46  ;;  %2968 = vadd.xlane.f32.xlu1 %v2957_v10  ;;  %v3086_v46 = vld [vmem:[#allocation11 + $0x180] sm:$0xff]  ;;  %p5940_p6 = scmp.ne.s32.totalorder %s7689_s25, %s5939_s30  ;;  %s5943_s7 = sshll.u32 %s6036_s24, 4  ;;  %s5944_s7 = int_to_ptr.vmem [resolvable:$false] %s5943_s7 }
 0xd41   : > { %v3090_v10 = vld [vmem:[#allocation11 + $0x1a0] sm:$0xff]  ;;  %5139 = vmatprep.subr.bf16.mxu0 %v5138_v26  ;;  %p5946_p1 = scmp.lt.s32.totalorder %s7689_s25, %s5944_s7 }
 0xd42   : > { %v2958_v1 = vmul.f32 %v7258_v28, %v7258_v28  ;;  %v5108_v22 = vpack.c.bf16 %v3090_v10, %v3086_v46  ;;  %p5941_p4 = pnand %p5940_p6, %p7815_p9 }
 0xd44   : > { %2972 = vadd.xlane.f32.xlu1 %v2959_v45  ;;  %2970 = vadd.xlane.f32.xlu0 %v2958_v1  ;;  %v3092_v45 = vld [vmem:[#allocation11 + $0x1b0] sm:$0xff]  ;;  %p5942_p13 = pneg %p5941_p4 }
 0xd45   : > { %v5140_v1 = vpack.c.bf16 %v3092_v45, %v3088_v17  ;;  %5109 = vmatpush1.bf16.msra.mxu1 %v5108_v22  ;;  %v7284_v22 = vld [vmem:[%s7802_s23] ss:$0 sm:$0xff] }
 0xd46   : > { %5111 = vmatprep.subr.bf16.mxu1 %v5110_v12 }
 0xd47   : > { %5141 = vmatpush1.bf16.msra.mxu0 %v5140_v1 }
 0xd48   : > { %5143 = vmatprep.subr.bf16.mxu0 %v5142_v51 }
 0xd49   : > { %5113 = vmatpush1.bf16.msra.mxu1 %v5112_v35 }
 0xd4b   : > { %5145 = vmatpush1.bf16.msra.mxu0 %v5144_v14 }
 0xd5f   : > { %v2937_v57 = vpop.xlane.xlu1 %2936 }
 0xd60   : > { %v2945_v36 = vmul.f32 0.0078125, %v2937_v57  ;;  %v2935_v11 = vpop.xlane.xlu0 %2934 }
 0xd61   : > { %v2944_v41 = vmul.f32 0.0078125, %v2935_v11 }
 0xd62   : > { %v7265_v38 = vsub.f32 %v7227_v44, %v2945_v36 }
 0xd63   : > { %v7268_v8 = vsub.f32 %v7230_v33, %v2944_v41 }
 0xd64   : > { %v2961_v63 = vmul.f32 %v7265_v38, %v7265_v38 }
 0xd65   : > { %v2960_v5 = vmul.f32 %v7268_v8, %v7268_v8 }
 0xd66   : > { %2976 = vadd.xlane.f32.xlu1 %v2961_v63 }
 0xd67   : > { %2974 = vadd.xlane.f32.xlu0 %v2960_v5 }
 0xdc0   : > { %v2965_v16 = vpop.xlane.xlu1 %2964 }
 0xdc1   : > { %v2979_v60 = vmul.f32 0.0078125, %v2965_v16  ;;  %v2963_v23 = vpop.xlane.xlu0 %2962 }
 0xdc2   : > { %v2978_v37 = vmul.f32 0.0078125, %v2963_v23 }
 0xdc3   : > { %v2987_v31 = vadd.f32 1e-05, %v2979_v60 }
 0xdc4   : > { %v2986_v13 = vadd.f32 1e-05, %v2978_v37 }
 0xdc5   : > { %5653 = vrsqrt.f32 %v2987_v31 }
 0xdc6   : > { %5655 = vrsqrt.f32 %v2986_v13 }
 0xdc9   : > { %v2967_v62 = vpop.xlane.xlu0 %2966 }
 0xdca   : > { %v2980_v48 = vmul.f32 0.0078125, %v2967_v62 }
 0xdcc   : > { %v2988_v9 = vadd.f32 1e-05, %v2980_v48 }
 0xdcd   : > { %v2969_v39 = vpop.xlane.xlu1 %2968 }
 0xdce   : > { %5657 = vrsqrt.f32 %v2988_v9  ;;  %v2981_v25 = vmul.f32 0.0078125, %v2969_v39  ;;  %v3654_v39 = vld [vmem:[#allocation13 + $0x80] sm:$0xff] }
 0xdcf   : > { %v5654_v58 = vpop.eup %5653 }
 0xdd0   : > { %v5656_v53 = vpop.eup %5655  ;;  %v2989_v15 = vadd.f32 1e-05, %v2981_v25  ;;  %v3003_v46 = vmul.f32 %v5654_v58, %v7235_v19  ;;  %v3686_v25 = vld [vmem:[#allocation13 + $0x180] sm:$0xff]  ;;  %v3687_v58 = vld [vmem:[#allocation13 + $0x188] sm:$0xff] }
 0xdd1   : > { %v3002_v20 = vmul.f32 %v5656_v53, %v7238_v18  ;;  %v2973_v21 = vpop.xlane.xlu1 %2972  ;;  %v2971_v50 = vpop.xlane.xlu0 %2970  ;;  %v3638_v53 = vld [vmem:[#allocation13] sm:$0xff] }
 0xdd2   : > { %5659 = vrsqrt.f32 %v2989_v15  ;;  %v2983_v10 = vmul.f32 0.0078125, %v2973_v21  ;;  %v2982_v26 = vmul.f32 0.0078125, %v2971_v50  ;;  %v3017_v18 = vmul.f32 %v7277_v2, %v3003_v46  ;;  %v3639_v15 = vld [vmem:[#allocation13 + $0x8] sm:$0xff] }
 0xdd3   : > { %v3016_v17 = vmul.f32 %v7277_v2, %v3002_v20  ;;  %v5178_v20 = vpack.c.bf16 %v3687_v58, %v3686_v25  ;;  %v5148_v21 = vpack.c.bf16 %v3639_v15, %v3638_v53  ;;  %v3671_v50 = vld [vmem:[#allocation13 + $0x108] sm:$0xff]  ;;  %v3646_v25 = vld [vmem:[#allocation13 + $0x40] sm:$0xff] }
 0xdd4   : > { %v2991_v45 = vadd.f32 1e-05, %v2983_v10  ;;  %v2990_v1 = vadd.f32 1e-05, %v2982_v26  ;;  %v3031_v4 = vadd.f32 %v7284_v22, %v3017_v18  ;;  %v3657_v10 = vld [vmem:[#allocation13 + $0x98] sm:$0xff]  ;;  %v3688_v26 = vld [vmem:[#allocation13 + $0x190] sm:$0xff] }
 0xdd5   : > { %v3030_v7 = vadd.f32 %v7284_v22, %v3016_v17  ;;  %5179 = vmatprep.subr.bf16.mxu0 %v5178_v20  ;;  %v3689_v17 = vld [vmem:[#allocation13 + $0x198] sm:$0xff]  ;;  %v3678_v58 = vld [vmem:[#allocation13 + $0x140] sm:$0xff]  ;;  %v3679_v15 = vld [vmem:[#allocation13 + $0x148] sm:$0xff] }
 0xdd6   : > { %5661 = vrsqrt.f32 %v2991_v45  ;;  %v3640_v45 = vld [vmem:[#allocation13 + $0x10] sm:$0xff]  ;;  %v5196_v20 = vpack.c.bf16 %v3679_v15, %v3678_v58 }
 0xdd7   : > { %5663 = vrsqrt.f32 %v2990_v1  ;;  %3189 = vmatmul.mubr.f32.vlgmr.msra.gmra.mrb[48].mxu1 %v3030_v7  ;;  %3302 = vmatmul.mubr.f32.vlgmr.msra.gmra.mrb[48].mxu0 %v3030_v7  ;;  %v3641_v1 = vld [vmem:[#allocation13 + $0x18] sm:$0xff]  ;;  %v5182_v7 = vpack.c.bf16 %v3689_v17, %v3688_v26 }
 0xdd8   : > { %v5658_v19 = vpop.eup %5657  ;;  %3194 = vmatprep.mubr.f32.mxu1 %v6032_v54  ;;  %3307 = vmatprep.mubr.f32.mxu0 %v6032_v54  ;;  %v5152_v18 = vpack.c.bf16 %v3641_v1, %v3640_v45  ;;  %v3649_v26 = vld [vmem:[#allocation13 + $0x58] sm:$0xff]  ;;  %v3680_v45 = vld [vmem:[#allocation13 + $0x150] sm:$0xff] }
 0xdd9   : > { %v3004_v47 = vmul.f32 %v5658_v19, %v7245_v24  ;;  %v3672_v19 = vld [vmem:[#allocation13 + $0x110] sm:$0xff]  ;;  %v3681_v1 = vld [vmem:[#allocation13 + $0x158] sm:$0xff] }
 0xddb   : > { %3195 = vmatmul.mubr.f32.gmra.mrb[50].mxu1 %v3031_v4  ;;  %3308 = vmatmul.mubr.f32.gmra.mrb[50].mxu0 %v3031_v4  ;;  %v3018_v12 = vmul.f32 %v7277_v2, %v3004_v47  ;;  %v3673_v4 = vld [vmem:[#allocation13 + $0x118] sm:$0xff] }
 0xddc   : > { %v5660_v32 = vpop.eup %5659  ;;  %3200 = vmatprep.mubr.f32.mxu1 %v6032_v54  ;;  %3313 = vmatprep.mubr.f32.mxu0 %v6032_v54  ;;  %v5184_v47 = vpack.c.bf16 %v3673_v4, %v3672_v19  ;;  %v3667_v19 = vld [vmem:[#allocation13 + $0xe8] sm:$0xff]  ;;  %v3698_v4 = vld [vmem:[#allocation13 + $0x1e0] sm:$0xff] }
 0xddd   : > { %v3032_v29 = vadd.f32 %v7284_v22, %v3018_v12  ;;  %v3005_v30 = vmul.f32 %v5660_v32, %v7250_v42  ;;  %v3658_v12 = vld [vmem:[#allocation13 + $0xa0] sm:$0xff]  ;;  %v3659_v32 = vld [vmem:[#allocation13 + $0xa8] sm:$0xff] }
 0xddf   : > { %3201 = vmatmul.mubr.f32.gmra.mrb[52].mxu1 %v3032_v29  ;;  %3314 = vmatmul.mubr.f32.gmra.mrb[52].mxu0 %v3032_v29  ;;  %v3019_v51 = vmul.f32 %v7277_v2, %v3005_v30  ;;  %v3690_v29 = vld [vmem:[#allocation13 + $0x1a0] sm:$0xff]  ;;  %v5154_v30 = vpack.c.bf16 %v3659_v32, %v3658_v12  ;;  %v3699_v12 = vld [vmem:[#allocation13 + $0x1e8] sm:$0xff] }
 0xde0   : > { %v5662_v35 = vpop.eup %5661  ;;  %3206 = vmatprep.mubr.f32.mxu1 %v6032_v54  ;;  %3319 = vmatprep.mubr.f32.mxu0 %v6032_v54  ;;  %v3650_v32 = vld [vmem:[#allocation13 + $0x60] sm:$0xff] }
 0xde1   : > { %v5664_v24 = vpop.eup %5663  ;;  %v3033_v43 = vadd.f32 %v7284_v22, %v3019_v51  ;;  %v3007_v14 = vmul.f32 %v5662_v35, %v7253_v6  ;;  %v3691_v51 = vld [vmem:[#allocation13 + $0x1a8] sm:$0xff] }
 0xde2   : > { %v3006_v27 = vmul.f32 %v5664_v24, %v7258_v28  ;;  %v5186_v35 = vpack.c.bf16 %v3691_v51, %v3690_v29  ;;  %v3642_v24 = vld [vmem:[#allocation13 + $0x20] sm:$0xff]  ;;  %v3651_v29 = vld [vmem:[#allocation13 + $0x68] sm:$0xff] }
 0xde3   : > { %3207 = vmatmul.mubr.f32.gmra.mrb[54].mxu1 %v3033_v43  ;;  %3320 = vmatmul.mubr.f32.gmra.mrb[54].mxu0 %v3033_v43  ;;  %v3021_v36 = vmul.f32 %v7277_v2, %v3007_v14  ;;  %v3643_v43 = vld [vmem:[#allocation13 + $0x28] sm:$0xff]  ;;  %v5172_v51 = vpack.c.bf16 %v3651_v29, %v3650_v32 }
 0xde4   : > { %3212 = vmatprep.mubr.f32.mxu1 %v6032_v54  ;;  %3325 = vmatprep.mubr.f32.mxu0 %v6032_v54  ;;  %v3020_v42 = vmul.f32 %v7277_v2, %v3006_v27  ;;  %v3674_v27 = vld [vmem:[#allocation13 + $0x120] sm:$0xff]  ;;  %v5156_v14 = vpack.c.bf16 %v3643_v43, %v3642_v24  ;;  %v3683_v24 = vld [vmem:[#allocation13 + $0x168] sm:$0xff] }
 0xde5   : > { %v3035_v6 = vadd.f32 %v7284_v22, %v3021_v36  ;;  %v3660_v36 = vld [vmem:[#allocation13 + $0xb0] sm:$0xff] }
 0xde6   : > { %v3034_v57 = vadd.f32 %v7284_v22, %v3020_v42  ;;  %v3675_v42 = vld [vmem:[#allocation13 + $0x128] sm:$0xff] }
 0xde8   : > { %3213 = vmatmul.mubr.f32.gmra.mrb[56].mxu1 %v3034_v57  ;;  %3326 = vmatmul.mubr.f32.gmra.mrb[56].mxu0 %v3034_v57  ;;  %v5188_v57 = vpack.c.bf16 %v3675_v42, %v3674_v27  ;;  %v3668_v27 = vld [vmem:[#allocation13 + $0xf0] sm:$0xff] }
 0xde9   : > { %3218 = vmatprep.mubr.f32.mxu1 %v6032_v54  ;;  %3331 = vmatprep.mubr.f32.mxu0 %v6032_v54  ;;  %v3700_v42 = vld [vmem:[#allocation13 + $0x1f0] sm:$0xff] }
 0xdec   : > { %3219 = vmatmul.mubr.f32.gmra.mrb[58].mxu1 %v3035_v6  ;;  %3332 = vmatmul.mubr.f32.gmra.mrb[58].mxu0 %v3035_v6  ;;  %v3661_v6 = vld [vmem:[#allocation13 + $0xb8] sm:$0xff] }
 0xded   : > { %3224 = vmatprep.mubr.f32.mxu1 %v6032_v54  ;;  %3337 = vmatprep.mubr.f32.mxu0 %v6032_v54 }
 0xdf3   : > { %v2977_v28 = vpop.xlane.xlu1 %2976 }
 0xdf4   : > { %v2985_v11 = vmul.f32 0.0078125, %v2977_v28  ;;  %v2975_v41 = vpop.xlane.xlu0 %2974  ;;  %v3692_v28 = vld [vmem:[#allocation13 + $0x1b0] sm:$0xff] }
 0xdf5   : > { %v2984_v63 = vmul.f32 0.0078125, %v2975_v41  ;;  %v3693_v41 = vld [vmem:[#allocation13 + $0x1b8] sm:$0xff] }
 0xdf6   : > { %v2993_v5 = vadd.f32 1e-05, %v2985_v11  ;;  %v5158_v11 = vpack.c.bf16 %v3661_v6, %v3660_v36  ;;  %v3701_v36 = vld [vmem:[#allocation13 + $0x1f8] sm:$0xff]  ;;  %v3652_v6 = vld [vmem:[#allocation13 + $0x70] sm:$0xff] }
 0xdf7   : > { %v2992_v16 = vadd.f32 1e-05, %v2984_v63  ;;  %v3644_v63 = vld [vmem:[#allocation13 + $0x30] sm:$0xff] }
 0xdf8   : > { %5665 = vrsqrt.f32 %v2993_v5  ;;  %v3645_v5 = vld [vmem:[#allocation13 + $0x38] sm:$0xff] }
 0xdf9   : > { %5667 = vrsqrt.f32 %v2992_v16  ;;  %v5190_v16 = vpack.c.bf16 %v3693_v41, %v3692_v28  ;;  %v3653_v28 = vld [vmem:[#allocation13 + $0x78] sm:$0xff] }
 0xdfa   : > { %v5176_v41 = vpack.c.bf16 %v3653_v28, %v3652_v6 }
 0xe02   : > { %v5666_v60 = vpop.eup %5665 }
 0xe03   : > { %v5668_v23 = vpop.eup %5667  ;;  %v3009_v31 = vmul.f32 %v5666_v60, %v7265_v38  ;;  %v5160_v60 = vpack.c.bf16 %v3645_v5, %v3644_v63  ;;  %v3684_v63 = vld [vmem:[#allocation13 + $0x170] sm:$0xff]  ;;  %v3685_v5 = vld [vmem:[#allocation13 + $0x178] sm:$0xff] }
 0xe04   : > { %v3008_v37 = vmul.f32 %v5668_v23, %v7268_v8  ;;  %v3655_v8 = vld [vmem:[#allocation13 + $0x88] sm:$0xff]  ;;  %v3676_v23 = vld [vmem:[#allocation13 + $0x130] sm:$0xff] }
 0xe05   : > { %v3023_v48 = vmul.f32 %v7277_v2, %v3009_v31  ;;  %v5146_v38 = vpack.c.bf16 %v3655_v8, %v3654_v39  ;;  %v3695_v39 = vld [vmem:[#allocation13 + $0x1c8] sm:$0xff] }
 0xe06   : > { %v3022_v13 = vmul.f32 %v7277_v2, %v3008_v37  ;;  %v3670_v2 = vld [vmem:[#allocation13 + $0x100] sm:$0xff]  ;;  %v3677_v37 = vld [vmem:[#allocation13 + $0x138] sm:$0xff] }
 0xe07   : > { %v3037_v9 = vadd.f32 %v7284_v22, %v3023_v48  ;;  %5147 = vmatprep.subr.bf16.mxu1 %v5146_v38  ;;  %v5180_v46 = vpack.c.bf16 %v3671_v50, %v3670_v2  ;;  %v5192_v31 = vpack.c.bf16 %v3677_v37, %v3676_v23  ;;  %v3694_v48 = vld [vmem:[#allocation13 + $0x1c0] sm:$0xff]  ;;  %v3647_v38 = vld [vmem:[#allocation13 + $0x48] sm:$0xff]  ;;  %v3665_v2 = vld [vmem:[#allocation13 + $0xd8] sm:$0xff] }
 0xe08   : > { %v3036_v62 = vadd.f32 %v7284_v22, %v3022_v13  ;;  %5149 = vmatpush3.bf16.msra.mxu1 %v5148_v21  ;;  %v3662_v13 = vld [vmem:[#allocation13 + $0xc0] sm:$0xff]  ;;  %v5194_v8 = vpack.c.bf16 %v3695_v39, %v3694_v48  ;;  %v5164_v53 = vpack.c.bf16 %v3647_v38, %v3646_v25  ;;  %v3664_v21 = vld [vmem:[#allocation13 + $0xd0] sm:$0xff] }
 0xe09   : > { %5181 = vmatpush3.bf16.msra.mxu0 %v5180_v46  ;;  %v3696_v50 = vld [vmem:[#allocation13 + $0x1d0] sm:$0xff]  ;;  %v5166_v46 = vpack.c.bf16 %v3665_v2, %v3664_v21 }
 0xe0a   : > { %3225 = vmatmul.mubr.f32.gmra.mrb[60].mxu1 %v3036_v62  ;;  %3338 = vmatmul.mubr.f32.gmra.mrb[60].mxu0 %v3036_v62  ;;  %v3663_v62 = vld [vmem:[#allocation13 + $0xc8] sm:$0xff] }
 0xe0b   : > { %3230 = vmatprep.mubr.f32.mxu1 %v6032_v54  ;;  %3343 = vmatprep.mubr.f32.mxu0 %v6032_v54  ;;  %v3656_v54 = vld [vmem:[#allocation13 + $0x90] sm:$0xff] }
 0xe0c   : > { %v5150_v22 = vpack.c.bf16 %v3657_v10, %v3656_v54  ;;  %5183 = vmatprep.subr.bf16.mxu0 %v5182_v7  ;;  %v3697_v54 = vld [vmem:[#allocation13 + $0x1d8] sm:$0xff]  ;;  %v3648_v10 = vld [vmem:[#allocation13 + $0x50] sm:$0xff]  ;;  %v5200_v7 = vpack.c.bf16 %v3681_v1, %v3680_v45 }
 0xe0d   : > { %5185 = vmatpush3.bf16.msra.mxu0 %v5184_v47  ;;  %v5168_v17 = vpack.c.bf16 %v3649_v26, %v3648_v10 }
 0xe0e   : > { %3231 = vmatmul.mubr.f32.gmra.mrb[62].mxu1 %v3037_v9  ;;  %3344 = vmatmul.mubr.f32.gmra.mrb[62].mxu0 %v3037_v9  ;;  %v5162_v9 = vpack.c.bf16 %v3663_v62, %v3662_v13 }
 0xe0f   : > { %5151 = vmatprep.subr.bf16.mxu1 %v5150_v22  ;;  %5187 = vmatprep.subr.bf16.mxu0 %v5186_v35  ;;  %v5198_v22 = vpack.c.bf16 %v3697_v54, %v3696_v50  ;;  %v3682_v35 = vld [vmem:[#allocation13 + $0x160] sm:$0xff] }
 0xe10   : > { %5153 = vmatpush3.bf16.msra.mxu1 %v5152_v18  ;;  %v3666_v18 = vld [vmem:[#allocation13 + $0xe0] sm:$0xff]  ;;  %v5204_v43 = vpack.c.bf16 %v3683_v24, %v3682_v35 }
 0xe11   : > { %5155 = vmatprep.subr.bf16.mxu1 %v5154_v30  ;;  %5189 = vmatpush3.bf16.msra.mxu0 %v5188_v57  ;;  %v5170_v47 = vpack.c.bf16 %v3667_v19, %v3666_v18  ;;  %v5202_v30 = vpack.c.bf16 %v3699_v12, %v3698_v4 }
 0xe12   : > { %5191 = vmatprep.subr.bf16.mxu0 %v5190_v16  ;;  %v5208_v16 = vpack.c.bf16 %v3685_v5, %v3684_v63 }
 0xe14   : > { %5157 = vmatpush3.bf16.msra.mxu1 %v5156_v14  ;;  %v3669_v14 = vld [vmem:[#allocation13 + $0xf8] sm:$0xff] }
 0xe15   : > { %5159 = vmatprep.subr.bf16.mxu1 %v5158_v11  ;;  %5193 = vmatpush3.bf16.msra.mxu0 %v5192_v31  ;;  %v5174_v57 = vpack.c.bf16 %v3669_v14, %v3668_v27  ;;  %v5206_v11 = vpack.c.bf16 %v3701_v36, %v3700_v42  ;;  %v3118_v31 = vsub.s32 3, %v6480_v61 }
 0xe16   : > { %5195 = vmatprep.subr.bf16.mxu0 %v5194_v8 }
 0xe18   : > { %5161 = vmatpush3.bf16.msra.mxu1 %v5160_v60  ;;  %v3102_v60 = vld [vmem:[%s7803_s28] sm:$0xf]  ;;  %s3951_s28 = scalar_lea.sflag [#allocation4], %s6384_s22 }
 0xe19   : > { %5163 = vmatprep.subr.bf16.mxu1 %v5162_v9  ;;  %5197 = vmatpush3.bf16.msra.mxu0 %v5196_v20  ;;  %v7327_v23 = vrot.slane %v3102_v60, %v775_v49  ;;  %v7331_v37 = vrot.slane %v3102_v60, %v783_v55  ;;  %v7342_v39 = vrot.slane %v3102_v60, %v779_v56 }
 0xe1a   : > { %5199 = vmatprep.subr.bf16.mxu0 %v5198_v22  ;;  %v7344_v25 = vrot.slane %v3102_v60, %v3118_v31 }
 0xe1c   : > { %5165 = vmatpush3.bf16.msra.mxu1 %v5164_v53 }
 0xe1d   : > { %5167 = vmatprep.subr.bf16.mxu1 %v5166_v46  ;;  %5201 = vmatpush3.bf16.msra.mxu0 %v5200_v7 }
 0xe1e   : > { %5203 = vmatprep.subr.bf16.mxu0 %v5202_v30 }
 0xe20   : > { %5169 = vmatpush3.bf16.msra.mxu1 %v5168_v17 }
 0xe21   : > { %5171 = vmatprep.subr.bf16.mxu1 %v5170_v47  ;;  %5205 = vmatpush3.bf16.msra.mxu0 %v5204_v43 }
 0xe22   : > { %5207 = vmatprep.subr.bf16.mxu0 %v5206_v11 }
 0xe24   : > { %5173 = vmatpush3.bf16.msra.mxu1 %v5172_v51 }
 0xe25   : > { %5175 = vmatprep.subr.bf16.mxu1 %v5174_v57  ;;  %5209 = vmatpush3.bf16.msra.mxu0 %v5208_v16 }
 0xe28   : > { %5177 = vmatpush3.bf16.msra.mxu1 %v5176_v41 }
 0xeaa   : > { %v3190_v13 = vpop.f32.mrb[48].mxu1  ;;  %v3303_v62 = vpop.f32.mrb[48].mxu0 }
 0xeab   : > { %v7335_v48 = vadd.f32 %v3190_v13, %v7327_v23  ;;  %v7338_v9 = vadd.f32 %v3303_v62, %v7331_v37  ;;  %v3192_v49 = vpop.f32.mrb[49].mxu1  ;;  %v3305_v8 = vpop.f32.mrb[49].mxu0 }
 0xeac   : > { %v7353_v61 = vadd.f32 %v3192_v49, %v7342_v39  ;;  %v7356_v2 = vadd.f32 %v3305_v8, %v7344_v25 }
 0xead   : > { %v3350_v55 = vmul.f32 %v7335_v48, %v7335_v48  ;;  %v3352_v38 = vmul.f32 %v7338_v9, %v7338_v9 }
 0xeae   : > { %v3196_v58 = vpop.f32.mrb[50].mxu1  ;;  %v3309_v53 = vpop.f32.mrb[50].mxu0  ;;  %v3351_v1 = vmul.f32 %v7353_v61, %v7353_v61  ;;  %v3353_v19 = vmul.f32 %v7356_v2, %v7356_v2 }
 0xeaf   : > { %v3382_v15 = vmul.f32 %v3350_v55, %v7335_v48  ;;  %v3384_v20 = vmul.f32 %v3352_v38, %v7338_v9  ;;  %v3198_v56 = vpop.f32.mrb[51].mxu1  ;;  %v3311_v21 = vpop.f32.mrb[51].mxu0  ;;  %v7359_v50 = vadd.f32 %v3196_v58, %v7327_v23  ;;  %v7362_v46 = vadd.f32 %v3309_v53, %v7331_v37 }
 0xeb0   : > { %v7365_v10 = vadd.f32 %v3198_v56, %v7342_v39  ;;  %v7368_v26 = vadd.f32 %v3311_v21, %v7344_v25  ;;  %v3383_v24 = vmul.f32 %v3351_v1, %v7353_v61  ;;  %v3385_v14 = vmul.f32 %v3353_v19, %v7356_v2 }
 0xeb1   : > { %v3414_v54 = vmul.f32 0.044715, %v3382_v15  ;;  %v3416_v45 = vmul.f32 0.044715, %v3384_v20  ;;  %v3354_v4 = vmul.f32 %v7359_v50, %v7359_v50  ;;  %v3356_v47 = vmul.f32 %v7362_v46, %v7362_v46 }
 0xeb2   : > { %v3202_v22 = vpop.f32.mrb[52].mxu1  ;;  %v3315_v17 = vpop.f32.mrb[52].mxu0  ;;  %v3355_v29 = vmul.f32 %v7365_v10, %v7365_v10  ;;  %v3357_v30 = vmul.f32 %v7368_v26, %v7368_v26  ;;  %v3415_v31 = vmul.f32 0.044715, %v3383_v24  ;;  %v3417_v55 = vmul.f32 0.044715, %v3385_v14 }
 0xeb3   : > { %v3204_v7 = vpop.f32.mrb[53].mxu1  ;;  %v3317_v18 = vpop.f32.mrb[53].mxu0  ;;  %v7379_v12 = vadd.f32 %v3202_v22, %v7327_v23  ;;  %v3446_v32 = vadd.f32 %v3414_v54, %v7335_v48  ;;  %v7387_v51 = vadd.f32 %v3315_v17, %v7331_v37  ;;  %v3448_v35 = vadd.f32 %v3416_v45, %v7338_v9 }
 0xeb4   : > { %v3386_v42 = vmul.f32 %v3354_v4, %v7359_v50  ;;  %v3388_v11 = vmul.f32 %v3356_v47, %v7362_v46  ;;  %v7399_v41 = vadd.f32 %v3204_v7, %v7342_v39  ;;  %v3387_v5 = vmul.f32 %v3355_v29, %v7365_v10 }
 0xeb5   : > { %v3358_v57 = vmul.f32 %v7379_v12, %v7379_v12  ;;  %v3360_v36 = vmul.f32 %v7387_v51, %v7387_v51  ;;  %v3478_v63 = vmul.f32 0.7978846, %v3446_v32  ;;  %v3389_v16 = vmul.f32 %v3357_v30, %v7368_v26 }
 0xeb6   : > { %v3208_v43 = vpop.f32.mrb[54].mxu1  ;;  %v3321_v27 = vpop.f32.mrb[54].mxu0  ;;  %v3480_v60 = vmul.f32 0.7978846, %v3448_v35  ;;  %v3418_v38 = vmul.f32 0.044715, %v3386_v42  ;;  %v7406_v58 = vadd.f32 %v3317_v18, %v7344_v25  ;;  %v3359_v56 = vmul.f32 %v7399_v41, %v7399_v41 }
 0xeb7   : > { %v3210_v6 = vpop.f32.mrb[55].mxu1  ;;  %v3323_v28 = vpop.f32.mrb[55].mxu0  ;;  %v3390_v13 = vmul.f32 %v3358_v57, %v7379_v12  ;;  %v3392_v62 = vmul.f32 %v3360_v36, %v7387_v51  ;;  %v3420_v20 = vmul.f32 0.044715, %v3388_v11  ;;  %v7411_v21 = vadd.f32 %v3208_v43, %v7327_v23 }
 0xeb8   : > { %5669 = vtanh.f32 %v3478_v63  ;;  %v3419_v54 = vmul.f32 0.044715, %v3387_v5  ;;  %v3421_v22 = vmul.f32 0.044715, %v3389_v16  ;;  %v3447_v17 = vadd.f32 %v3415_v31, %v7353_v61 }
 0xeb9   : > { %5671 = vtanh.f32 %v3480_v60  ;;  %v3422_v45 = vmul.f32 0.044715, %v3390_v13  ;;  %v3424_v1 = vmul.f32 0.044715, %v3392_v62  ;;  %v3449_v19 = vadd.f32 %v3417_v55, %v7356_v2 }
 0xeba   : > { %v3450_v4 = vadd.f32 %v3418_v38, %v7359_v50  ;;  %v3361_v47 = vmul.f32 %v7406_v58, %v7406_v58  ;;  %v7419_v32 = vadd.f32 %v3321_v27, %v7331_v37  ;;  %v3452_v29 = vadd.f32 %v3420_v20, %v7362_v46 }
 0xebb   : > { %v3214_v49 = vpop.f32.mrb[56].mxu1  ;;  %v3327_v8 = vpop.f32.mrb[56].mxu0  ;;  %v3391_v30 = vmul.f32 %v3359_v56, %v7399_v41  ;;  %v3362_v35 = vmul.f32 %v7411_v21, %v7411_v21  ;;  %v7426_v24 = vadd.f32 %v3210_v6, %v7342_v39  ;;  %v3451_v42 = vadd.f32 %v3419_v54, %v7365_v10 }
 0xebc   : > { %v3216_v53 = vpop.f32.mrb[57].mxu1  ;;  %v3329_v15 = vpop.f32.mrb[57].mxu0  ;;  %v3453_v57 = vadd.f32 %v3421_v22, %v7368_v26  ;;  %v7431_v36 = vadd.f32 %v3323_v28, %v7344_v25  ;;  %v3479_v27 = vmul.f32 0.7978846, %v3447_v17  ;;  %v3454_v11 = vadd.f32 %v3422_v45, %v7379_v12 }
 0xebd   : > { %v3456_v63 = vadd.f32 %v3424_v1, %v7387_v51  ;;  %v3481_v5 = vmul.f32 0.7978846, %v3449_v19  ;;  %v7435_v16 = vmul.f32 0.7978846, %v3450_v4  ;;  %v3393_v6 = vmul.f32 %v3361_v47, %v7406_v58 }
 0xebe   : > { %v3364_v60 = vmul.f32 %v7419_v32, %v7419_v32  ;;  %v7440_v31 = vmul.f32 0.7978846, %v3452_v29  ;;  %v3423_v13 = vmul.f32 0.044715, %v3391_v30  ;;  %v3394_v62 = vmul.f32 %v3362_v35, %v7411_v21 }
 0xebf   : > { %v3220_v7 = vpop.f32.mrb[58].mxu1  ;;  %v3333_v18 = vpop.f32.mrb[58].mxu0  ;;  %v3363_v28 = vmul.f32 %v7426_v24, %v7426_v24  ;;  %v3483_v55 = vmul.f32 0.7978846, %v3451_v42  ;;  %v3485_v38 = vmul.f32 0.7978846, %v3453_v57  ;;  %v3365_v20 = vmul.f32 %v7431_v36, %v7431_v36 }
 0xec0   : > { %v3222_v43 = vpop.f32.mrb[59].mxu1  ;;  %v3335_v14 = vpop.f32.mrb[59].mxu0  ;;  %v7448_v56 = vadd.f32 %v3214_v49, %v7327_v23  ;;  %v7450_v54 = vmul.f32 0.7978846, %v3454_v11  ;;  %v7452_v22 = vmul.f32 0.7978846, %v3456_v63  ;;  %v7455_v17 = vadd.f32 %v3327_v8, %v7331_v37 }
 0xec1   : > { %v7458_v45 = vadd.f32 %v3216_v53, %v7342_v39  ;;  %v3425_v19 = vmul.f32 0.044715, %v3393_v6  ;;  %v3396_v4 = vmul.f32 %v3364_v60, %v7419_v32  ;;  %v7462_v47 = vadd.f32 %v3329_v15, %v7344_v25 }
 0xec2   : > { %v5670_v1 = vpop.eup %5669  ;;  %v7465_v49 = vadd.f32 %v3220_v7, %v7327_v23  ;;  %v3455_v30 = vadd.f32 %v3423_v13, %v7399_v41  ;;  %v3426_v35 = vmul.f32 0.044715, %v3394_v62  ;;  %v3395_v8 = vmul.f32 %v3363_v28, %v7426_v24 }
 0xec3   : > { %v5672_v29 = vpop.eup %5671  ;;  %v7470_v42 = vadd.f32 %v3222_v43, %v7342_v39  ;;  %v3397_v53 = vmul.f32 %v3365_v20, %v7431_v36  ;;  %v3366_v57 = vmul.f32 %v7448_v56, %v7448_v56  ;;  %v3367_v15 = vmul.f32 %v7458_v45, %v7458_v45 }
 0xec4   : > { %v7478_v7 = vadd.f32 %v3335_v14, %v7344_v25  ;;  %v3542_v11 = vadd.f32 1.0, %v5670_v1  ;;  %v3368_v63 = vmul.f32 %v7455_v17, %v7455_v17  ;;  %v3369_v6 = vmul.f32 %v7462_v47, %v7462_v47 }
 0xec5   : > { %v3370_v43 = vmul.f32 %v7465_v49, %v7465_v49  ;;  %v3544_v60 = vadd.f32 1.0, %v5672_v29  ;;  %v3457_v13 = vadd.f32 %v3425_v19, %v7406_v58  ;;  %v3428_v62 = vmul.f32 0.044715, %v3396_v4 }
 0xec6   : > { %v3371_v28 = vmul.f32 %v7470_v42, %v7470_v42  ;;  %v3487_v20 = vmul.f32 0.7978846, %v3455_v30  ;;  %v3427_v14 = vmul.f32 0.044715, %v3395_v8  ;;  %v7490_v1 = vadd.f32 %v3333_v18, %v7331_v37 }
 0xec7   : > { %v3373_v44 = vmul.f32 %v7478_v7, %v7478_v7  ;;  %v3458_v33 = vadd.f32 %v3426_v35, %v7411_v21  ;;  %v3429_v34 = vmul.f32 0.044715, %v3397_v53  ;;  %v3398_v0 = vmul.f32 %v3366_v57, %v7448_v56 }
 0xec8   : > { %v3399_v29 = vmul.f32 %v3367_v15, %v7458_v45  ;;  %v3400_v19 = vmul.f32 %v3368_v63, %v7455_v17  ;;  %v3401_v4 = vmul.f32 %v3369_v6, %v7462_v47  ;;  %v3402_v30 = vmul.f32 %v3370_v43, %v7465_v49 }
 0xec9   : > { %5673 = vtanh.f32 %v3479_v27  ;;  %v3574_v8 = vmul.f32 0.5, %v3542_v11  ;;  %v3489_v18 = vmul.f32 0.7978846, %v3457_v13  ;;  %v3460_v59 = vadd.f32 %v3428_v62, %v7419_v32 }
 0xeca   : > { %v3403_v40 = vmul.f32 %v3371_v28, %v7470_v42  ;;  %v3459_v35 = vadd.f32 %v3427_v14, %v7426_v24  ;;  %v3372_v53 = vmul.f32 %v7490_v1, %v7490_v1  ;;  %v3405_v57 = vmul.f32 %v3373_v44, %v7478_v7 }
 0xecb   : > { %5675 = vtanh.f32 %v3481_v5  ;;  %v3461_v15 = vadd.f32 %v3429_v34, %v7431_v36  ;;  %v3430_v63 = vmul.f32 0.044715, %v3398_v0  ;;  %v3431_v6 = vmul.f32 0.044715, %v3399_v29 }
 0xecc   : > { %5677 = vtanh.f32 %v3483_v55  ;;  %v3432_v27 = vmul.f32 0.044715, %v3400_v19  ;;  %v3433_v11 = vmul.f32 0.044715, %v3401_v4  ;;  %v3434_v43 = vmul.f32 0.044715, %v3402_v30 }
 0xecd   : > { %5679 = vtanh.f32 %v3485_v38  ;;  %v3576_v13 = vmul.f32 0.5, %v3544_v60  ;;  %v3490_v62 = vmul.f32 0.7978846, %v3458_v33  ;;  %v3435_v28 = vmul.f32 0.044715, %v3403_v40 }
 0xece   : > { %5681 = vtanh.f32 %v7435_v16  ;;  %v3491_v14 = vmul.f32 0.7978846, %v3459_v35  ;;  %v3404_v3 = vmul.f32 %v3372_v53, %v7490_v1  ;;  %v3437_v52 = vmul.f32 0.044715, %v3405_v57 }
 0xecf   : > { %5683 = vtanh.f32 %v7440_v31  ;;  %v3493_v44 = vmul.f32 0.7978846, %v3461_v15  ;;  %v3462_v34 = vadd.f32 %v3430_v63, %v7448_v56  ;;  %v3463_v0 = vadd.f32 %v3431_v6, %v7458_v45 }
 0xed0   : > { %5685 = vtanh.f32 %v3487_v20  ;;  %v3464_v5 = vadd.f32 %v3432_v27, %v7455_v17  ;;  %v3465_v55 = vadd.f32 %v3433_v11, %v7462_v47  ;;  %v3466_v40 = vadd.f32 %v3434_v43, %v7465_v49 }
 0xed1   : > { %5687 = vtanh.f32 %v3489_v18  ;;  %v3606_v33 = vmul.f32 %v3574_v8, %v7335_v48  ;;  %v3492_v16 = vmul.f32 0.7978846, %v3460_v59  ;;  %v3467_v38 = vadd.f32 %v3435_v28, %v7470_v42 }
 0xed2   : > { %5689 = vtanh.f32 %v7450_v54  ;;  %v3608_v60 = vmul.f32 %v3576_v13, %v7338_v9  ;;  %v3436_v29 = vmul.f32 0.044715, %v3404_v3  ;;  %v3469_v20 = vadd.f32 %v3437_v52, %v7478_v7 }
 0xed3   : > { %v5674_v31 = vpop.eup %5673  ;;  %5691 = vtanh.f32 %v7452_v22  ;;  %v3494_v19 = vmul.f32 0.7978846, %v3462_v34  ;;  %v3495_v4 = vmul.f32 0.7978846, %v3463_v0  ;;  %v3496_v35 = vmul.f32 0.7978846, %v3464_v5 }
 0xed4   : > { %v3543_v30 = vadd.f32 1.0, %v5674_v31  ;;  %5693 = vtanh.f32 %v3491_v14  ;;  %v3497_v48 = vmul.f32 0.7978846, %v3465_v55  ;;  %v7521_v59 = vmul.f32 0.7978846, %v3466_v40 }
 0xed5   : > { %v5676_v18 = vpop.eup %5675  ;;  %5695 = vtanh.f32 %v3493_v44  ;;  %v7523_v54 = vmul.f32 0.7978846, %v3467_v38  ;;  %v7526_v52 = vadd.f32 %v3436_v29, %v7490_v1  ;;  %v7528_v22 = vmul.f32 0.7978846, %v3469_v20 }
 0xed6   : > { %v5678_v8 = vpop.eup %5677  ;;  %v3575_v53 = vmul.f32 0.5, %v3543_v30  ;;  %v3545_v9 = vadd.f32 1.0, %v5676_v18  ;;  %5697 = vtanh.f32 %v3490_v62 }
 0xed7   : > { %v5680_v3 = vpop.eup %5679  ;;  %v3547_v57 = vadd.f32 1.0, %v5678_v8  ;;  %5699 = vtanh.f32 %v3492_v16 }
 0xed8   : > { %v5682_v6 = vpop.eup %5681  ;;  %v3607_v27 = vmul.f32 %v3575_v53, %v7353_v61  ;;  %v3577_v11 = vmul.f32 0.5, %v3545_v9  ;;  %v3549_v43 = vadd.f32 1.0, %v5680_v3  ;;  %5701 = vtanh.f32 %v3495_v4 }
 0xed9   : > { %v5684_v62 = vpop.eup %5683  ;;  %v3579_v14 = vmul.f32 0.5, %v3547_v57  ;;  %v3546_v44 = vadd.f32 1.0, %v5682_v6  ;;  %5703 = vtanh.f32 %v3497_v48 }
 0xeda   : > { %v5686_v0 = vpop.eup %5685  ;;  %3773 = vmatprep.mubr.f32.mxu1 %v3607_v27  ;;  %v3609_v5 = vmul.f32 %v3577_v11, %v7356_v2  ;;  %v3581_v55 = vmul.f32 0.5, %v3549_v43  ;;  %v3548_v61 = vadd.f32 1.0, %v5684_v62  ;;  %5705 = vtanh.f32 %v3494_v19 }
 0xedb   : > { %v5688_v40 = vpop.eup %5687  ;;  %3774 = vmatmul.mubr.f32.vlgmr.msra.gmra.mrb[64].mxu1 %v3606_v33  ;;  %v3611_v16 = vmul.f32 %v3579_v14, %v7365_v10  ;;  %v3578_v38 = vmul.f32 0.5, %v3546_v44  ;;  %v3551_v31 = vadd.f32 1.0, %v5686_v0  ;;  %5707 = vtanh.f32 %v3496_v35 }
 0xedc   : > { %v5690_v4 = vpop.eup %5689  ;;  %3878 = vmatprep.mubr.f32.mxu0 %v3609_v5  ;;  %v3613_v30 = vmul.f32 %v3581_v55, %v7368_v26  ;;  %v3580_v18 = vmul.f32 0.5, %v3548_v61  ;;  %v3553_v2 = vadd.f32 1.0, %v5688_v40  ;;  %5709 = vtanh.f32 %v7523_v54 }
 0xedd   : > { %v3226_v15 = vpop.f32.mrb[60].mxu1  ;;  %v3339_v63 = vpop.f32.mrb[60].mxu0  ;;  %3879 = vmatmul.mubr.f32.vlgmr.msra.gmra.mrb[64].mxu0 %v3608_v60  ;;  %3778 = vmatprep.mubr.f32.mxu1 %v3611_v16  ;;  %v3610_v35 = vmul.f32 %v3578_v38, %v7359_v50  ;;  %v3583_v8 = vmul.f32 0.5, %v3551_v31  ;;  %v3550_v53 = vadd.f32 1.0, %v5690_v4  ;;  %5711 = vtanh.f32 %v7528_v22 }
 0xede   : > { %v7531_v13 = vpop.f32.mrb[61].mxu1  ;;  %v7533_v28 = vpop.f32.mrb[61].mxu0  ;;  %v7536_v34 = vadd.f32 %v3226_v15, %v7327_v23  ;;  %v7553_v9 = vadd.f32 %v3339_v63, %v7331_v37  ;;  %3883 = vmatprep.mubr.f32.mxu0 %v3613_v30  ;;  %v3612_v3 = vmul.f32 %v3580_v18, %v7362_v46  ;;  %v3585_v57 = vmul.f32 0.5, %v3553_v2 }
 0xedf   : > { %v5692_v10 = vpop.eup %5691  ;;  %3779 = vmatmul.mubr.f32.gmra.mrb[66].mxu1 %v3610_v35  ;;  %v3615_v60 = vmul.f32 %v3583_v8, %v7399_v41  ;;  %v3582_v11 = vmul.f32 0.5, %v3550_v53  ;;  %5713 = vtanh.f32 %v7521_v59 }
 0xee0   : > { %v3374_v19 = vmul.f32 %v7536_v34, %v7536_v34  ;;  %v5694_v26 = vpop.eup %5693  ;;  %v3552_v15 = vadd.f32 1.0, %v5692_v10  ;;  %v3376_v50 = vmul.f32 %v7553_v9, %v7553_v9  ;;  %v3617_v63 = vmul.f32 %v3585_v57, %v7406_v58 }
 0xee1   : > { %v7540_v29 = vpop.f32.mrb[62].mxu1  ;;  %v7542_v20 = vpop.f32.mrb[62].mxu0  ;;  %v3555_v43 = vadd.f32 1.0, %v5694_v26  ;;  %3884 = vmatmul.mubr.f32.gmra.mrb[66].mxu0 %v3612_v3  ;;  %3783 = vmatprep.mubr.f32.mxu1 %v3615_v60  ;;  %v3614_v5 = vmul.f32 %v3582_v11, %v7379_v12  ;;  %v3500_v10 = vmul.f32 0.7978846, %v7526_v52 }
 0xee2   : > { %v7547_v48 = vpop.f32.mrb[63].mxu1  ;;  %v7549_v33 = vpop.f32.mrb[63].mxu0  ;;  %v3406_v6 = vmul.f32 %v3374_v19, %v7536_v34  ;;  %v3584_v14 = vmul.f32 0.5, %v3552_v15  ;;  %v3408_v41 = vmul.f32 %v3376_v50, %v7553_v9  ;;  %3888 = vmatprep.mubr.f32.mxu0 %v3617_v63  ;;  %v7581_v50 = vadd.f32 %v7533_v28, %v7344_v25 }
 0xee3   : > { %v5696_v27 = vpop.eup %5695  ;;  %v3587_v55 = vmul.f32 0.5, %v3555_v43  ;;  %3784 = vmatmul.mubr.f32.gmra.mrb[68].mxu1 %v3614_v5  ;;  %v7577_v43 = vadd.f32 %v7531_v13, %v7342_v39  ;;  %5715 = vtanh.f32 %v3500_v10 }
 0xee4   : > { %v5698_v62 = vpop.eup %5697  ;;  %v3557_v44 = vadd.f32 1.0, %v5696_v27  ;;  %v3438_v0 = vmul.f32 0.044715, %v3406_v6  ;;  %v3616_v16 = vmul.f32 %v3584_v14, %v7387_v51  ;;  %v3440_v19 = vmul.f32 0.044715, %v3408_v41 }
 0xee5   : > { %v5700_v46 = vpop.eup %5699  ;;  %v3554_v61 = vadd.f32 1.0, %v5698_v62  ;;  %v3619_v30 = vmul.f32 %v3587_v55, %v7426_v24  ;;  %v3375_v22 = vmul.f32 %v7577_v43, %v7577_v43  ;;  %v3377_v13 = vmul.f32 %v7581_v50, %v7581_v50 }
 0xee6   : > { %v5702_v40 = vpop.eup %5701  ;;  %v3589_v38 = vmul.f32 0.5, %v3557_v44  ;;  %v3556_v31 = vadd.f32 1.0, %v5700_v46  ;;  %v3470_v58 = vadd.f32 %v3438_v0, %v7536_v34  ;;  %3889 = vmatmul.mubr.f32.gmra.mrb[68].mxu0 %v3616_v16  ;;  %v3472_v27 = vadd.f32 %v3440_v19, %v7553_v9 }
 0xee7   : > { %v5704_v4 = vpop.eup %5703  ;;  %v3586_v18 = vmul.f32 0.5, %v3554_v61  ;;  %v3559_v2 = vadd.f32 1.0, %v5702_v40  ;;  %3788 = vmatprep.mubr.f32.mxu1 %v3619_v30  ;;  %v3407_v28 = vmul.f32 %v3375_v22, %v7577_v43 }
 0xee8   : > { %v5706_v12 = vpop.eup %5705  ;;  %v3621_v35 = vmul.f32 %v3589_v38, %v7431_v36  ;;  %v3588_v8 = vmul.f32 0.5, %v3556_v31  ;;  %v3561_v53 = vadd.f32 1.0, %v5704_v4  ;;  %v3502_v15 = vmul.f32 0.7978846, %v3470_v58 }
 0xee9   : > { %v5708_v26 = vpop.eup %5707  ;;  %v3618_v51 = vmul.f32 %v3586_v18, %v7411_v21  ;;  %v3591_v3 = vmul.f32 0.5, %v3559_v2  ;;  %v3558_v57 = vadd.f32 1.0, %v5706_v12  ;;  %v3504_v59 = vmul.f32 0.7978846, %v3472_v27 }
 0xeea   : > { %3893 = vmatprep.mubr.f32.mxu0 %v3621_v35  ;;  %v3593_v24 = vmul.f32 0.5, %v3561_v53  ;;  %v3560_v6 = vadd.f32 1.0, %v5708_v26  ;;  %v3620_v36 = vmul.f32 %v3588_v8, %v7419_v32  ;;  %5717 = vtanh.f32 %v3502_v15  ;;  %v5710_v0 = vpop.eup %5709 }
 0xeeb   : > { %3789 = vmatmul.mubr.f32.gmra.mrb[70].mxu1 %v3618_v51  ;;  %v3623_v52 = vmul.f32 %v3591_v3, %v7458_v45  ;;  %v3590_v60 = vmul.f32 0.5, %v3558_v57  ;;  %v7587_v45 = vadd.f32 %v7540_v29, %v7327_v23  ;;  %v3409_v29 = vmul.f32 %v3377_v13, %v7581_v50  ;;  %v5712_v61 = vpop.eup %5711 }
 0xeec   : > { %v3625_v21 = vmul.f32 %v3593_v24, %v7462_v47  ;;  %v3592_v11 = vmul.f32 0.5, %v3560_v6  ;;  %3894 = vmatmul.mubr.f32.gmra.mrb[70].mxu0 %v3620_v36  ;;  %v7591_v47 = vadd.f32 %v7542_v20, %v7331_v37  ;;  %v7604_v37 = vadd.f32 %v7547_v48, %v7342_v39  ;;  %v5714_v30 = vpop.eup %5713 }
 0xeed   : > { %3793 = vmatprep.mubr.f32.mxu1 %v3623_v52  ;;  %v3622_v32 = vmul.f32 %v3590_v60, %v7448_v56  ;;  %v3378_v56 = vmul.f32 %v7587_v45, %v7587_v45  ;;  %v3439_v48 = vmul.f32 0.044715, %v3407_v28  ;;  %v3441_v14 = vmul.f32 0.044715, %v3409_v29  ;;  %v5716_v10 = vpop.eup %5715 }
 0xeee   : > { %3898 = vmatprep.mubr.f32.mxu0 %v3625_v21  ;;  %v3624_v54 = vmul.f32 %v3592_v11, %v7455_v17  ;;  %v3380_v23 = vmul.f32 %v7591_v47, %v7591_v47  ;;  %v7608_v17 = vadd.f32 %v7549_v33, %v7344_v25  ;;  %v3379_v63 = vmul.f32 %v7604_v37, %v7604_v37 }
 0xeef   : > { %3794 = vmatmul.mubr.f32.gmra.mrb[72].mxu1 %v3622_v32  ;;  %v3410_v20 = vmul.f32 %v3378_v56, %v7587_v45  ;;  %v3471_v46 = vadd.f32 %v3439_v48, %v7577_v43  ;;  %v3473_v5 = vadd.f32 %v3441_v14, %v7581_v50  ;;  %5719 = vtanh.f32 %v3504_v59 }
 0xef0   : > { %3899 = vmatmul.mubr.f32.gmra.mrb[72].mxu0 %v3624_v54  ;;  %v3412_v62 = vmul.f32 %v3380_v23, %v7591_v47  ;;  %v3381_v39 = vmul.f32 %v7608_v17, %v7608_v17  ;;  %v3411_v44 = vmul.f32 %v3379_v63, %v7604_v37  ;;  %v3563_v41 = vadd.f32 1.0, %v5710_v0 }
 0xef1   : > { %v3442_v25 = vmul.f32 0.044715, %v3410_v20  ;;  %v3565_v31 = vadd.f32 1.0, %v5712_v61  ;;  %v3503_v58 = vmul.f32 0.7978846, %v3471_v46  ;;  %v3562_v8 = vadd.f32 1.0, %v5714_v30 }
 0xef2   : > { %v3444_v33 = vmul.f32 0.044715, %v3412_v62  ;;  %v3413_v55 = vmul.f32 %v3381_v39, %v7608_v17  ;;  %v3443_v38 = vmul.f32 0.044715, %v3411_v44  ;;  %v3505_v4 = vmul.f32 0.7978846, %v3473_v5 }
 0xef3   : > { %v3474_v40 = vadd.f32 %v3442_v25, %v7587_v45  ;;  %v3595_v18 = vmul.f32 0.5, %v3563_v41  ;;  %v3597_v35 = vmul.f32 0.5, %v3565_v31  ;;  %5721 = vtanh.f32 %v3503_v58 }
 0xef4   : > { %v3476_v16 = vadd.f32 %v3444_v33, %v7591_v47  ;;  %v3475_v12 = vadd.f32 %v3443_v38, %v7604_v37  ;;  %v3445_v53 = vmul.f32 0.044715, %v3413_v55  ;;  %v3564_v51 = vadd.f32 1.0, %v5716_v10  ;;  %v5718_v52 = vpop.eup %5717 }
 0xef5   : > { %v3506_v2 = vmul.f32 0.7978846, %v3474_v40  ;;  %v3627_v26 = vmul.f32 %v3595_v18, %v7470_v42  ;;  %5723 = vtanh.f32 %v3505_v4  ;;  %v3629_v57 = vmul.f32 %v3597_v35, %v7478_v7 }
 0xef6   : > { %v3508_v19 = vmul.f32 0.7978846, %v3476_v16  ;;  %v3507_v3 = vmul.f32 0.7978846, %v3475_v12  ;;  %v3594_v15 = vmul.f32 0.5, %v3562_v8  ;;  %v3477_v24 = vadd.f32 %v3445_v53, %v7608_v17  ;;  %v7806_v8 = vld [vmem:[#allocation21_spill] sm:$0xff] }
 0xef7   : > { %5725 = vtanh.f32 %v3506_v2  ;;  %3798 = vmatprep.mubr.f32.mxu1 %v3627_v26  ;;  %v3596_v6 = vmul.f32 0.5, %v3564_v51  ;;  %3903 = vmatprep.mubr.f32.mxu0 %v3629_v57  ;;  %v3566_v7 = vadd.f32 1.0, %v5718_v52  ;;  %v7807_v52 = vld [vmem:[#allocation20_spill] sm:$0xff] }
 0xef8   : > { %5727 = vtanh.f32 %v3507_v3  ;;  %v3626_v27 = vmul.f32 %v3594_v15, %v7465_v49  ;;  %v3509_v36 = vmul.f32 0.7978846, %v3477_v24 }
 0xef9   : > { %5729 = vtanh.f32 %v3508_v19  ;;  %v3628_v42 = vmul.f32 %v3596_v6, %v7490_v1  ;;  %v5720_v60 = vpop.eup %5719  ;;  %v3598_v56 = vmul.f32 0.5, %v3566_v7 }
 0xefa   : > { %3799 = vmatmul.mubr.f32.gmra.mrb[74].mxu1 %v3626_v27  ;;  %5731 = vtanh.f32 %v3509_v36  ;;  %v3568_v21 = vadd.f32 1.0, %v5720_v60 }
 0xefb   : > { %3904 = vmatmul.mubr.f32.gmra.mrb[74].mxu0 %v3628_v42  ;;  %v3630_v14 = vmul.f32 %v3598_v56, %v7536_v34 }
 0xefc   : > { %v3600_v49 = vmul.f32 0.5, %v3568_v21 }
 0xefd   : > { %v5722_v11 = vpop.eup %5721 }
 0xefe   : > { %v3567_v54 = vadd.f32 1.0, %v5722_v11  ;;  %v3632_v44 = vmul.f32 %v3600_v49, %v7553_v9  ;;  %v7641_v9 = vld [vmem:[%s7804_s13] ss:$0 sm:$0xff]  ;;  %s5945_s13 = scalar_lea.vmem %s5944_s7, 2048 }
 0xeff   : > { %v5724_v32 = vpop.eup %5723  ;;  %p5947_p3 = scmp.lt.s32.totalorder %s5945_s13, %s5939_s30 }
 0xf00   : > { %v3569_v13 = vadd.f32 1.0, %v5724_v32  ;;  %v3599_v59 = vmul.f32 0.5, %v3567_v54 }
 0xf01   : > { %v5726_v22 = vpop.eup %5725  ;;  %p5948_p2 = por %p5947_p3, %p5946_p1 }
 0xf02   : > { %v5728_v23 = vpop.eup %5727  ;;  %v3570_v28 = vadd.f32 1.0, %v5726_v22  ;;  %v3601_v20 = vmul.f32 0.5, %v3569_v13  ;;  %v3631_v1 = vmul.f32 %v3599_v59, %v7577_v43 }
 0xf03   : > { %v5730_v29 = vpop.eup %5729  ;;  %v3571_v62 = vadd.f32 1.0, %v5728_v23  ;;  %v7808_v23 = vld [vmem:[#allocation22_spill] sm:$0xff]  ;;  %p5949_p8 = pnand %p5948_p2, %p5942_p13 }
 0xf04   : > { %v3572_v63 = vadd.f32 1.0, %v5730_v29  ;;  %v5732_v39 = vpop.eup %5731  ;;  %v3633_v48 = vmul.f32 %v3601_v20, %v7581_v50  ;;  %v3602_v33 = vmul.f32 0.5, %v3570_v28  ;;  %3803 = vmatprep.mubr.f32.mxu1 %v3631_v1 }
 0xf05   : > { %v3603_v25 = vmul.f32 0.5, %v3571_v62  ;;  %v3573_v0 = vadd.f32 1.0, %v5732_v39  ;;  %3804 = vmatmul.mubr.f32.gmra.mrb[76].mxu1 %v3630_v14  ;;  %v7809_v39 = vld [vmem:[#allocation24_spill] sm:$0xff] }
 0xf06   : > { %3908 = vmatprep.mubr.f32.mxu0 %v3633_v48  ;;  %v3604_v5 = vmul.f32 0.5, %v3572_v63  ;;  %v3634_v43 = vmul.f32 %v3602_v33, %v7587_v45  ;;  %v7810_v33 = vld [vmem:[#allocation25_spill] sm:$0xff] }
 0xf07   : > { %v3635_v46 = vmul.f32 %v3603_v25, %v7604_v37  ;;  %3909 = vmatmul.mubr.f32.gmra.mrb[76].mxu0 %v3632_v44  ;;  %v3605_v55 = vmul.f32 0.5, %v3573_v0 }
 0xf08   : > { %v3636_v34 = vmul.f32 %v3604_v5, %v7591_v47  ;;  %v7647_v47 = vld [vmem:[%s7805_s15] ss:$0 sm:$0xff] }
 0xf09   : > { %3808 = vmatprep.mubr.f32.mxu1 %v3635_v46  ;;  %v3637_v50 = vmul.f32 %v3605_v55, %v7608_v17 }
 0xf0a   : > { %3809 = vmatmul.mubr.f32.gmra.mrb[78].mxu1 %v3634_v43 }
 0xf0b   : > { %3913 = vmatprep.mubr.f32.mxu0 %v3637_v50 }
 0xf0c   : > { %3914 = vmatmul.mubr.f32.gmra.mrb[78].mxu0 %v3636_v34 }
 0xfae   : > { %v4434_v61 = vpop.f32.mrb[64].mxu1 }
 0xfaf   : > { %v4435_v37 = vpop.f32.mrb[65].mxu1 }
 0xfb0   : > { %v4490_v41 = vpop.f32.mrb[64].mxu0  ;;  %v4436_v40 = vadd.f32 %v4435_v37, %v4434_v61 }
 0xfb1   : > { %v4491_v16 = vpop.f32.mrb[65].mxu0 }
 0xfb2   : > { %v3776_v38 = vadd.f32 %v4436_v40, %v7641_v9  ;;  %v4492_v45 = vadd.f32 %v4491_v16, %v4490_v41  ;;  %v4437_v31 = vpop.f32.mrb[66].mxu1  ;;  %v7811_v41 = vld [vmem:[#allocation23_spill] sm:$0xff] }
 0xfb3   : > { %v4438_v17 = vpop.f32.mrb[67].mxu1 }
 0xfb4   : > { %v3881_v58 = vadd.f32 %v4492_v45, %v3776_v38  ;;  %v4493_v4 = vpop.f32.mrb[66].mxu0  ;;  %v4439_v30 = vadd.f32 %v4438_v17, %v4437_v31 }
 0xfb5   : > { %v4494_v18 = vpop.f32.mrb[67].mxu0 }
 0xfb6   : > { %v3926_v2 = vmul.f32 %v7647_v47, %v3881_v58  ;;  %v3781_v19 = vadd.f32 %v4439_v30, %v7641_v9  ;;  %v4495_v12 = vadd.f32 %v4494_v18, %v4493_v4  ;;  %v4440_v10 = vpop.f32.mrb[68].mxu1 }
 0xfb7   : > { %v4441_v35 = vpop.f32.mrb[69].mxu1 }
 0xfb8   : > { %v3934_v53 = vadd.f32 %v3926_v2, %v7806_v8  ;;  %v3886_v26 = vadd.f32 %v4495_v12, %v3781_v19  ;;  %v4442_v3 = vadd.f32 %v4441_v35, %v4440_v10 }
 0xfb9   : > { %v4496_v51 = vpop.f32.mrb[68].mxu0 }
 0xfba   : > { %v4497_v57 = vpop.f32.mrb[69].mxu0  ;;  %3942 = vst [vmem:[%s7654_s27] sm:$0xff] %v3934_v53  ;;  %v3927_v15 = vmul.f32 %v7647_v47, %v3886_v26  ;;  %v3786_v24 = vadd.f32 %v4442_v3, %v7641_v9  ;;  %v7812_v26 = vld [vmem:[#allocation27_spill] sm:$0xff] }
 0xfbb   : > { %v4498_v6 = vadd.f32 %v4497_v57, %v4496_v51 }
 0xfbc   : > { %v3935_v42 = vadd.f32 %v3927_v15, %v7807_v52  ;;  %v7814_v15 = vld [vmem:[#allocation26_spill] sm:$0xff] }
 0xfbd   : > { %v3891_v60 = vadd.f32 %v4498_v6, %v3786_v24 }
 0xfbe   : > { %v4443_v27 = vpop.f32.mrb[70].mxu1  ;;  %3943 = vst [vmem:[%s7654_s27 + $0x8] sm:$0xff] %v3935_v42 }
 0xfbf   : > { %v4444_v36 = vpop.f32.mrb[71].mxu1  ;;  %v4499_v7 = vpop.f32.mrb[70].mxu0  ;;  %v3928_v32 = vmul.f32 %v7647_v47, %v3891_v60 }
 0xfc0   : > { %v4445_v21 = vadd.f32 %v4444_v36, %v4443_v27  ;;  %v4500_v11 = vpop.f32.mrb[71].mxu0 }
 0xfc1   : > { %v4501_v22 = vadd.f32 %v4500_v11, %v4499_v7  ;;  %v3936_v59 = vadd.f32 %v3928_v32, %v7808_v23 }
 0xfc2   : > { %v3791_v54 = vadd.f32 %v4445_v21, %v7641_v9  ;;  %v4446_v13 = vpop.f32.mrb[72].mxu1 }
 0xfc3   : > { %v4447_v56 = vpop.f32.mrb[73].mxu1  ;;  %v4502_v28 = vpop.f32.mrb[72].mxu0  ;;  %3944 = vst [vmem:[%s7654_s27 + $0x10] sm:$0xff] %v3936_v59 }
 0xfc4   : > { %v3896_v49 = vadd.f32 %v4501_v22, %v3791_v54  ;;  %v4448_v29 = vadd.f32 %v4447_v56, %v4446_v13  ;;  %v4503_v20 = vpop.f32.mrb[73].mxu0 }
 0xfc5   : > { %v4504_v63 = vadd.f32 %v4503_v20, %v4502_v28 }
 0xfc6   : > { %v3929_v62 = vmul.f32 %v7647_v47, %v3896_v49  ;;  %v3796_v1 = vadd.f32 %v4448_v29, %v7641_v9 }
 0xfc8   : > { %v3937_v48 = vadd.f32 %v3929_v62, %v7809_v39  ;;  %v3901_v14 = vadd.f32 %v4504_v63, %v3796_v1 }
 0xfca   : > { %3945 = vst [vmem:[%s7654_s27 + $0x18] sm:$0xff] %v3937_v48  ;;  %v3930_v25 = vmul.f32 %v7647_v47, %v3901_v14 }
 0xfcc   : > { %v3938_v44 = vadd.f32 %v3930_v25, %v7810_v33 }
 0xfcd   : > { %v4449_v0 = vpop.f32.mrb[74].mxu1 }
 0xfce   : > { %3946 = vst [vmem:[%s7654_s27 + $0x20] sm:$0xff] %v3938_v44  ;;  %v4505_v46 = vpop.f32.mrb[74].mxu0  ;;  %v4450_v5 = vpop.f32.mrb[75].mxu1 }
 0xfcf   : > { %v4451_v55 = vadd.f32 %v4450_v5, %v4449_v0  ;;  %v4506_v43 = vpop.f32.mrb[75].mxu0 }
 0xfd0   : > { %v4507_v50 = vadd.f32 %v4506_v43, %v4505_v46 }
 0xfd1   : > { %v3801_v34 = vadd.f32 %v4451_v55, %v7641_v9 }
 0xfd3   : > { %v3906_v61 = vadd.f32 %v4507_v50, %v3801_v34 }
 0xfd5   : > { %v3931_v37 = vmul.f32 %v7647_v47, %v3906_v61 }
 0xfd7   : > { %v3939_v40 = vadd.f32 %v3931_v37, %v7811_v41 }
 0xfd8   : > { %v4452_v16 = vpop.f32.mrb[76].mxu1 }
 0xfd9   : > { %3947 = vst [vmem:[%s7654_s27 + $0x28] sm:$0xff] %v3939_v40  ;;  %v4453_v45 = vpop.f32.mrb[77].mxu1 }
 0xfda   : > { %v4508_v38 = vpop.f32.mrb[76].mxu0  ;;  %v4454_v31 = vadd.f32 %v4453_v45, %v4452_v16 }
 0xfdb   : > { %v4509_v17 = vpop.f32.mrb[77].mxu0 }
 0xfdc   : > { %v4510_v58 = vadd.f32 %v4509_v17, %v4508_v38  ;;  %v3806_v4 = vadd.f32 %v4454_v31, %v7641_v9 }
 0xfdd   : > { %v4455_v30 = vpop.f32.mrb[78].mxu1 }
 0xfde   : > { %v4456_v18 = vpop.f32.mrb[79].mxu1  ;;  %v3911_v2 = vadd.f32 %v4510_v58, %v3806_v4 }
 0xfdf   : > { %v4511_v19 = vpop.f32.mrb[78].mxu0  ;;  %v4457_v12 = vadd.f32 %v4456_v18, %v4455_v30 }
 0xfe0   : > { %v4512_v10 = vpop.f32.mrb[79].mxu0  ;;  %v3932_v35 = vmul.f32 %v7647_v47, %v3911_v2 }
 0xfe1   : > { %v3811_v8 = vadd.f32 %v4457_v12, %v7641_v9  ;;  %v4513_v53 = vadd.f32 %v4512_v10, %v4511_v19 }
 0xfe2   : > { %v3940_v51 = vadd.f32 %v3932_v35, %v7812_v26 }
 0xfe3   : > { %v3916_v3 = vadd.f32 %v4513_v53, %v3811_v8 }
 0xfe4   : > { %3948 = vst [vmem:[%s7654_s27 + $0x30] sm:$0xff] %v3940_v51 }
 0xfe5   : > { %v3933_v57 = vmul.f32 %v7647_v47, %v3916_v3 }
 0xfe7   : > { %v3941_v9 = vadd.f32 %v3933_v57, %v7814_v15 }
 0xfe9   : > { %3949 = vst [vmem:[%s7654_s27 + $0x38] sm:$0xff] %v3941_v9 }
 0xfea   : > { %5952 = shalt.err (!%p5949_p8)
}
 0xfeb   : > { %s5953_s16 = scalar_lea.hbm %s7687_s14, 1024  ;;  %s5957_s27 = scalar_lea.hbm %s7813_s3, 2048 }
 0xfec   : > { %p5954_p10 = scmp.ne.s32.totalorder %s7687_s14, %s5953_s16  ;;  %p5958_p0 = scmp.lt.u32.totalorder %s7687_s14, %s7813_s3 }
 0xfed   : > { %p5959_p5 = scmp.lt.u32.totalorder %s5957_s27, %s5953_s16  ;;  %p5961_p6 = scmp.lt.u32.totalorder %s5953_s16, %s7687_s14 }
 0xfee   : > { %p5955_p11 = pnand %p5954_p10, %p7815_p9 }
 0xfef   : > { %p5960_p7 = por %p5959_p5, %p5958_p0 }
 0xff0   : > { %p5956_p12 = pneg %p5955_p11 }
 0xff1   : > { %p5962_p4 = por %p5961_p6, %p5960_p7 }
 0xff3   : > { %p5963_p13 = pnand %p5962_p4, %p5956_p12 }
 0xff5   : > { %5966 = shalt.err (!%p5963_p13)
}
 0xff6   : > { %s6037_s23 = smov 128   ;;  %s6038_s30 = smov 8  }
 0xff7   : > { %5236 = dma.vmem_to_hbm [thread:$0]  (%p7815_p9), %s7689_s25, 1024, %s7687_s14, %s3951_s28, %s6037_s23, %s6037_s23, %s6038_s30  }
 0xff8 PF: > { %s3979_s24 = sand.u32 1, %s6005_s18   ;;  %p7816_p1 = scmp.ne.s32.totalorder %s7781_s11, 0 }
 0xff9   : > { %p7817_p3 = scmp.ge.s32.totalorder %s6017_s21, 2  ;;  %s3980_s7 = scalar_lea.sflag [#allocation4], %s3979_s24 }
 0xffb   : > { %p5262_p2 = pnand %p7817_p3, %p7816_p1 }
 0xffd   : > { %6000 = dma.done.wait (!%p5262_p2), %s3980_s7, 1024  }
 0xffe   : > { %6002 = vsyncadd (!%p5262_p2), %s3980_s7, 4294966272  ;;  %p31_p8 = scmp.ge.s32.totalorder %s6302_s26, 4   ;;  %s7818_s18 = smov %s6009_s19 }
 0xfff   : > { %s7819_s19 = smov %s6013_s20  ;;  %s7820_s20 = smov %s6313_s9 }
0x1000   : > { %s7821_s21 = smov %s6302_s26  ;;  %33 = sbr.rel (!%p31_p8) target bundleno = 18 (0x12), region = 149 }
0x1007   :  { %3985 = vsyncpa [#allocation3], 1 }
0x1008   :  { %3987 = vsyncpa [#allocation3 + $0x1], 1 }
0x1009   :  { %3988 = vsyncpa [#allocation6], 1 }
0x100a   :  { %3989 = vsyncpa [#allocation9], 1 }
0x100b   :  { %3990 = vsyncpa [#allocation12], 1 }
0x100c   :  { %3991 = vsyncpa [#allocation4], 1 }
0x100d   :  { %3993 = vsyncpa [#allocation4 + $0x1], 1 }

</bundles_post_ra>
